<compile_context>
chip_gen: v7x
topology: tpu7x:2x2x1
jax: 0.10.0
libtpu: 0.0.40
codegen_flags: <defaults>
</compile_context>

<pallas_src>
import functools

import jax
import jax.numpy as jnp
from jax.experimental import pallas as pl
from jax.experimental.pallas import tpu as pltpu


def _round_up(v, m):
    return ((v + m - 1) // m) * m


# ----------------------------------------------------------------------------
# Activations (traced inside kernels; `act` is a Python-level static string)
# ----------------------------------------------------------------------------
def _act(x, act):
    if act == "relu":
        return jnp.maximum(x, 0.0)
    if act == "hardswish":
        return x * jnp.clip(x + 3.0, 0.0, 6.0) * (1.0 / 6.0)
    if act == "hardsigmoid":
        return jnp.clip(x + 3.0, 0.0, 6.0) * (1.0 / 6.0)
    return x  # linear


# ----------------------------------------------------------------------------
# Kernel 1: fused stem = 3x3 conv (stride 2, pad 1) + folded BN + hardswish
#
# The stride-2 conv is done as 9 in-kernel MXU taps.  To avoid strided reads
# inside the kernel, the wrapper repacks the padded input into its 4 stride-2
# phases (a pure repack, same total bytes -- NOT an im2col expansion); tap
# (kh, kw) then reads an unstrided static slice of phase (kh%2, kw%2).
# ----------------------------------------------------------------------------
def _stem_kernel(ph_ref, w_ref, b_ref, o_ref, *, Hp, Ho, Wo, act):
    cin = ph_ref.shape[-1]
    cout = w_ref.shape[-1]
    x = ph_ref[0]                                    # (4*Hp, Wp, Cin) f32
    acc = None
    for kh in range(3):
        for kw in range(3):
            p = (kh % 2) * 2 + (kw % 2)              # phase index
            ra, rb = kh // 2, kw // 2                # offset inside the phase
            tap = x[p * Hp + ra:p * Hp + ra + Ho, rb:rb + Wo, :]
            t = jnp.dot(tap.reshape(Ho * Wo, cin).astype(jnp.bfloat16),
                        w_ref[kh * 3 + kw],
                        preferred_element_type=jnp.float32)
            acc = t if acc is None else acc + t
    out = _act(acc + b_ref[...], act)
    o_ref[0] = out.reshape(Ho, Wo, cout).astype(o_ref.dtype)


def stem_conv(x_nhwc, w, b):
    N, H, W, Cin = x_nhwc.shape
    Ho, Wo = H // 2, W // 2
    Hp, Wp = H // 2 + 1, W // 2 + 1                  # rows/cols per phase
    xpad = jnp.pad(x_nhwc, ((0, 0), (1, 1), (1, 1), (0, 0)))
    # 4 stride-2 phases stacked along H (order: (a, b) = (kh%2, kw%2)).
    phases = jnp.concatenate(
        [xpad[:, a::2, b::2, :] for a in (0, 1) for b in (0, 1)], axis=1)
    cout = w.shape[-1]
    kern = functools.partial(_stem_kernel, Hp=Hp, Ho=Ho, Wo=Wo, act="hardswish")
    return pl.pallas_call(
        kern,
        out_shape=jax.ShapeDtypeStruct((N, Ho, Wo, cout), jnp.float32),
        grid=(N,),
        in_specs=[
            pl.BlockSpec((1, 4 * Hp, Wp, Cin), lambda n: (n, 0, 0, 0)),
            pl.BlockSpec((9, Cin, cout), lambda n: (0, 0, 0)),
            pl.BlockSpec((1, cout), lambda n: (0, 0)),
        ],
        out_specs=pl.BlockSpec((1, Ho, Wo, cout), lambda n: (n, 0, 0, 0)),
        compiler_params=pltpu.CompilerParams(
            dimension_semantics=("parallel",),
            vmem_limit_bytes=32 * 1024 * 1024),
    )(phases, w, b)


# ----------------------------------------------------------------------------
# Kernel 2: fully fused inverted-residual block
#   expand 1x1 -> depthwise 3x3 (s1, p1) -> SE -> project 1x1 -> (+residual)
# One image per grid step; everything stays in VMEM between stages.
# The block input arrives spatially zero-padded (done once per block in XLA);
# the expand output's padding ring is re-zeroed with a tiny precomputed mask so
# the depthwise taps see true zero padding.
# ----------------------------------------------------------------------------
def _ir_block_kernel(xp_ref, m_ref, ew_ref, eb_ref, dw_ref, db_ref,
                     sw1_ref, sb1_ref, sw2_ref, sb2_ref, pw_ref, pb_ref,
                     o_ref, *, H, W, Hp, Wp, act, use_res):
    cexp = ew_ref.shape[1]
    cout = pw_ref.shape[1]
    xp = xp_ref[0]                                   # (Hp, Wp, Cin) f32, zero ring
    cin = xp.shape[-1]

    # ---- expand 1x1 conv (+folded BN) on the padded grid, MXU in bf16 ----
    e = jnp.dot(xp.reshape(Hp * Wp, cin).astype(jnp.bfloat16), ew_ref[...],
                preferred_element_type=jnp.float32) + eb_ref[...]
    e = (_act(e, act) * m_ref[...]).reshape(Hp, Wp, cexp)   # re-zero padding ring

    # ---- depthwise 3x3 stride-1 (+folded BN): 9 shifted VPU taps ----
    wdw = dw_ref[...]                                # (3, 3, Cexp) f32
    acc = None
    for kh in range(3):
        for kw in range(3):
            t = e[kh:kh + H, kw:kw + W, :] * wdw[kh, kw, :]
            acc = t if acc is None else acc + t
    d = _act(acc + db_ref[...], act).reshape(H * W, cexp)

    # ---- squeeze-excite (global pool + 2 tiny FCs + gate), fused ----
    pooled = jnp.mean(d, axis=0, keepdims=True)      # (1, Cexp)
    s1 = jnp.maximum(
        jnp.dot(pooled.astype(jnp.bfloat16), sw1_ref[...],
                preferred_element_type=jnp.float32) + sb1_ref[...], 0.0)
    gate = _act(jnp.dot(s1.astype(jnp.bfloat16), sw2_ref[...],
                        preferred_element_type=jnp.float32) + sb2_ref[...],
                "hardsigmoid")
    d = d * gate                                     # (H*W, Cexp)

    # ---- project 1x1 conv (+folded BN, linear) and optional residual ----
    out = jnp.dot(d.astype(jnp.bfloat16), pw_ref[...],
                  preferred_element_type=jnp.float32) + pb_ref[...]
    out = out.reshape(H, W, cout)
    if use_res:
        out = out + xp[1:H + 1, 1:W + 1, :]
    o_ref[0] = out.astype(o_ref.dtype)


def inverted_residual_block(x, p, act, use_res):
    """x: (N, H, W, Cin) f32 feature map -> (N, H, W, Cout)."""
    N, H, W, cin = x.shape
    cexp = p["ew"].shape[1]
    cmid = p["sw1"].shape[1]
    cout = p["pw"].shape[1]
    Hp = H + 2
    Wp = _round_up(W + 2, 8)    # keep the sublane (W) extent a multiple of 8
    # One tiny zero-pad per block at XLA level; the whole block then runs fused.
    xp = jnp.pad(x, ((0, 0), (1, 1), (1, Wp - W - 1), (0, 0)))
    mask = jnp.pad(jnp.ones((H, W), jnp.float32),
                   ((1, 1), (1, Wp - W - 1))).reshape(Hp * Wp, 1)
    kern = functools.partial(_ir_block_kernel, H=H, W=W, Hp=Hp, Wp=Wp,
                             act=act, use_res=use_res)
    return pl.pallas_call(
        kern,
        out_shape=jax.ShapeDtypeStruct((N, H, W, cout), jnp.float32),
        grid=(N,),
        in_specs=[
            pl.BlockSpec((1, Hp, Wp, cin), lambda n: (n, 0, 0, 0)),
            pl.BlockSpec((Hp * Wp, 1), lambda n: (0, 0)),
            pl.BlockSpec((cin, cexp), lambda n: (0, 0)),
            pl.BlockSpec((1, cexp), lambda n: (0, 0)),
            pl.BlockSpec((3, 3, cexp), lambda n: (0, 0, 0)),
            pl.BlockSpec((1, cexp), lambda n: (0, 0)),
            pl.BlockSpec((cexp, cmid), lambda n: (0, 0)),
            pl.BlockSpec((1, cmid), lambda n: (0, 0)),
            pl.BlockSpec((cmid, cexp), lambda n: (0, 0)),
            pl.BlockSpec((1, cexp), lambda n: (0, 0)),
            pl.BlockSpec((cexp, cout), lambda n: (0, 0)),
            pl.BlockSpec((1, cout), lambda n: (0, 0)),
        ],
        out_specs=pl.BlockSpec((1, H, W, cout), lambda n: (n, 0, 0, 0)),
        compiler_params=pltpu.CompilerParams(
            dimension_semantics=("parallel",),
            vmem_limit_bytes=32 * 1024 * 1024),
    )(xp, mask, p["ew"], p["eb"], p["dw"], p["db"],
      p["sw1"], p["sb1"], p["sw2"], p["sb2"], p["pw"], p["pb"])


# ----------------------------------------------------------------------------
# Forward: NCHW at the boundary, NHWC inside.
# ----------------------------------------------------------------------------
def mobilenetv3_forward(x_nchw, params):
    # TODO(synk): drop these boundary transposes if the consumer accepts NHWC
    # directly (saves one HBM pass per feature map).
    x = jnp.transpose(x_nchw, (0, 2, 3, 1)).astype(jnp.float32)
    h = stem_conv(x, params["stem"]["w"], params["stem"]["b"])
    f1 = inverted_residual_block(h, params["block1"], act="relu", use_res=True)
    f2 = inverted_residual_block(f1, params["block2"], act="hardswish",
                                 use_res=False)
    return tuple(jnp.transpose(f, (0, 3, 1, 2)) for f in (f1, f2))


# ----------------------------------------------------------------------------
# Deterministic synthetic parameters.
# BN folded (inference): scale = g/sqrt(v+eps), bias = b - m*scale; the scale is
# folded into the conv weights, which are pre-cast to bf16 for the MXU.  The
# depthwise (VPU) weights stay f32; biases stay f32.
# ----------------------------------------------------------------------------
def _bn_fold(key, c, eps=1e-5):
    k1, k2, k3, k4 = jax.random.split(key, 4)
    gamma = 1.0 + 0.1 * jax.random.normal(k1, (c,), jnp.float32)
    beta = 0.1 * jax.random.normal(k2, (c,), jnp.float32)
    mean = 0.1 * jax.random.normal(k3, (c,), jnp.float32)
    var = 1.0 + 0.1 * jnp.abs(jax.random.normal(k4, (c,), jnp.float32))
    scale = gamma * jax.lax.rsqrt(var + eps)
    bias = beta - mean * scale
    return scale, bias


def make_params(key):
    keys = iter(jax.random.split(key, 64))

    def conv1x1(cin, cout):
        w = 0.1 * jax.random.normal(next(keys), (cin, cout), jnp.float32)
        s, b = _bn_fold(next(keys), cout)
        return (w * s[None, :]).astype(jnp.bfloat16), b.reshape(1, cout)

    def block_p(cin, cexp, cout, r=4):
        ew, eb = conv1x1(cin, cexp)
        dw = 0.1 * jax.random.normal(next(keys), (3, 3, cexp), jnp.float32)
        ds, db = _bn_fold(next(keys), cexp)
        dwf = dw * ds[None, None, :]                      # folded, kept f32 (VPU)
        cmid = cexp // r
        sw1 = (0.1 * jax.random.normal(next(keys), (cexp, cmid),
                                       jnp.float32)).astype(jnp.bfloat16)
        sb1 = (0.1 * jax.random.normal(next(keys), (cmid,),
                                       jnp.float32)).reshape(1, cmid)
        sw2 = (0.1 * jax.random.normal(next(keys), (cmid, cexp),
                                       jnp.float32)).astype(jnp.bfloat16)
        sb2 = (0.1 * jax.random.normal(next(keys), (cexp,),
                                       jnp.float32)).reshape(1, cexp)
        pw, pb = conv1x1(cexp, cout)
        return dict(ew=ew, eb=eb, dw=dwf, db=db.reshape(1, cexp),
                    sw1=sw1, sb1=sb1, sw2=sw2, sb2=sb2, pw=pw, pb=pb)

    sw = 0.1 * jax.random.normal(next(keys), (3, 3, 3, 16), jnp.float32)
    ss, sb = _bn_fold(next(keys), 16)
    stem_w = ((sw * ss[None, None, None, :]).reshape(9, 3, 16)).astype(jnp.bfloat16)
    return {
        "stem": dict(w=stem_w, b=sb.reshape(1, 16)),
        "block1": block_p(16, 32, 16),
        "block2": block_p(16, 48, 24),
    }


# ----------------------------------------------------------------------------
# Pure-JAX reference (mirrors the kernel math, incl. bf16 MXU operands)
# ----------------------------------------------------------------------------
def _reference_forward(x_nchw, params):
    x = jnp.transpose(x_nchw, (0, 2, 3, 1)).astype(jnp.float32)
    N, H, W, _ = x.shape
    Ho, Wo = H // 2, W // 2
    sw, sb = params["stem"]["w"], params["stem"]["b"]
    cout = sw.shape[-1]
    xpad = jnp.pad(x, ((0, 0), (1, 1), (1, 1), (0, 0)))
    acc = jnp.zeros((N * Ho * Wo, cout), jnp.float32)
    for kh in range(3):
        for kw in range(3):
            tap = xpad[:, kh:kh + 2 * Ho:2, kw:kw + 2 * Wo:2, :]
            acc = acc + jnp.dot(
                tap.reshape(N * Ho * Wo, -1).astype(jnp.bfloat16),
                sw[kh * 3 + kw], preferred_element_type=jnp.float32)
    h = _act(acc + sb, "hardswish").reshape(N, Ho, Wo, cout)

    def block(hin, p, act, use_res):
        n, hh, ww, cin = hin.shape
        cexp = p["ew"].shape[1]
        e = _act(jnp.dot(hin.reshape(n * hh * ww, cin).astype(jnp.bfloat16),
                         p["ew"], preferred_element_type=jnp.float32) + p["eb"],
                 act).reshape(n, hh, ww, cexp)
        ep = jnp.pad(e, ((0, 0), (1, 1), (1, 1), (0, 0)))
        acc = jnp.zeros_like(e)
        for kh in range(3):
            for kw in range(3):
                acc = acc + ep[:, kh:kh + hh, kw:kw + ww, :] * p["dw"][kh, kw, :]
        d = _act(acc + p["db"].reshape(1, 1, 1, cexp), act)
        pooled = jnp.mean(d, axis=(1, 2))
        s1 = jnp.maximum(jnp.dot(pooled.astype(jnp.bfloat16), p["sw1"],
                                 preferred_element_type=jnp.float32) + p["sb1"],
                         0.0)
        gate = _act(jnp.dot(s1.astype(jnp.bfloat16), p["sw2"],
                            preferred_element_type=jnp.float32) + p["sb2"],
                    "hardsigmoid")
        dse = d * gate[:, None, None, :]
        o = jnp.dot(dse.reshape(n * hh * ww, cexp).astype(jnp.bfloat16), p["pw"],
                    preferred_element_type=jnp.float32) + p["pb"]
        o = o.reshape(n, hh, ww, -1)
        if use_res:
            o = o + hin
        return o

    f1 = block(h, params["block1"], "relu", True)
    f2 = block(f1, params["block2"], "hardswish", False)
    return tuple(jnp.transpose(f, (0, 3, 1, 2)) for f in (f1, f2))


if __name__ == "__main__":
    key = jax.random.PRNGKey(0)
    kx, kp = jax.random.split(key)
    x = jax.random.normal(kx, (2, 3, 16, 16), jnp.float32)  # NCHW (PyTorch)
    params = make_params(kp)

    fwd = jax.jit(mobilenetv3_forward)
    feats = fwd(x, params)
    jax.block_until_ready(feats)

    assert feats[0].shape == (2, 16, 8, 8), feats[0].shape
    assert feats[1].shape == (2, 24, 8, 8), feats[1].shape

    ref = jax.jit(_reference_forward)(x, params)
    jax.block_until_ready(ref)
    for got, want in zip(feats, ref):
        err = float(jnp.max(jnp.abs(got - want)))
        assert err < 5e-3, f"max abs err {err}"
    print("KERNEL_OK")
</pallas_src>

<mosaic_0001>
module attributes {stable_mosaic.version = 11 : i64} {
  func.func @_stem_kernel(%arg0: i32, %arg1: memref<1x36x9x3xf32, #tpu.memory_space<vmem>>, %arg2: memref<9x3x16xbf16, #tpu.memory_space<vmem>>, %arg3: memref<1x16xf32, #tpu.memory_space<vmem>>, %arg4: memref<1x8x8x16xf32, #tpu.memory_space<vmem>>) attributes {dimension_semantics = [#tpu.dimension_semantics<parallel>], iteration_bounds = array<i64: 2>, scalar_prefetch = 0 : i64, scratch_operands = 0 : i64, tpu.core_type = #tpu.core_type<tc>, window_params = [{transform_indices = @transform_0, window_bounds = array<i64: 1, 36, 9, 3>}, {pipeline_mode = #tpu.pipeline_mode<synchronous>, transform_indices = @transform_1, window_bounds = array<i64: 9, 3, 16>}, {pipeline_mode = #tpu.pipeline_mode<synchronous>, transform_indices = @transform_2, window_bounds = array<i64: 1, 16>}, {transform_indices = @transform_3, window_bounds = array<i64: 1, 8, 8, 16>}]} {
    %c0 = arith.constant 0 : index
    %c0_0 = arith.constant 0 : index
    %c0_1 = arith.constant 0 : index
    %c0_2 = arith.constant 0 : index
    %0 = vector.load %arg1[%c0, %c0_0, %c0_1, %c0_2] : memref<1x36x9x3xf32, #tpu.memory_space<vmem>>, vector<1x36x9x3xf32>
    %1 = vector.shape_cast %0 : vector<1x36x9x3xf32> to vector<36x9x3xf32>
    %2 = vector.extract_strided_slice %1 {offsets = [0, 0, 0], sizes = [8, 8, 3], strides = [1, 1, 1]} : vector<36x9x3xf32> to vector<8x8x3xf32>
    %3 = vector.shape_cast %2 : vector<8x8x3xf32> to vector<64x3xf32>
    %4 = arith.truncf %3 : vector<64x3xf32> to vector<64x3xbf16>
    %c0_3 = arith.constant 0 : index
    %c0_4 = arith.constant 0 : index
    %c0_5 = arith.constant 0 : index
    %5 = vector.load %arg2[%c0_3, %c0_4, %c0_5] : memref<9x3x16xbf16, #tpu.memory_space<vmem>>, vector<1x3x16xbf16>
    %6 = vector.shape_cast %5 : vector<1x3x16xbf16> to vector<3x16xbf16>
    %cst = arith.constant dense<0.000000e+00> : vector<64x16xf32>
    %7 = tpu.matmul %4, %6, %cst {dimension_numbers = #tpu.dot_dimension_numbers<[1], [0], [0], [1], [0, 0, 1, 1], [], []>} : vector<64x3xbf16>, vector<3x16xbf16>, vector<64x16xf32> -> vector<64x16xf32>
    %8 = vector.extract_strided_slice %1 {offsets = [9, 0, 0], sizes = [8, 8, 3], strides = [1, 1, 1]} : vector<36x9x3xf32> to vector<8x8x3xf32>
    %9 = vector.shape_cast %8 : vector<8x8x3xf32> to vector<64x3xf32>
    %10 = arith.truncf %9 : vector<64x3xf32> to vector<64x3xbf16>
    %c1 = arith.constant 1 : index
    %c0_6 = arith.constant 0 : index
    %c0_7 = arith.constant 0 : index
    %11 = vector.load %arg2[%c1, %c0_6, %c0_7] : memref<9x3x16xbf16, #tpu.memory_space<vmem>>, vector<1x3x16xbf16>
    %12 = vector.shape_cast %11 : vector<1x3x16xbf16> to vector<3x16xbf16>
    %cst_8 = arith.constant dense<0.000000e+00> : vector<64x16xf32>
    %13 = tpu.matmul %10, %12, %cst_8 {dimension_numbers = #tpu.dot_dimension_numbers<[1], [0], [0], [1], [0, 0, 1, 1], [], []>} : vector<64x3xbf16>, vector<3x16xbf16>, vector<64x16xf32> -> vector<64x16xf32>
    %14 = arith.addf %7, %13 : vector<64x16xf32>
    %15 = vector.extract_strided_slice %1 {offsets = [0, 1, 0], sizes = [8, 8, 3], strides = [1, 1, 1]} : vector<36x9x3xf32> to vector<8x8x3xf32>
    %16 = vector.shape_cast %15 : vector<8x8x3xf32> to vector<64x3xf32>
    %17 = arith.truncf %16 : vector<64x3xf32> to vector<64x3xbf16>
    %c2 = arith.constant 2 : index
    %c0_9 = arith.constant 0 : index
    %c0_10 = arith.constant 0 : index
    %18 = vector.load %arg2[%c2, %c0_9, %c0_10] : memref<9x3x16xbf16, #tpu.memory_space<vmem>>, vector<1x3x16xbf16>
    %19 = vector.shape_cast %18 : vector<1x3x16xbf16> to vector<3x16xbf16>
    %cst_11 = arith.constant dense<0.000000e+00> : vector<64x16xf32>
    %20 = tpu.matmul %17, %19, %cst_11 {dimension_numbers = #tpu.dot_dimension_numbers<[1], [0], [0], [1], [0, 0, 1, 1], [], []>} : vector<64x3xbf16>, vector<3x16xbf16>, vector<64x16xf32> -> vector<64x16xf32>
    %21 = arith.addf %14, %20 : vector<64x16xf32>
    %22 = vector.extract_strided_slice %1 {offsets = [18, 0, 0], sizes = [8, 8, 3], strides = [1, 1, 1]} : vector<36x9x3xf32> to vector<8x8x3xf32>
    %23 = vector.shape_cast %22 : vector<8x8x3xf32> to vector<64x3xf32>
    %24 = arith.truncf %23 : vector<64x3xf32> to vector<64x3xbf16>
    %c3 = arith.constant 3 : index
    %c0_12 = arith.constant 0 : index
    %c0_13 = arith.constant 0 : index
    %25 = vector.load %arg2[%c3, %c0_12, %c0_13] : memref<9x3x16xbf16, #tpu.memory_space<vmem>>, vector<1x3x16xbf16>
    %26 = vector.shape_cast %25 : vector<1x3x16xbf16> to vector<3x16xbf16>
    %cst_14 = arith.constant dense<0.000000e+00> : vector<64x16xf32>
    %27 = tpu.matmul %24, %26, %cst_14 {dimension_numbers = #tpu.dot_dimension_numbers<[1], [0], [0], [1], [0, 0, 1, 1], [], []>} : vector<64x3xbf16>, vector<3x16xbf16>, vector<64x16xf32> -> vector<64x16xf32>
    %28 = arith.addf %21, %27 : vector<64x16xf32>
    %29 = vector.extract_strided_slice %1 {offsets = [27, 0, 0], sizes = [8, 8, 3], strides = [1, 1, 1]} : vector<36x9x3xf32> to vector<8x8x3xf32>
    %30 = vector.shape_cast %29 : vector<8x8x3xf32> to vector<64x3xf32>
    %31 = arith.truncf %30 : vector<64x3xf32> to vector<64x3xbf16>
    %c4 = arith.constant 4 : index
    %c0_15 = arith.constant 0 : index
    %c0_16 = arith.constant 0 : index
    %32 = vector.load %arg2[%c4, %c0_15, %c0_16] : memref<9x3x16xbf16, #tpu.memory_space<vmem>>, vector<1x3x16xbf16>
    %33 = vector.shape_cast %32 : vector<1x3x16xbf16> to vector<3x16xbf16>
    %cst_17 = arith.constant dense<0.000000e+00> : vector<64x16xf32>
    %34 = tpu.matmul %31, %33, %cst_17 {dimension_numbers = #tpu.dot_dimension_numbers<[1], [0], [0], [1], [0, 0, 1, 1], [], []>} : vector<64x3xbf16>, vector<3x16xbf16>, vector<64x16xf32> -> vector<64x16xf32>
    %35 = arith.addf %28, %34 : vector<64x16xf32>
    %36 = vector.extract_strided_slice %1 {offsets = [18, 1, 0], sizes = [8, 8, 3], strides = [1, 1, 1]} : vector<36x9x3xf32> to vector<8x8x3xf32>
    %37 = vector.shape_cast %36 : vector<8x8x3xf32> to vector<64x3xf32>
    %38 = arith.truncf %37 : vector<64x3xf32> to vector<64x3xbf16>
    %c5 = arith.constant 5 : index
    %c0_18 = arith.constant 0 : index
    %c0_19 = arith.constant 0 : index
    %39 = vector.load %arg2[%c5, %c0_18, %c0_19] : memref<9x3x16xbf16, #tpu.memory_space<vmem>>, vector<1x3x16xbf16>
    %40 = vector.shape_cast %39 : vector<1x3x16xbf16> to vector<3x16xbf16>
    %cst_20 = arith.constant dense<0.000000e+00> : vector<64x16xf32>
    %41 = tpu.matmul %38, %40, %cst_20 {dimension_numbers = #tpu.dot_dimension_numbers<[1], [0], [0], [1], [0, 0, 1, 1], [], []>} : vector<64x3xbf16>, vector<3x16xbf16>, vector<64x16xf32> -> vector<64x16xf32>
    %42 = arith.addf %35, %41 : vector<64x16xf32>
    %43 = vector.extract_strided_slice %1 {offsets = [1, 0, 0], sizes = [8, 8, 3], strides = [1, 1, 1]} : vector<36x9x3xf32> to vector<8x8x3xf32>
    %44 = vector.shape_cast %43 : vector<8x8x3xf32> to vector<64x3xf32>
    %45 = arith.truncf %44 : vector<64x3xf32> to vector<64x3xbf16>
    %c6 = arith.constant 6 : index
    %c0_21 = arith.constant 0 : index
    %c0_22 = arith.constant 0 : index
    %46 = vector.load %arg2[%c6, %c0_21, %c0_22] : memref<9x3x16xbf16, #tpu.memory_space<vmem>>, vector<1x3x16xbf16>
    %47 = vector.shape_cast %46 : vector<1x3x16xbf16> to vector<3x16xbf16>
    %cst_23 = arith.constant dense<0.000000e+00> : vector<64x16xf32>
    %48 = tpu.matmul %45, %47, %cst_23 {dimension_numbers = #tpu.dot_dimension_numbers<[1], [0], [0], [1], [0, 0, 1, 1], [], []>} : vector<64x3xbf16>, vector<3x16xbf16>, vector<64x16xf32> -> vector<64x16xf32>
    %49 = arith.addf %42, %48 : vector<64x16xf32>
    %50 = vector.extract_strided_slice %1 {offsets = [10, 0, 0], sizes = [8, 8, 3], strides = [1, 1, 1]} : vector<36x9x3xf32> to vector<8x8x3xf32>
    %51 = vector.shape_cast %50 : vector<8x8x3xf32> to vector<64x3xf32>
    %52 = arith.truncf %51 : vector<64x3xf32> to vector<64x3xbf16>
    %c7 = arith.constant 7 : index
    %c0_24 = arith.constant 0 : index
    %c0_25 = arith.constant 0 : index
    %53 = vector.load %arg2[%c7, %c0_24, %c0_25] : memref<9x3x16xbf16, #tpu.memory_space<vmem>>, vector<1x3x16xbf16>
    %54 = vector.shape_cast %53 : vector<1x3x16xbf16> to vector<3x16xbf16>
    %cst_26 = arith.constant dense<0.000000e+00> : vector<64x16xf32>
    %55 = tpu.matmul %52, %54, %cst_26 {dimension_numbers = #tpu.dot_dimension_numbers<[1], [0], [0], [1], [0, 0, 1, 1], [], []>} : vector<64x3xbf16>, vector<3x16xbf16>, vector<64x16xf32> -> vector<64x16xf32>
    %56 = arith.addf %49, %55 : vector<64x16xf32>
    %57 = vector.extract_strided_slice %1 {offsets = [1, 1, 0], sizes = [8, 8, 3], strides = [1, 1, 1]} : vector<36x9x3xf32> to vector<8x8x3xf32>
    %58 = vector.shape_cast %57 : vector<8x8x3xf32> to vector<64x3xf32>
    %59 = arith.truncf %58 : vector<64x3xf32> to vector<64x3xbf16>
    %c8 = arith.constant 8 : index
    %c0_27 = arith.constant 0 : index
    %c0_28 = arith.constant 0 : index
    %60 = vector.load %arg2[%c8, %c0_27, %c0_28] : memref<9x3x16xbf16, #tpu.memory_space<vmem>>, vector<1x3x16xbf16>
    %61 = vector.shape_cast %60 : vector<1x3x16xbf16> to vector<3x16xbf16>
    %cst_29 = arith.constant dense<0.000000e+00> : vector<64x16xf32>
    %62 = tpu.matmul %59, %61, %cst_29 {dimension_numbers = #tpu.dot_dimension_numbers<[1], [0], [0], [1], [0, 0, 1, 1], [], []>} : vector<64x3xbf16>, vector<3x16xbf16>, vector<64x16xf32> -> vector<64x16xf32>
    %63 = arith.addf %56, %62 : vector<64x16xf32>
    %c0_30 = arith.constant 0 : index
    %c0_31 = arith.constant 0 : index
    %64 = vector.load %arg3[%c0_30, %c0_31] : memref<1x16xf32, #tpu.memory_space<vmem>>, vector<1x16xf32>
    %65 = vector.broadcast %64 : vector<1x16xf32> to vector<64x16xf32>
    %66 = arith.addf %63, %65 : vector<64x16xf32>
    %cst_32 = arith.constant 3.000000e+00 : f32
    %67 = vector.broadcast %cst_32 : f32 to vector<64x16xf32>
    %68 = arith.addf %66, %67 : vector<64x16xf32>
    %cst_33 = arith.constant 0.000000e+00 : f32
    %cst_34 = arith.constant 6.000000e+00 : f32
    %69 = vector.broadcast %cst_33 : f32 to vector<64x16xf32>
    %70 = arith.maximumf %69, %68 : vector<64x16xf32>
    %71 = vector.broadcast %cst_34 : f32 to vector<64x16xf32>
    %72 = arith.minimumf %71, %70 : vector<64x16xf32>
    %73 = arith.mulf %66, %72 : vector<64x16xf32>
    %cst_35 = arith.constant 0.166666672 : f32
    %74 = vector.broadcast %cst_35 : f32 to vector<64x16xf32>
    %75 = arith.mulf %73, %74 : vector<64x16xf32>
    %76 = vector.shape_cast %75 : vector<64x16xf32> to vector<8x8x16xf32>
    %c0_36 = arith.constant 0 : index
    %c0_37 = arith.constant 0 : index
    %c0_38 = arith.constant 0 : index
    %c0_39 = arith.constant 0 : index
    %77 = vector.load %arg4[%c0_36, %c0_37, %c0_38, %c0_39] : memref<1x8x8x16xf32, #tpu.memory_space<vmem>>, vector<1x8x8x16xf32>
    %78 = vector.shape_cast %77 : vector<1x8x8x16xf32> to vector<8x8x16xf32>
    %79 = vector.shape_cast %76 : vector<8x8x16xf32> to vector<1x8x8x16xf32>
    tpu.vector_store %arg4[%c0_36, %c0_37, %c0_38, %c0_39], %79 {strides = array<i32>} : memref<1x8x8x16xf32, #tpu.memory_space<vmem>>, vector<1x8x8x16xf32>,
    return
  }
  func.func @transform_0(%arg0: i32) -> (i32, i32, i32, i32) {
    %c0_i32 = arith.constant 0 : i32
    %c0_i32_0 = arith.constant 0 : i32
    %c0_i32_1 = arith.constant 0 : i32
    %c0_i32_2 = arith.constant 0 : i32
    return %arg0, %c0_i32, %c0_i32_0, %c0_i32_1 : i32, i32, i32, i32
  }
  func.func @transform_1(%arg0: i32) -> (i32, i32, i32) {
    %c0_i32 = arith.constant 0 : i32
    %c0_i32_0 = arith.constant 0 : i32
    %c0_i32_1 = arith.constant 0 : i32
    %c0_i32_2 = arith.constant 0 : i32
    return %c0_i32, %c0_i32_0, %c0_i32_1 : i32, i32, i32
  }
  func.func @transform_2(%arg0: i32) -> (i32, i32) {
    %c0_i32 = arith.constant 0 : i32
    %c0_i32_0 = arith.constant 0 : i32
    %c0_i32_1 = arith.constant 0 : i32
    return %c0_i32, %c0_i32_0 : i32, i32
  }
  func.func @transform_3(%arg0: i32) -> (i32, i32, i32, i32) {
    %c0_i32 = arith.constant 0 : i32
    %c0_i32_0 = arith.constant 0 : i32
    %c0_i32_1 = arith.constant 0 : i32
    %c0_i32_2 = arith.constant 0 : i32
    return %arg0, %c0_i32, %c0_i32_0, %c0_i32_1 : i32, i32, i32, i32
  }
}

module attributes {stable_mosaic.version = 11 : i64} {
  func.func @_ir_block_kernel(%arg0: i32, %arg1: memref<1x10x16x16xf32, #tpu.memory_space<vmem>>, %arg2: memref<160x1xf32, #tpu.memory_space<vmem>>, %arg3: memref<16x32xbf16, #tpu.memory_space<vmem>>, %arg4: memref<1x32xf32, #tpu.memory_space<vmem>>, %arg5: memref<3x3x32xf32, #tpu.memory_space<vmem>>, %arg6: memref<1x32xf32, #tpu.memory_space<vmem>>, %arg7: memref<32x8xbf16, #tpu.memory_space<vmem>>, %arg8: memref<1x8xf32, #tpu.memory_space<vmem>>, %arg9: memref<8x32xbf16, #tpu.memory_space<vmem>>, %arg10: memref<1x32xf32, #tpu.memory_space<vmem>>, %arg11: memref<32x16xbf16, #tpu.memory_space<vmem>>, %arg12: memref<1x16xf32, #tpu.memory_space<vmem>>, %arg13: memref<1x8x8x16xf32, #tpu.memory_space<vmem>>) attributes {dimension_semantics = [#tpu.dimension_semantics<parallel>], iteration_bounds = array<i64: 2>, scalar_prefetch = 0 : i64, scratch_operands = 0 : i64, tpu.core_type = #tpu.core_type<tc>, window_params = [{transform_indices = @transform_0, window_bounds = array<i64: 1, 10, 16, 16>}, {pipeline_mode = #tpu.pipeline_mode<synchronous>, transform_indices = @transform_1, window_bounds = array<i64: 160, 1>}, {pipeline_mode = #tpu.pipeline_mode<synchronous>, transform_indices = @transform_2, window_bounds = array<i64: 16, 32>}, {pipeline_mode = #tpu.pipeline_mode<synchronous>, transform_indices = @transform_3, window_bounds = array<i64: 1, 32>}, {pipeline_mode = #tpu.pipeline_mode<synchronous>, transform_indices = @transform_4, window_bounds = array<i64: 3, 3, 32>}, {pipeline_mode = #tpu.pipeline_mode<synchronous>, transform_indices = @transform_5, window_bounds = array<i64: 1, 32>}, {pipeline_mode = #tpu.pipeline_mode<synchronous>, transform_indices = @transform_6, window_bounds = array<i64: 32, 8>}, {pipeline_mode = #tpu.pipeline_mode<synchronous>, transform_indices = @transform_7, window_bounds = array<i64: 1, 8>}, {pipeline_mode = #tpu.pipeline_mode<synchronous>, transform_indices = @transform_8, window_bounds = array<i64: 8, 32>}, {pipeline_mode = #tpu.pipeline_mode<synchronous>, transform_indices = @transform_9, window_bounds = array<i64: 1, 32>}, {pipeline_mode = #tpu.pipeline_mode<synchronous>, transform_indices = @transform_10, window_bounds = array<i64: 32, 16>}, {pipeline_mode = #tpu.pipeline_mode<synchronous>, transform_indices = @transform_11, window_bounds = array<i64: 1, 16>}, {transform_indices = @transform_12, window_bounds = array<i64: 1, 8, 8, 16>}]} {
    %c0 = arith.constant 0 : index
    %c0_0 = arith.constant 0 : index
    %c0_1 = arith.constant 0 : index
    %c0_2 = arith.constant 0 : index
    %0 = vector.load %arg1[%c0, %c0_0, %c0_1, %c0_2] : memref<1x10x16x16xf32, #tpu.memory_space<vmem>>, vector<1x10x16x16xf32>
    %1 = vector.shape_cast %0 : vector<1x10x16x16xf32> to vector<10x16x16xf32>
    %2 = vector.shape_cast %1 : vector<10x16x16xf32> to vector<160x16xf32>
    %3 = arith.truncf %2 : vector<160x16xf32> to vector<160x16xbf16>
    %c0_3 = arith.constant 0 : index
    %c0_4 = arith.constant 0 : index
    %4 = vector.load %arg3[%c0_3, %c0_4] : memref<16x32xbf16, #tpu.memory_space<vmem>>, vector<16x32xbf16>
    %cst = arith.constant dense<0.000000e+00> : vector<160x32xf32>
    %5 = tpu.matmul %3, %4, %cst {dimension_numbers = #tpu.dot_dimension_numbers<[1], [0], [0], [1], [0, 0, 1, 1], [], []>} : vector<160x16xbf16>, vector<16x32xbf16>, vector<160x32xf32> -> vector<160x32xf32>
    %c0_5 = arith.constant 0 : index
    %c0_6 = arith.constant 0 : index
    %6 = vector.load %arg4[%c0_5, %c0_6] : memref<1x32xf32, #tpu.memory_space<vmem>>, vector<1x32xf32>
    %7 = vector.broadcast %6 : vector<1x32xf32> to vector<160x32xf32>
    %8 = arith.addf %5, %7 : vector<160x32xf32>
    %cst_7 = arith.constant 0.000000e+00 : f32
    %9 = vector.broadcast %cst_7 : f32 to vector<160x32xf32>
    %10 = arith.maximumf %8, %9 : vector<160x32xf32>
    %c0_8 = arith.constant 0 : index
    %c0_9 = arith.constant 0 : index
    %11 = vector.load %arg2[%c0_8, %c0_9] : memref<160x1xf32, #tpu.memory_space<vmem>>, vector<160x1xf32>
    %12 = vector.broadcast %11 : vector<160x1xf32> to vector<160x32xf32>
    %13 = arith.mulf %10, %12 : vector<160x32xf32>
    %14 = vector.shape_cast %13 : vector<160x32xf32> to vector<10x16x32xf32>
    %c0_10 = arith.constant 0 : index
    %c0_11 = arith.constant 0 : index
    %c0_12 = arith.constant 0 : index
    %15 = vector.load %arg5[%c0_10, %c0_11, %c0_12] : memref<3x3x32xf32, #tpu.memory_space<vmem>>, vector<3x3x32xf32>
    %16 = vector.extract_strided_slice %14 {offsets = [0, 0, 0], sizes = [8, 8, 32], strides = [1, 1, 1]} : vector<10x16x32xf32> to vector<8x8x32xf32>
    %17 = vector.extract_strided_slice %15 {offsets = [0, 0, 0], sizes = [1, 1, 32], strides = [1, 1, 1]} : vector<3x3x32xf32> to vector<1x1x32xf32>
    %18 = vector.shape_cast %17 : vector<1x1x32xf32> to vector<32xf32>
    %19 = vector.shape_cast %18 : vector<32xf32> to vector<1x1x32xf32>
    %20 = vector.broadcast %19 : vector<1x1x32xf32> to vector<8x8x32xf32>
    %21 = arith.mulf %16, %20 : vector<8x8x32xf32>
    %22 = vector.extract_strided_slice %14 {offsets = [0, 1, 0], sizes = [8, 8, 32], strides = [1, 1, 1]} : vector<10x16x32xf32> to vector<8x8x32xf32>
    %23 = vector.extract_strided_slice %15 {offsets = [0, 1, 0], sizes = [1, 1, 32], strides = [1, 1, 1]} : vector<3x3x32xf32> to vector<1x1x32xf32>
    %24 = vector.shape_cast %23 : vector<1x1x32xf32> to vector<32xf32>
    %25 = vector.shape_cast %24 : vector<32xf32> to vector<1x1x32xf32>
    %26 = vector.broadcast %25 : vector<1x1x32xf32> to vector<8x8x32xf32>
    %27 = arith.mulf %22, %26 : vector<8x8x32xf32>
    %28 = arith.addf %21, %27 : vector<8x8x32xf32>
    %29 = vector.extract_strided_slice %14 {offsets = [0, 2, 0], sizes = [8, 8, 32], strides = [1, 1, 1]} : vector<10x16x32xf32> to vector<8x8x32xf32>
    %30 = vector.extract_strided_slice %15 {offsets = [0, 2, 0], sizes = [1, 1, 32], strides = [1, 1, 1]} : vector<3x3x32xf32> to vector<1x1x32xf32>
    %31 = vector.shape_cast %30 : vector<1x1x32xf32> to vector<32xf32>
    %32 = vector.shape_cast %31 : vector<32xf32> to vector<1x1x32xf32>
    %33 = vector.broadcast %32 : vector<1x1x32xf32> to vector<8x8x32xf32>
    %34 = arith.mulf %29, %33 : vector<8x8x32xf32>
    %35 = arith.addf %28, %34 : vector<8x8x32xf32>
    %36 = vector.extract_strided_slice %14 {offsets = [1, 0, 0], sizes = [8, 8, 32], strides = [1, 1, 1]} : vector<10x16x32xf32> to vector<8x8x32xf32>
    %37 = vector.extract_strided_slice %15 {offsets = [1, 0, 0], sizes = [1, 1, 32], strides = [1, 1, 1]} : vector<3x3x32xf32> to vector<1x1x32xf32>
    %38 = vector.shape_cast %37 : vector<1x1x32xf32> to vector<32xf32>
    %39 = vector.shape_cast %38 : vector<32xf32> to vector<1x1x32xf32>
    %40 = vector.broadcast %39 : vector<1x1x32xf32> to vector<8x8x32xf32>
    %41 = arith.mulf %36, %40 : vector<8x8x32xf32>
    %42 = arith.addf %35, %41 : vector<8x8x32xf32>
    %43 = vector.extract_strided_slice %14 {offsets = [1, 1, 0], sizes = [8, 8, 32], strides = [1, 1, 1]} : vector<10x16x32xf32> to vector<8x8x32xf32>
    %44 = vector.extract_strided_slice %15 {offsets = [1, 1, 0], sizes = [1, 1, 32], strides = [1, 1, 1]} : vector<3x3x32xf32> to vector<1x1x32xf32>
    %45 = vector.shape_cast %44 : vector<1x1x32xf32> to vector<32xf32>
    %46 = vector.shape_cast %45 : vector<32xf32> to vector<1x1x32xf32>
    %47 = vector.broadcast %46 : vector<1x1x32xf32> to vector<8x8x32xf32>
    %48 = arith.mulf %43, %47 : vector<8x8x32xf32>
    %49 = arith.addf %42, %48 : vector<8x8x32xf32>
    %50 = vector.extract_strided_slice %14 {offsets = [1, 2, 0], sizes = [8, 8, 32], strides = [1, 1, 1]} : vector<10x16x32xf32> to vector<8x8x32xf32>
    %51 = vector.extract_strided_slice %15 {offsets = [1, 2, 0], sizes = [1, 1, 32], strides = [1, 1, 1]} : vector<3x3x32xf32> to vector<1x1x32xf32>
    %52 = vector.shape_cast %51 : vector<1x1x32xf32> to vector<32xf32>
    %53 = vector.shape_cast %52 : vector<32xf32> to vector<1x1x32xf32>
    %54 = vector.broadcast %53 : vector<1x1x32xf32> to vector<8x8x32xf32>
    %55 = arith.mulf %50, %54 : vector<8x8x32xf32>
    %56 = arith.addf %49, %55 : vector<8x8x32xf32>
    %57 = vector.extract_strided_slice %14 {offsets = [2, 0, 0], sizes = [8, 8, 32], strides = [1, 1, 1]} : vector<10x16x32xf32> to vector<8x8x32xf32>
    %58 = vector.extract_strided_slice %15 {offsets = [2, 0, 0], sizes = [1, 1, 32], strides = [1, 1, 1]} : vector<3x3x32xf32> to vector<1x1x32xf32>
    %59 = vector.shape_cast %58 : vector<1x1x32xf32> to vector<32xf32>
    %60 = vector.shape_cast %59 : vector<32xf32> to vector<1x1x32xf32>
    %61 = vector.broadcast %60 : vector<1x1x32xf32> to vector<8x8x32xf32>
    %62 = arith.mulf %57, %61 : vector<8x8x32xf32>
    %63 = arith.addf %56, %62 : vector<8x8x32xf32>
    %64 = vector.extract_strided_slice %14 {offsets = [2, 1, 0], sizes = [8, 8, 32], strides = [1, 1, 1]} : vector<10x16x32xf32> to vector<8x8x32xf32>
    %65 = vector.extract_strided_slice %15 {offsets = [2, 1, 0], sizes = [1, 1, 32], strides = [1, 1, 1]} : vector<3x3x32xf32> to vector<1x1x32xf32>
    %66 = vector.shape_cast %65 : vector<1x1x32xf32> to vector<32xf32>
    %67 = vector.shape_cast %66 : vector<32xf32> to vector<1x1x32xf32>
    %68 = vector.broadcast %67 : vector<1x1x32xf32> to vector<8x8x32xf32>
    %69 = arith.mulf %64, %68 : vector<8x8x32xf32>
    %70 = arith.addf %63, %69 : vector<8x8x32xf32>
    %71 = vector.extract_strided_slice %14 {offsets = [2, 2, 0], sizes = [8, 8, 32], strides = [1, 1, 1]} : vector<10x16x32xf32> to vector<8x8x32xf32>
    %72 = vector.extract_strided_slice %15 {offsets = [2, 2, 0], sizes = [1, 1, 32], strides = [1, 1, 1]} : vector<3x3x32xf32> to vector<1x1x32xf32>
    %73 = vector.shape_cast %72 : vector<1x1x32xf32> to vector<32xf32>
    %74 = vector.shape_cast %73 : vector<32xf32> to vector<1x1x32xf32>
    %75 = vector.broadcast %74 : vector<1x1x32xf32> to vector<8x8x32xf32>
    %76 = arith.mulf %71, %75 : vector<8x8x32xf32>
    %77 = arith.addf %70, %76 : vector<8x8x32xf32>
    %c0_13 = arith.constant 0 : index
    %c0_14 = arith.constant 0 : index
    %78 = vector.load %arg6[%c0_13, %c0_14] : memref<1x32xf32, #tpu.memory_space<vmem>>, vector<1x32xf32>
    %79 = vector.shape_cast %78 : vector<1x32xf32> to vector<1x1x32xf32>
    %80 = vector.broadcast %79 : vector<1x1x32xf32> to vector<8x8x32xf32>
    %81 = arith.addf %77, %80 : vector<8x8x32xf32>
    %cst_15 = arith.constant 0.000000e+00 : f32
    %82 = vector.broadcast %cst_15 : f32 to vector<8x8x32xf32>
    %83 = arith.maximumf %81, %82 : vector<8x8x32xf32>
    %84 = vector.shape_cast %83 : vector<8x8x32xf32> to vector<64x32xf32>
    %cst_16 = arith.constant dense<0.000000e+00> : vector<32xf32>
    %85 = vector.multi_reduction <add>, %84, %cst_16 [0] : vector<64x32xf32> to vector<32xf32>
    %86 = vector.shape_cast %85 : vector<32xf32> to vector<1x32xf32>
    %cst_17 = arith.constant 6.400000e+01 : f32
    %87 = vector.broadcast %cst_17 : f32 to vector<1x32xf32>
    %88 = arith.divf %86, %87 : vector<1x32xf32>
    %89 = arith.truncf %88 : vector<1x32xf32> to vector<1x32xbf16>
    %c0_18 = arith.constant 0 : index
    %c0_19 = arith.constant 0 : index
    %90 = vector.load %arg7[%c0_18, %c0_19] : memref<32x8xbf16, #tpu.memory_space<vmem>>, vector<32x8xbf16>
    %cst_20 = arith.constant dense<0.000000e+00> : vector<1x8xf32>
    %91 = tpu.matmul %89, %90, %cst_20 {dimension_numbers = #tpu.dot_dimension_numbers<[1], [0], [0], [1], [0, 0, 1, 1], [], []>} : vector<1x32xbf16>, vector<32x8xbf16>, vector<1x8xf32> -> vector<1x8xf32>
    %c0_21 = arith.constant 0 : index
    %c0_22 = arith.constant 0 : index
    %92 = vector.load %arg8[%c0_21, %c0_22] : memref<1x8xf32, #tpu.memory_space<vmem>>, vector<1x8xf32>
    %93 = arith.addf %91, %92 : vector<1x8xf32>
    %cst_23 = arith.constant 0.000000e+00 : f32
    %94 = vector.broadcast %cst_23 : f32 to vector<1x8xf32>
    %95 = arith.maximumf %93, %94 : vector<1x8xf32>
    %96 = arith.truncf %95 : vector<1x8xf32> to vector<1x8xbf16>
    %c0_24 = arith.constant 0 : index
    %c0_25 = arith.constant 0 : index
    %97 = vector.load %arg9[%c0_24, %c0_25] : memref<8x32xbf16, #tpu.memory_space<vmem>>, vector<8x32xbf16>
    %cst_26 = arith.constant dense<0.000000e+00> : vector<1x32xf32>
    %98 = tpu.matmul %96, %97, %cst_26 {dimension_numbers = #tpu.dot_dimension_numbers<[1], [0], [0], [1], [0, 0, 1, 1], [], []>} : vector<1x8xbf16>, vector<8x32xbf16>, vector<1x32xf32> -> vector<1x32xf32>
    %c0_27 = arith.constant 0 : index
    %c0_28 = arith.constant 0 : index
    %99 = vector.load %arg10[%c0_27, %c0_28] : memref<1x32xf32, #tpu.memory_space<vmem>>, vector<1x32xf32>
    %100 = arith.addf %98, %99 : vector<1x32xf32>
    %cst_29 = arith.constant 3.000000e+00 : f32
    %101 = vector.broadcast %cst_29 : f32 to vector<1x32xf32>
    %102 = arith.addf %100, %101 : vector<1x32xf32>
    %cst_30 = arith.constant 0.000000e+00 : f32
    %cst_31 = arith.constant 6.000000e+00 : f32
    %103 = vector.broadcast %cst_30 : f32 to vector<1x32xf32>
    %104 = arith.maximumf %103, %102 : vector<1x32xf32>
    %105 = vector.broadcast %cst_31 : f32 to vector<1x32xf32>
    %106 = arith.minimumf %105, %104 : vector<1x32xf32>
    %cst_32 = arith.constant 0.166666672 : f32
    %107 = vector.broadcast %cst_32 : f32 to vector<1x32xf32>
    %108 = arith.mulf %106, %107 : vector<1x32xf32>
    %109 = vector.broadcast %108 : vector<1x32xf32> to vector<64x32xf32>
    %110 = arith.mulf %84, %109 : vector<64x32xf32>
    %111 = arith.truncf %110 : vector<64x32xf32> to vector<64x32xbf16>
    %c0_33 = arith.constant 0 : index
    %c0_34 = arith.constant 0 : index
    %112 = vector.load %arg11[%c0_33, %c0_34] : memref<32x16xbf16, #tpu.memory_space<vmem>>, vector<32x16xbf16>
    %cst_35 = arith.constant dense<0.000000e+00> : vector<64x16xf32>
    %113 = tpu.matmul %111, %112, %cst_35 {dimension_numbers = #tpu.dot_dimension_numbers<[1], [0], [0], [1], [0, 0, 1, 1], [], []>} : vector<64x32xbf16>, vector<32x16xbf16>, vector<64x16xf32> -> vector<64x16xf32>
    %c0_36 = arith.constant 0 : index
    %c0_37 = arith.constant 0 : index
    %114 = vector.load %arg12[%c0_36, %c0_37] : memref<1x16xf32, #tpu.memory_space<vmem>>, vector<1x16xf32>
    %115 = vector.broadcast %114 : vector<1x16xf32> to vector<64x16xf32>
    %116 = arith.addf %113, %115 : vector<64x16xf32>
    %117 = vector.shape_cast %116 : vector<64x16xf32> to vector<8x8x16xf32>
    %118 = vector.extract_strided_slice %1 {offsets = [1, 1, 0], sizes = [8, 8, 16], strides = [1, 1, 1]} : vector<10x16x16xf32> to vector<8x8x16xf32>
    %119 = arith.addf %117, %118 : vector<8x8x16xf32>
    %c0_38 = arith.constant 0 : index
    %c0_39 = arith.constant 0 : index
    %c0_40 = arith.constant 0 : index
    %c0_41 = arith.constant 0 : index
    %120 = vector.load %arg13[%c0_38, %c0_39, %c0_40, %c0_41] : memref<1x8x8x16xf32, #tpu.memory_space<vmem>>, vector<1x8x8x16xf32>
    %121 = vector.shape_cast %120 : vector<1x8x8x16xf32> to vector<8x8x16xf32>
    %122 = vector.shape_cast %119 : vector<8x8x16xf32> to vector<1x8x8x16xf32>
    tpu.vector_store %arg13[%c0_38, %c0_39, %c0_40, %c0_41], %122 {strides = array<i32>} : memref<1x8x8x16xf32, #tpu.memory_space<vmem>>, vector<1x8x8x16xf32>,
    return
  }
  func.func @transform_0(%arg0: i32) -> (i32, i32, i32, i32) {
    %c0_i32 = arith.constant 0 : i32
    %c0_i32_0 = arith.constant 0 : i32
    %c0_i32_1 = arith.constant 0 : i32
    %c0_i32_2 = arith.constant 0 : i32
    return %arg0, %c0_i32, %c0_i32_0, %c0_i32_1 : i32, i32, i32, i32
  }
  func.func @transform_1(%arg0: i32) -> (i32, i32) {
    %c0_i32 = arith.constant 0 : i32
    %c0_i32_0 = arith.constant 0 : i32
    %c0_i32_1 = arith.constant 0 : i32
    return %c0_i32, %c0_i32_0 : i32, i32
  }
  func.func @transform_2(%arg0: i32) -> (i32, i32) {
    %c0_i32 = arith.constant 0 : i32
    %c0_i32_0 = arith.constant 0 : i32
    %c0_i32_1 = arith.constant 0 : i32
    return %c0_i32, %c0_i32_0 : i32, i32
  }
  func.func @transform_3(%arg0: i32) -> (i32, i32) {
    %c0_i32 = arith.constant 0 : i32
    %c0_i32_0 = arith.constant 0 : i32
    %c0_i32_1 = arith.constant 0 : i32
    return %c0_i32, %c0_i32_0 : i32, i32
  }
  func.func @transform_4(%arg0: i32) -> (i32, i32, i32) {
    %c0_i32 = arith.constant 0 : i32
    %c0_i32_0 = arith.constant 0 : i32
    %c0_i32_1 = arith.constant 0 : i32
    %c0_i32_2 = arith.constant 0 : i32
    return %c0_i32, %c0_i32_0, %c0_i32_1 : i32, i32, i32
  }
  func.func @transform_5(%arg0: i32) -> (i32, i32) {
    %c0_i32 = arith.constant 0 : i32
    %c0_i32_0 = arith.constant 0 : i32
    %c0_i32_1 = arith.constant 0 : i32
    return %c0_i32, %c0_i32_0 : i32, i32
  }
  func.func @transform_6(%arg0: i32) -> (i32, i32) {
    %c0_i32 = arith.constant 0 : i32
    %c0_i32_0 = arith.constant 0 : i32
    %c0_i32_1 = arith.constant 0 : i32
    return %c0_i32, %c0_i32_0 : i32, i32
  }
  func.func @transform_7(%arg0: i32) -> (i32, i32) {
    %c0_i32 = arith.constant 0 : i32
    %c0_i32_0 = arith.constant 0 : i32
    %c0_i32_1 = arith.constant 0 : i32
    return %c0_i32, %c0_i32_0 : i32, i32
  }
  func.func @transform_8(%arg0: i32) -> (i32, i32) {
    %c0_i32 = arith.constant 0 : i32
    %c0_i32_0 = arith.constant 0 : i32
    %c0_i32_1 = arith.constant 0 : i32
    return %c0_i32, %c0_i32_0 : i32, i32
  }
  func.func @transform_9(%arg0: i32) -> (i32, i32) {
    %c0_i32 = arith.constant 0 : i32
    %c0_i32_0 = arith.constant 0 : i32
    %c0_i32_1 = arith.constant 0 : i32
    return %c0_i32, %c0_i32_0 : i32, i32
  }
  func.func @transform_10(%arg0: i32) -> (i32, i32) {
    %c0_i32 = arith.constant 0 : i32
    %c0_i32_0 = arith.constant 0 : i32
    %c0_i32_1 = arith.constant 0 : i32
    return %c0_i32, %c0_i32_0 : i32, i32
  }
  func.func @transform_11(%arg0: i32) -> (i32, i32) {
    %c0_i32 = arith.constant 0 : i32
    %c0_i32_0 = arith.constant 0 : i32
    %c0_i32_1 = arith.constant 0 : i32
    return %c0_i32, %c0_i32_0 : i32, i32
  }
  func.func @transform_12(%arg0: i32) -> (i32, i32, i32, i32) {
    %c0_i32 = arith.constant 0 : i32
    %c0_i32_0 = arith.constant 0 : i32
    %c0_i32_1 = arith.constant 0 : i32
    %c0_i32_2 = arith.constant 0 : i32
    return %arg0, %c0_i32, %c0_i32_0, %c0_i32_1 : i32, i32, i32, i32
  }
}

module attributes {stable_mosaic.version = 11 : i64} {
  func.func @_ir_block_kernel(%arg0: i32, %arg1: memref<1x10x16x16xf32, #tpu.memory_space<vmem>>, %arg2: memref<160x1xf32, #tpu.memory_space<vmem>>, %arg3: memref<16x48xbf16, #tpu.memory_space<vmem>>, %arg4: memref<1x48xf32, #tpu.memory_space<vmem>>, %arg5: memref<3x3x48xf32, #tpu.memory_space<vmem>>, %arg6: memref<1x48xf32, #tpu.memory_space<vmem>>, %arg7: memref<48x12xbf16, #tpu.memory_space<vmem>>, %arg8: memref<1x12xf32, #tpu.memory_space<vmem>>, %arg9: memref<12x48xbf16, #tpu.memory_space<vmem>>, %arg10: memref<1x48xf32, #tpu.memory_space<vmem>>, %arg11: memref<48x24xbf16, #tpu.memory_space<vmem>>, %arg12: memref<1x24xf32, #tpu.memory_space<vmem>>, %arg13: memref<1x8x8x24xf32, #tpu.memory_space<vmem>>) attributes {dimension_semantics = [#tpu.dimension_semantics<parallel>], iteration_bounds = array<i64: 2>, scalar_prefetch = 0 : i64, scratch_operands = 0 : i64, tpu.core_type = #tpu.core_type<tc>, window_params = [{transform_indices = @transform_0, window_bounds = array<i64: 1, 10, 16, 16>}, {pipeline_mode = #tpu.pipeline_mode<synchronous>, transform_indices = @transform_1, window_bounds = array<i64: 160, 1>}, {pipeline_mode = #tpu.pipeline_mode<synchronous>, transform_indices = @transform_2, window_bounds = array<i64: 16, 48>}, {pipeline_mode = #tpu.pipeline_mode<synchronous>, transform_indices = @transform_3, window_bounds = array<i64: 1, 48>}, {pipeline_mode = #tpu.pipeline_mode<synchronous>, transform_indices = @transform_4, window_bounds = array<i64: 3, 3, 48>}, {pipeline_mode = #tpu.pipeline_mode<synchronous>, transform_indices = @transform_5, window_bounds = array<i64: 1, 48>}, {pipeline_mode = #tpu.pipeline_mode<synchronous>, transform_indices = @transform_6, window_bounds = array<i64: 48, 12>}, {pipeline_mode = #tpu.pipeline_mode<synchronous>, transform_indices = @transform_7, window_bounds = array<i64: 1, 12>}, {pipeline_mode = #tpu.pipeline_mode<synchronous>, transform_indices = @transform_8, window_bounds = array<i64: 12, 48>}, {pipeline_mode = #tpu.pipeline_mode<synchronous>, transform_indices = @transform_9, window_bounds = array<i64: 1, 48>}, {pipeline_mode = #tpu.pipeline_mode<synchronous>, transform_indices = @transform_10, window_bounds = array<i64: 48, 24>}, {pipeline_mode = #tpu.pipeline_mode<synchronous>, transform_indices = @transform_11, window_bounds = array<i64: 1, 24>}, {transform_indices = @transform_12, window_bounds = array<i64: 1, 8, 8, 24>}]} {
    %c0 = arith.constant 0 : index
    %c0_0 = arith.constant 0 : index
    %c0_1 = arith.constant 0 : index
    %c0_2 = arith.constant 0 : index
    %0 = vector.load %arg1[%c0, %c0_0, %c0_1, %c0_2] : memref<1x10x16x16xf32, #tpu.memory_space<vmem>>, vector<1x10x16x16xf32>
    %1 = vector.shape_cast %0 : vector<1x10x16x16xf32> to vector<10x16x16xf32>
    %2 = vector.shape_cast %1 : vector<10x16x16xf32> to vector<160x16xf32>
    %3 = arith.truncf %2 : vector<160x16xf32> to vector<160x16xbf16>
    %c0_3 = arith.constant 0 : index
    %c0_4 = arith.constant 0 : index
    %4 = vector.load %arg3[%c0_3, %c0_4] : memref<16x48xbf16, #tpu.memory_space<vmem>>, vector<16x48xbf16>
    %cst = arith.constant dense<0.000000e+00> : vector<160x48xf32>
    %5 = tpu.matmul %3, %4, %cst {dimension_numbers = #tpu.dot_dimension_numbers<[1], [0], [0], [1], [0, 0, 1, 1], [], []>} : vector<160x16xbf16>, vector<16x48xbf16>, vector<160x48xf32> -> vector<160x48xf32>
    %c0_5 = arith.constant 0 : index
    %c0_6 = arith.constant 0 : index
    %6 = vector.load %arg4[%c0_5, %c0_6] : memref<1x48xf32, #tpu.memory_space<vmem>>, vector<1x48xf32>
    %7 = vector.broadcast %6 : vector<1x48xf32> to vector<160x48xf32>
    %8 = arith.addf %5, %7 : vector<160x48xf32>
    %cst_7 = arith.constant 3.000000e+00 : f32
    %9 = vector.broadcast %cst_7 : f32 to vector<160x48xf32>
    %10 = arith.addf %8, %9 : vector<160x48xf32>
    %cst_8 = arith.constant 0.000000e+00 : f32
    %cst_9 = arith.constant 6.000000e+00 : f32
    %11 = vector.broadcast %cst_8 : f32 to vector<160x48xf32>
    %12 = arith.maximumf %11, %10 : vector<160x48xf32>
    %13 = vector.broadcast %cst_9 : f32 to vector<160x48xf32>
    %14 = arith.minimumf %13, %12 : vector<160x48xf32>
    %15 = arith.mulf %8, %14 : vector<160x48xf32>
    %cst_10 = arith.constant 0.166666672 : f32
    %16 = vector.broadcast %cst_10 : f32 to vector<160x48xf32>
    %17 = arith.mulf %15, %16 : vector<160x48xf32>
    %c0_11 = arith.constant 0 : index
    %c0_12 = arith.constant 0 : index
    %18 = vector.load %arg2[%c0_11, %c0_12] : memref<160x1xf32, #tpu.memory_space<vmem>>, vector<160x1xf32>
    %19 = vector.broadcast %18 : vector<160x1xf32> to vector<160x48xf32>
    %20 = arith.mulf %17, %19 : vector<160x48xf32>
    %21 = vector.shape_cast %20 : vector<160x48xf32> to vector<10x16x48xf32>
    %c0_13 = arith.constant 0 : index
    %c0_14 = arith.constant 0 : index
    %c0_15 = arith.constant 0 : index
    %22 = vector.load %arg5[%c0_13, %c0_14, %c0_15] : memref<3x3x48xf32, #tpu.memory_space<vmem>>, vector<3x3x48xf32>
    %23 = vector.extract_strided_slice %21 {offsets = [0, 0, 0], sizes = [8, 8, 48], strides = [1, 1, 1]} : vector<10x16x48xf32> to vector<8x8x48xf32>
    %24 = vector.extract_strided_slice %22 {offsets = [0, 0, 0], sizes = [1, 1, 48], strides = [1, 1, 1]} : vector<3x3x48xf32> to vector<1x1x48xf32>
    %25 = vector.shape_cast %24 : vector<1x1x48xf32> to vector<48xf32>
    %26 = vector.shape_cast %25 : vector<48xf32> to vector<1x1x48xf32>
    %27 = vector.broadcast %26 : vector<1x1x48xf32> to vector<8x8x48xf32>
    %28 = arith.mulf %23, %27 : vector<8x8x48xf32>
    %29 = vector.extract_strided_slice %21 {offsets = [0, 1, 0], sizes = [8, 8, 48], strides = [1, 1, 1]} : vector<10x16x48xf32> to vector<8x8x48xf32>
    %30 = vector.extract_strided_slice %22 {offsets = [0, 1, 0], sizes = [1, 1, 48], strides = [1, 1, 1]} : vector<3x3x48xf32> to vector<1x1x48xf32>
    %31 = vector.shape_cast %30 : vector<1x1x48xf32> to vector<48xf32>
    %32 = vector.shape_cast %31 : vector<48xf32> to vector<1x1x48xf32>
    %33 = vector.broadcast %32 : vector<1x1x48xf32> to vector<8x8x48xf32>
    %34 = arith.mulf %29, %33 : vector<8x8x48xf32>
    %35 = arith.addf %28, %34 : vector<8x8x48xf32>
    %36 = vector.extract_strided_slice %21 {offsets = [0, 2, 0], sizes = [8, 8, 48], strides = [1, 1, 1]} : vector<10x16x48xf32> to vector<8x8x48xf32>
    %37 = vector.extract_strided_slice %22 {offsets = [0, 2, 0], sizes = [1, 1, 48], strides = [1, 1, 1]} : vector<3x3x48xf32> to vector<1x1x48xf32>
    %38 = vector.shape_cast %37 : vector<1x1x48xf32> to vector<48xf32>
    %39 = vector.shape_cast %38 : vector<48xf32> to vector<1x1x48xf32>
    %40 = vector.broadcast %39 : vector<1x1x48xf32> to vector<8x8x48xf32>
    %41 = arith.mulf %36, %40 : vector<8x8x48xf32>
    %42 = arith.addf %35, %41 : vector<8x8x48xf32>
    %43 = vector.extract_strided_slice %21 {offsets = [1, 0, 0], sizes = [8, 8, 48], strides = [1, 1, 1]} : vector<10x16x48xf32> to vector<8x8x48xf32>
    %44 = vector.extract_strided_slice %22 {offsets = [1, 0, 0], sizes = [1, 1, 48], strides = [1, 1, 1]} : vector<3x3x48xf32> to vector<1x1x48xf32>
    %45 = vector.shape_cast %44 : vector<1x1x48xf32> to vector<48xf32>
    %46 = vector.shape_cast %45 : vector<48xf32> to vector<1x1x48xf32>
    %47 = vector.broadcast %46 : vector<1x1x48xf32> to vector<8x8x48xf32>
    %48 = arith.mulf %43, %47 : vector<8x8x48xf32>
    %49 = arith.addf %42, %48 : vector<8x8x48xf32>
    %50 = vector.extract_strided_slice %21 {offsets = [1, 1, 0], sizes = [8, 8, 48], strides = [1, 1, 1]} : vector<10x16x48xf32> to vector<8x8x48xf32>
    %51 = vector.extract_strided_slice %22 {offsets = [1, 1, 0], sizes = [1, 1, 48], strides = [1, 1, 1]} : vector<3x3x48xf32> to vector<1x1x48xf32>
    %52 = vector.shape_cast %51 : vector<1x1x48xf32> to vector<48xf32>
    %53 = vector.shape_cast %52 : vector<48xf32> to vector<1x1x48xf32>
    %54 = vector.broadcast %53 : vector<1x1x48xf32> to vector<8x8x48xf32>
    %55 = arith.mulf %50, %54 : vector<8x8x48xf32>
    %56 = arith.addf %49, %55 : vector<8x8x48xf32>
    %57 = vector.extract_strided_slice %21 {offsets = [1, 2, 0], sizes = [8, 8, 48], strides = [1, 1, 1]} : vector<10x16x48xf32> to vector<8x8x48xf32>
    %58 = vector.extract_strided_slice %22 {offsets = [1, 2, 0], sizes = [1, 1, 48], strides = [1, 1, 1]} : vector<3x3x48xf32> to vector<1x1x48xf32>
    %59 = vector.shape_cast %58 : vector<1x1x48xf32> to vector<48xf32>
    %60 = vector.shape_cast %59 : vector<48xf32> to vector<1x1x48xf32>
    %61 = vector.broadcast %60 : vector<1x1x48xf32> to vector<8x8x48xf32>
    %62 = arith.mulf %57, %61 : vector<8x8x48xf32>
    %63 = arith.addf %56, %62 : vector<8x8x48xf32>
    %64 = vector.extract_strided_slice %21 {offsets = [2, 0, 0], sizes = [8, 8, 48], strides = [1, 1, 1]} : vector<10x16x48xf32> to vector<8x8x48xf32>
    %65 = vector.extract_strided_slice %22 {offsets = [2, 0, 0], sizes = [1, 1, 48], strides = [1, 1, 1]} : vector<3x3x48xf32> to vector<1x1x48xf32>
    %66 = vector.shape_cast %65 : vector<1x1x48xf32> to vector<48xf32>
    %67 = vector.shape_cast %66 : vector<48xf32> to vector<1x1x48xf32>
    %68 = vector.broadcast %67 : vector<1x1x48xf32> to vector<8x8x48xf32>
    %69 = arith.mulf %64, %68 : vector<8x8x48xf32>
    %70 = arith.addf %63, %69 : vector<8x8x48xf32>
    %71 = vector.extract_strided_slice %21 {offsets = [2, 1, 0], sizes = [8, 8, 48], strides = [1, 1, 1]} : vector<10x16x48xf32> to vector<8x8x48xf32>
    %72 = vector.extract_strided_slice %22 {offsets = [2, 1, 0], sizes = [1, 1, 48], strides = [1, 1, 1]} : vector<3x3x48xf32> to vector<1x1x48xf32>
    %73 = vector.shape_cast %72 : vector<1x1x48xf32> to vector<48xf32>
    %74 = vector.shape_cast %73 : vector<48xf32> to vector<1x1x48xf32>
    %75 = vector.broadcast %74 : vector<1x1x48xf32> to vector<8x8x48xf32>
    %76 = arith.mulf %71, %75 : vector<8x8x48xf32>
    %77 = arith.addf %70, %76 : vector<8x8x48xf32>
    %78 = vector.extract_strided_slice %21 {offsets = [2, 2, 0], sizes = [8, 8, 48], strides = [1, 1, 1]} : vector<10x16x48xf32> to vector<8x8x48xf32>
    %79 = vector.extract_strided_slice %22 {offsets = [2, 2, 0], sizes = [1, 1, 48], strides = [1, 1, 1]} : vector<3x3x48xf32> to vector<1x1x48xf32>
    %80 = vector.shape_cast %79 : vector<1x1x48xf32> to vector<48xf32>
    %81 = vector.shape_cast %80 : vector<48xf32> to vector<1x1x48xf32>
    %82 = vector.broadcast %81 : vector<1x1x48xf32> to vector<8x8x48xf32>
    %83 = arith.mulf %78, %82 : vector<8x8x48xf32>
    %84 = arith.addf %77, %83 : vector<8x8x48xf32>
    %c0_16 = arith.constant 0 : index
    %c0_17 = arith.constant 0 : index
    %85 = vector.load %arg6[%c0_16, %c0_17] : memref<1x48xf32, #tpu.memory_space<vmem>>, vector<1x48xf32>
    %86 = vector.shape_cast %85 : vector<1x48xf32> to vector<1x1x48xf32>
    %87 = vector.broadcast %86 : vector<1x1x48xf32> to vector<8x8x48xf32>
    %88 = arith.addf %84, %87 : vector<8x8x48xf32>
    %cst_18 = arith.constant 3.000000e+00 : f32
    %89 = vector.broadcast %cst_18 : f32 to vector<8x8x48xf32>
    %90 = arith.addf %88, %89 : vector<8x8x48xf32>
    %cst_19 = arith.constant 0.000000e+00 : f32
    %cst_20 = arith.constant 6.000000e+00 : f32
    %91 = vector.broadcast %cst_19 : f32 to vector<8x8x48xf32>
    %92 = arith.maximumf %91, %90 : vector<8x8x48xf32>
    %93 = vector.broadcast %cst_20 : f32 to vector<8x8x48xf32>
    %94 = arith.minimumf %93, %92 : vector<8x8x48xf32>
    %95 = arith.mulf %88, %94 : vector<8x8x48xf32>
    %cst_21 = arith.constant 0.166666672 : f32
    %96 = vector.broadcast %cst_21 : f32 to vector<8x8x48xf32>
    %97 = arith.mulf %95, %96 : vector<8x8x48xf32>
    %98 = vector.shape_cast %97 : vector<8x8x48xf32> to vector<64x48xf32>
    %cst_22 = arith.constant dense<0.000000e+00> : vector<48xf32>
    %99 = vector.multi_reduction <add>, %98, %cst_22 [0] : vector<64x48xf32> to vector<48xf32>
    %100 = vector.shape_cast %99 : vector<48xf32> to vector<1x48xf32>
    %cst_23 = arith.constant 6.400000e+01 : f32
    %101 = vector.broadcast %cst_23 : f32 to vector<1x48xf32>
    %102 = arith.divf %100, %101 : vector<1x48xf32>
    %103 = arith.truncf %102 : vector<1x48xf32> to vector<1x48xbf16>
    %c0_24 = arith.constant 0 : index
    %c0_25 = arith.constant 0 : index
    %104 = vector.load %arg7[%c0_24, %c0_25] : memref<48x12xbf16, #tpu.memory_space<vmem>>, vector<48x12xbf16>
    %cst_26 = arith.constant dense<0.000000e+00> : vector<1x12xf32>
    %105 = tpu.matmul %103, %104, %cst_26 {dimension_numbers = #tpu.dot_dimension_numbers<[1], [0], [0], [1], [0, 0, 1, 1], [], []>} : vector<1x48xbf16>, vector<48x12xbf16>, vector<1x12xf32> -> vector<1x12xf32>
    %c0_27 = arith.constant 0 : index
    %c0_28 = arith.constant 0 : index
    %106 = vector.load %arg8[%c0_27, %c0_28] : memref<1x12xf32, #tpu.memory_space<vmem>>, vector<1x12xf32>
    %107 = arith.addf %105, %106 : vector<1x12xf32>
    %cst_29 = arith.constant 0.000000e+00 : f32
    %108 = vector.broadcast %cst_29 : f32 to vector<1x12xf32>
    %109 = arith.maximumf %107, %108 : vector<1x12xf32>
    %110 = arith.truncf %109 : vector<1x12xf32> to vector<1x12xbf16>
    %c0_30 = arith.constant 0 : index
    %c0_31 = arith.constant 0 : index
    %111 = vector.load %arg9[%c0_30, %c0_31] : memref<12x48xbf16, #tpu.memory_space<vmem>>, vector<12x48xbf16>
    %cst_32 = arith.constant dense<0.000000e+00> : vector<1x48xf32>
    %112 = tpu.matmul %110, %111, %cst_32 {dimension_numbers = #tpu.dot_dimension_numbers<[1], [0], [0], [1], [0, 0, 1, 1], [], []>} : vector<1x12xbf16>, vector<12x48xbf16>, vector<1x48xf32> -> vector<1x48xf32>
    %c0_33 = arith.constant 0 : index
    %c0_34 = arith.constant 0 : index
    %113 = vector.load %arg10[%c0_33, %c0_34] : memref<1x48xf32, #tpu.memory_space<vmem>>, vector<1x48xf32>
    %114 = arith.addf %112, %113 : vector<1x48xf32>
    %cst_35 = arith.constant 3.000000e+00 : f32
    %115 = vector.broadcast %cst_35 : f32 to vector<1x48xf32>
    %116 = arith.addf %114, %115 : vector<1x48xf32>
    %cst_36 = arith.constant 0.000000e+00 : f32
    %cst_37 = arith.constant 6.000000e+00 : f32
    %117 = vector.broadcast %cst_36 : f32 to vector<1x48xf32>
    %118 = arith.maximumf %117, %116 : vector<1x48xf32>
    %119 = vector.broadcast %cst_37 : f32 to vector<1x48xf32>
    %120 = arith.minimumf %119, %118 : vector<1x48xf32>
    %cst_38 = arith.constant 0.166666672 : f32
    %121 = vector.broadcast %cst_38 : f32 to vector<1x48xf32>
    %122 = arith.mulf %120, %121 : vector<1x48xf32>
    %123 = vector.broadcast %122 : vector<1x48xf32> to vector<64x48xf32>
    %124 = arith.mulf %98, %123 : vector<64x48xf32>
    %125 = arith.truncf %124 : vector<64x48xf32> to vector<64x48xbf16>
    %c0_39 = arith.constant 0 : index
    %c0_40 = arith.constant 0 : index
    %126 = vector.load %arg11[%c0_39, %c0_40] : memref<48x24xbf16, #tpu.memory_space<vmem>>, vector<48x24xbf16>
    %cst_41 = arith.constant dense<0.000000e+00> : vector<64x24xf32>
    %127 = tpu.matmul %125, %126, %cst_41 {dimension_numbers = #tpu.dot_dimension_numbers<[1], [0], [0], [1], [0, 0, 1, 1], [], []>} : vector<64x48xbf16>, vector<48x24xbf16>, vector<64x24xf32> -> vector<64x24xf32>
    %c0_42 = arith.constant 0 : index
    %c0_43 = arith.constant 0 : index
    %128 = vector.load %arg12[%c0_42, %c0_43] : memref<1x24xf32, #tpu.memory_space<vmem>>, vector<1x24xf32>
    %129 = vector.broadcast %128 : vector<1x24xf32> to vector<64x24xf32>
    %130 = arith.addf %127, %129 : vector<64x24xf32>
    %131 = vector.shape_cast %130 : vector<64x24xf32> to vector<8x8x24xf32>
    %c0_44 = arith.constant 0 : index
    %c0_45 = arith.constant 0 : index
    %c0_46 = arith.constant 0 : index
    %c0_47 = arith.constant 0 : index
    %132 = vector.load %arg13[%c0_44, %c0_45, %c0_46, %c0_47] : memref<1x8x8x24xf32, #tpu.memory_space<vmem>>, vector<1x8x8x24xf32>
    %133 = vector.shape_cast %132 : vector<1x8x8x24xf32> to vector<8x8x24xf32>
    %134 = vector.shape_cast %131 : vector<8x8x24xf32> to vector<1x8x8x24xf32>
    tpu.vector_store %arg13[%c0_44, %c0_45, %c0_46, %c0_47], %134 {strides = array<i32>} : memref<1x8x8x24xf32, #tpu.memory_space<vmem>>, vector<1x8x8x24xf32>,
    return
  }
  func.func @transform_0(%arg0: i32) -> (i32, i32, i32, i32) {
    %c0_i32 = arith.constant 0 : i32
    %c0_i32_0 = arith.constant 0 : i32
    %c0_i32_1 = arith.constant 0 : i32
    %c0_i32_2 = arith.constant 0 : i32
    return %arg0, %c0_i32, %c0_i32_0, %c0_i32_1 : i32, i32, i32, i32
  }
  func.func @transform_1(%arg0: i32) -> (i32, i32) {
    %c0_i32 = arith.constant 0 : i32
    %c0_i32_0 = arith.constant 0 : i32
    %c0_i32_1 = arith.constant 0 : i32
    return %c0_i32, %c0_i32_0 : i32, i32
  }
  func.func @transform_2(%arg0: i32) -> (i32, i32) {
    %c0_i32 = arith.constant 0 : i32
    %c0_i32_0 = arith.constant 0 : i32
    %c0_i32_1 = arith.constant 0 : i32
    return %c0_i32, %c0_i32_0 : i32, i32
  }
  func.func @transform_3(%arg0: i32) -> (i32, i32) {
    %c0_i32 = arith.constant 0 : i32
    %c0_i32_0 = arith.constant 0 : i32
    %c0_i32_1 = arith.constant 0 : i32
    return %c0_i32, %c0_i32_0 : i32, i32
  }
  func.func @transform_4(%arg0: i32) -> (i32, i32, i32) {
    %c0_i32 = arith.constant 0 : i32
    %c0_i32_0 = arith.constant 0 : i32
    %c0_i32_1 = arith.constant 0 : i32
    %c0_i32_2 = arith.constant 0 : i32
    return %c0_i32, %c0_i32_0, %c0_i32_1 : i32, i32, i32
  }
  func.func @transform_5(%arg0: i32) -> (i32, i32) {
    %c0_i32 = arith.constant 0 : i32
    %c0_i32_0 = arith.constant 0 : i32
    %c0_i32_1 = arith.constant 0 : i32
    return %c0_i32, %c0_i32_0 : i32, i32
  }
  func.func @transform_6(%arg0: i32) -> (i32, i32) {
    %c0_i32 = arith.constant 0 : i32
    %c0_i32_0 = arith.constant 0 : i32
    %c0_i32_1 = arith.constant 0 : i32
    return %c0_i32, %c0_i32_0 : i32, i32
  }
  func.func @transform_7(%arg0: i32) -> (i32, i32) {
    %c0_i32 = arith.constant 0 : i32
    %c0_i32_0 = arith.constant 0 : i32
    %c0_i32_1 = arith.constant 0 : i32
    return %c0_i32, %c0_i32_0 : i32, i32
  }
  func.func @transform_8(%arg0: i32) -> (i32, i32) {
    %c0_i32 = arith.constant 0 : i32
    %c0_i32_0 = arith.constant 0 : i32
    %c0_i32_1 = arith.constant 0 : i32
    return %c0_i32, %c0_i32_0 : i32, i32
  }
  func.func @transform_9(%arg0: i32) -> (i32, i32) {
    %c0_i32 = arith.constant 0 : i32
    %c0_i32_0 = arith.constant 0 : i32
    %c0_i32_1 = arith.constant 0 : i32
    return %c0_i32, %c0_i32_0 : i32, i32
  }
  func.func @transform_10(%arg0: i32) -> (i32, i32) {
    %c0_i32 = arith.constant 0 : i32
    %c0_i32_0 = arith.constant 0 : i32
    %c0_i32_1 = arith.constant 0 : i32
    return %c0_i32, %c0_i32_0 : i32, i32
  }
  func.func @transform_11(%arg0: i32) -> (i32, i32) {
    %c0_i32 = arith.constant 0 : i32
    %c0_i32_0 = arith.constant 0 : i32
    %c0_i32_1 = arith.constant 0 : i32
    return %c0_i32, %c0_i32_0 : i32, i32
  }
  func.func @transform_12(%arg0: i32) -> (i32, i32, i32, i32) {
    %c0_i32 = arith.constant 0 : i32
    %c0_i32_0 = arith.constant 0 : i32
    %c0_i32_1 = arith.constant 0 : i32
    %c0_i32_2 = arith.constant 0 : i32
    return %arg0, %c0_i32, %c0_i32_0, %c0_i32_1 : i32, i32, i32, i32
  }
}

</mosaic_0001>

<bundles_post_ra>
// kernel: mobilenetv3_forward.3
= control target key start
LH: loop header
LB: loop body
LE: loop exit
PB: predicated region body
PF: predicated region fallthrough
CT: control target
= control target key end

     0   :  { %s1575_s12 = smov 0   ;;  %s1867_s0 = inlined_call_operand.vmem [shape: f32[2,36,9,3], index: 0, kind: input, shape index: {}]   ;;  %s1868_s1 = inlined_call_operand.vmem [shape: bf16[9,3,16], index: 1, kind: input, shape index: {}]   ;;  %s1869_s2 = inlined_call_operand.vmem [shape: f32[1,16], index: 2, kind: input, shape index: {}]   ;;  %s1870_s3 = inlined_call_operand.vmem [shape: f32[2,8,8,16], index: 3, kind: output, shape index: {}]  }
   0x1 LB: > { %s1279_s13 = sadd.s32 4294967295, %s1552_s12   ;;  %p1283_p0 = scmp.ge.s32.totalorder %s1552_s12, 1  ;;  %s1552_s12 = sphi %s1575_s12, %s13_s12  }
   0x2   : > { %p137_p1 = scmp.lt.s32.totalorder %s1552_s12, 3 }
   0x4   : > { %p138_p2 = pnand %p1283_p0, %p137_p1 }
   0x5   : > { %v1287_v0 = vld [vmem:[%s1868_s1 + $0x2] sm:$0x3] (!%p138_p2)  ;;  %vm247_vm0 = vcmask (!%p138_p2), 1040384   ;;  %vm248_vm1 = vcmask (!%p138_p2), 1041408   ;;  %p161_p3 = scmp.lt.s32.totalorder (!%p138_p2), %s1279_s13, 1  ;;  %v1554_v1 = vmov (!%p138_p2), 65535  }
   0x6   : > { %141 = sbr.rel (%p138_p2) target bundleno = 322 (0x142), region = 32  ;;  %v249_v2 = vsel (!%p138_p2), %vm247_vm0, 4294967295, %v1554_v1  ;;  %v1306_v3 = vld [vmem:[%s1868_s1 + $0x8] sm:$0x3] (!%p138_p2)  ;;  %v227_v4 = vld [vmem:[%s1868_s1] sm:$0x3] (!%p138_p2) }
   0x7   : > { %v1592_v5 = vsel (!%p138_p2), %vm248_vm1, %v249_v2, 0  ;;  %v1311_v6 = vld [vmem:[%s1868_s1 + $0xa] sm:$0x3] (!%p138_p2)  ;;  %v1316_v11 = vld [vmem:[%s1868_s1 + $0xc] sm:$0x3] (!%p138_p2)  ;;  %vm234_vm2 = vcmask (!%p138_p2), 23552  }
   0x8   : > { %v252_v7 = vand.u32 (!%p138_p2), %v1287_v0, %v1592_v5  ;;  %v1601_v8 = vand.u32 (!%p138_p2), %v1306_v3, %v1592_v5  ;;  %v332_v9 = vand.u32 (!%p138_p2), %v1592_v5, %v227_v4  ;;  %v797_v10 = vand.u32 (!%p138_p2), %v1311_v6, %v1592_v5  ;;  %v1296_v12 = vld [vmem:[%s1868_s1 + $0x4] sm:$0x3] (!%p138_p2) }
   0x9   : > { %v1650_v29 = vand.u32 (!%p138_p2), %v1296_v12, %v1592_v5  ;;  %vm415_vm3 = vcmask (!%p138_p2), 1046528   ;;  %v1663_v34 = vand.u32 (!%p138_p2), %v1316_v11, %v1592_v5  ;;  %v1321_v11 = vld [vmem:[%s1868_s1 + $0xe] sm:$0x3] (!%p138_p2)  ;;  %vm1215_vm4 = vcmask (!%p138_p2), 130048  }
   0xa   : > { %1380 = vmatprep.subr.bf16.mxu1 (!%p138_p2), %v252_v7  ;;  %1420 = vmatprep.subr.bf16.mxu0 (!%p138_p2), %v1601_v8 }
   0xb   : > { %1381 = vmatpush3.bf16.msra.mxu1 (!%p138_p2), %v252_v7  ;;  %1421 = vmatpush3.bf16.msra.mxu0 (!%p138_p2), %v1601_v8 }
   0xc   : > { %1390 = vmatprep.subr.bf16.mxu1 (!%p138_p2), %v332_v9  ;;  %1430 = vmatprep.subr.bf16.mxu0 (!%p138_p2), %v797_v10 }
   0xd   : > { %s1872_s13 = smov (!%p161_p3, %s1279_s13), 1 }
   0xe   : > { %s1536_s22 = smul.u32 576, %s1872_s13  ;;  %s1334_s11 = sshll.u32 %s1872_s13, 6 }
   0xf   : > { %s1846_s16 = scalar_lea.vmem %s1870_s3, %s1334_s11 }
  0x10   : > { %s1611_s25 = scalar_lea.vmem %s1867_s0, %s1536_s22 }
  0x11   : > { %v190_v13 = vld [vmem:[%s1611_s25 + $0x90] sm:$0xff]  ;;  %v1621_v14 = vld [vmem:[%s1611_s25 + $0xa0] sm:$0xff]  ;;  %v200_v32 = vld [vmem:[%s1611_s25 + $0x128] sm:$0x1] }
  0x12   : > { %v1624_v15 = vld [vmem:[%s1611_s25 + $0xb0] sm:$0xff]  ;;  %v1627_v16 = vld [vmem:[%s1611_s25 + $0xc0] sm:$0xff]  ;;  %v228_v18 = vpack.c.bf16 %v1621_v14, %v190_v13  ;;  %v202_v35 = vld [vmem:[%s1611_s25 + $0x138] sm:$0x1]  ;;  %v747_v37 = vrot.slane %v200_v32, 1 }
  0x13   : > { %v1630_v17 = vld [vmem:[%s1611_s25 + $0xd0] sm:$0xff]  ;;  %v229_v20 = vpack.c.bf16 %v1627_v16, %v1624_v15  ;;  %v216_v21 = vld [vmem:[%s1611_s25 + $0x1c0] sm:$0xff]  ;;  %v750_v40 = vrot.slane %v202_v35, 1  ;;  %v204_v41 = vld [vmem:[%s1611_s25 + $0x148] sm:$0x1]  ;;  %v985_v35 = vand.u32 %v1321_v11, %v1592_v5 }
  0x14   : > { %v215_v19 = vld [vmem:[%s1611_s25 + $0x1b0] sm:$0xff]  ;;  %v218_v23 = vld [vmem:[%s1611_s25 + $0x1e0] sm:$0xff]  ;;  %1382 = vmatprep.mubr.msk.bf16.mxu1 %vm234_vm2, %v228_v18  ;;  %v206_v43 = vld [vmem:[%s1611_s25 + $0x158] sm:$0x1]  ;;  %v753_v46 = vrot.slane %v204_v41, 1 }
  0x15   : > { %v217_v22 = vld [vmem:[%s1611_s25 + $0x1d0] sm:$0xff]  ;;  %v636_v24 = vpack.c.bf16 %v216_v21, %v215_v19  ;;  %v1641_v26 = vld [vmem:[%s1611_s25 + $0xe0] sm:$0xff]  ;;  %1383 = vmatmul.mubr.msk.bf16.vlgmr.msra.gmra.mrb[0].mxu1 %vm234_vm2, %v229_v20  ;;  %v756_v52 = vrot.slane %v206_v43, 1  ;;  %v208_v54 = vld [vmem:[%s1611_s25 + $0x168] sm:$0x1] }
  0x16   : > { %v637_v25 = vpack.c.bf16 %v218_v23, %v217_v22  ;;  %v1644_v27 = vld [vmem:[%s1611_s25 + $0xf0] sm:$0xff]  ;;  %v1647_v28 = vld [vmem:[%s1611_s25 + $0x100] sm:$0xff]  ;;  %v230_v30 = vpack.c.bf16 %v1641_v26, %v1630_v17  ;;  %1391 = vmatpush3.bf16.msra.mxu1 %v332_v9  ;;  %v210_v58 = vld [vmem:[%s1611_s25 + $0x178] sm:$0x1]  ;;  %v759_v62 = vrot.slane %v208_v54, 1 }
  0x17   : > { %v1656_v31 = vld [vmem:[%s1611_s25 + $0x120] sm:$0xff]  ;;  %v1660_v33 = vld [vmem:[%s1611_s25 + $0x130] sm:$0xff]  ;;  %1422 = vmatprep.mubr.msk.bf16.mxu0 %vm234_vm2, %v636_v24  ;;  %1400 = vmatprep.subr.bf16.mxu1 %v1650_v29  ;;  %v231_v50 = vpack.c.bf16 %v1647_v28, %v1644_v27  ;;  %v762_v0 = vrot.slane %v210_v58, 1  ;;  %v212_v2 = vld [vmem:[%s1611_s25 + $0x188] sm:$0x1] }
  0x18   : > { %v746_v36 = vrot.slane %v1656_v31, 1  ;;  %v749_v38 = vrot.slane %v1660_v33, 1  ;;  %v1670_v39 = vld [vmem:[%s1611_s25 + $0x140] sm:$0xff]  ;;  %1423 = vmatmul.mubr.msk.bf16.vlgmr.msra.gmra.mrb[0].mxu0 %vm234_vm2, %v637_v25  ;;  %1386 = vmatprep.mubr.msk.bf16.mxu1 %vm234_vm2, %v230_v30  ;;  %v1676_v42 = vld [vmem:[%s1611_s25 + $0x150] sm:$0xff]  ;;  %v214_v4 = vld [vmem:[%s1611_s25 + $0x198] sm:$0x1] }
  0x19   : > { %1431 = vmatpush3.bf16.msra.mxu0 %v797_v10  ;;  %v752_v45 = vrot.slane %v1670_v39, 1  ;;  %v755_v47 = vrot.slane %v1676_v42, 1  ;;  %v1683_v48 = vld [vmem:[%s1611_s25] sm:$0xff]  ;;  %v1686_v49 = vld [vmem:[%s1611_s25 + $0x10] sm:$0xff]  ;;  %v765_v18 = vrot.slane %v212_v2, 1  ;;  %v768_v24 = vrot.slane %v214_v4, 1 }
  0x1a   : > { %v748_v44 = vsel %vm415_vm3, %v746_v36, %v747_v37  ;;  %v751_v51 = vsel %vm415_vm3, %v749_v38, %v750_v40  ;;  %1440 = vmatprep.subr.bf16.mxu0 %v1663_v34  ;;  %v1694_v53 = vld [vmem:[%s1611_s25 + $0x160] sm:$0xff]  ;;  %v223_v56 = vpack.c.bf16 %v1686_v49, %v1683_v48  ;;  %v1700_v57 = vld [vmem:[%s1611_s25 + $0x170] sm:$0xff]  ;;  %v173_v25 = vld [vmem:[%s1611_s25 + $0x8] sm:$0x1]  ;;  %v416_v38 = vrot.slane %v1683_v48, 1 }
  0x1b   : > { %v778_v55 = vpack.c.bf16 %v751_v51, %v748_v44  ;;  %v754_v59 = vsel %vm415_vm3, %v752_v45, %v753_v46  ;;  %v758_v60 = vrot.slane %v1694_v53, 1  ;;  %v757_v61 = vsel %vm415_vm3, %v755_v47, %v756_v52  ;;  %v1709_v1 = vld [vmem:[%s1611_s25 + $0x180] sm:$0xff]  ;;  %v1714_v3 = vld [vmem:[%s1611_s25 + $0x190] sm:$0xff]  ;;  %v175_v30 = vld [vmem:[%s1611_s25 + $0x18] sm:$0x1] }
  0x1c   : > { %v761_v63 = vrot.slane %v1700_v57, 1  ;;  %v176_v6 = vld [vmem:[%s1611_s25 + $0x20] sm:$0xff]  ;;  %v1720_v7 = vld [vmem:[%s1611_s25 + $0x30] sm:$0xff]  ;;  %v779_v12 = vpack.c.bf16 %v757_v61, %v754_v59  ;;  %v764_v13 = vrot.slane %v1709_v1, 1  ;;  %v767_v23 = vrot.slane %v1714_v3, 1 }
  0x1d   : > { %1432 = vmatprep.mubr.msk.bf16.mxu0 %vm234_vm2, %v778_v55  ;;  %1387 = vmatmul.mubr.msk.bf16.gmra.mrb[4].mxu1 %vm234_vm2, %v231_v50  ;;  %v760_v9 = vsel %vm415_vm3, %v758_v60, %v759_v62  ;;  %v1729_v19 = vld [vmem:[%s1611_s25 + $0x40] sm:$0xff]  ;;  %v1732_v20 = vld [vmem:[%s1611_s25 + $0x50] sm:$0xff]  ;;  %v224_v32 = vpack.c.bf16 %v1720_v7, %v176_v6  ;;  %v419_v40 = vrot.slane %v1686_v49, 1  ;;  %v417_v41 = vrot.slane %v173_v25, 1  ;;  %v177_v51 = vld [vmem:[%s1611_s25 + $0x28] sm:$0x1] }
  0x1e   : > { %1392 = vmatprep.mubr.msk.bf16.mxu1 %vm234_vm2, %v223_v56  ;;  %v763_v10 = vsel %vm415_vm3, %v761_v63, %v762_v0  ;;  %v1301_v21 = vld [vmem:[%s1868_s1 + $0x6] sm:$0x3]  ;;  %v225_v36 = vpack.c.bf16 %v1732_v20, %v1729_v19  ;;  %v420_v43 = vrot.slane %v175_v30, 1  ;;  %v766_v44 = vsel %vm415_vm3, %v764_v13, %v765_v18  ;;  %v186_v47 = vld [vmem:[%s1611_s25 + $0x70] sm:$0xff]  ;;  %v179_v52 = vld [vmem:[%s1611_s25 + $0x38] sm:$0x1] }
  0x1f   : > { %v780_v22 = vpack.c.bf16 %v763_v10, %v760_v9  ;;  %v561_v37 = vand.u32 %v1301_v21, %v1592_v5  ;;  %v769_v45 = vsel %vm415_vm3, %v767_v23, %v768_v24  ;;  %v184_v46 = vld [vmem:[%s1611_s25 + $0x60] sm:$0xff]  ;;  %v872_v54 = vpack.c.bf16 %v176_v6, %v1686_v49  ;;  %v181_v55 = vld [vmem:[%s1611_s25 + $0x48] sm:$0x1]  ;;  %v183_v56 = vld [vmem:[%s1611_s25 + $0x58] sm:$0x1] }
  0x20   : > { %v781_v48 = vpack.c.bf16 %v769_v45, %v766_v44  ;;  %v1759_v50 = vsel %vm415_vm3, %v419_v40, %v420_v43  ;;  %v422_v58 = vrot.slane %v176_v6, 1  ;;  %v226_v59 = vpack.c.bf16 %v186_v47, %v184_v46  ;;  %v1326_v9 = vld [vmem:[%s1868_s1 + $0x10] sm:$0x3]  ;;  %v185_v13 = vld [vmem:[%s1611_s25 + $0x68] sm:$0x1]  ;;  %v222_v44 = vld [vmem:[%s1611_s25 + $0x220] sm:$0xff] }
  0x21   : > { %v423_v61 = vrot.slane %v177_v51, 1  ;;  %v426_v62 = vrot.slane %v179_v52, 1  ;;  %v428_v63 = vrot.slane %v1729_v19, 1  ;;  %v431_v0 = vrot.slane %v1732_v20, 1  ;;  %v187_v18 = vld [vmem:[%s1611_s25 + $0x78] sm:$0x1] }
  0x22   : > { %v429_v2 = vrot.slane %v181_v55, 1  ;;  %v432_v49 = vrot.slane %v183_v56, 1  ;;  %v873_v10 = vpack.c.bf16 %v1729_v19, %v1720_v7  ;;  %v874_v21 = vpack.c.bf16 %v184_v46, %v1732_v20  ;;  %v221_v43 = vld [vmem:[%s1611_s25 + $0x210] sm:$0xff]  ;;  %v1331_v51 = vld [vmem:[%s1869_s2] ss:$0 sm:$0xff] }
  0x23   : > { %v424_v4 = vsel %vm415_vm3, %v422_v58, %v423_v61  ;;  %v1085_v24 = vand.u32 %v1326_v9, %v1592_v5  ;;  %v437_v25 = vrot.slane %v186_v47, 1  ;;  %v542_v40 = vpack.c.bf16 %v1660_v33, %v1656_v31  ;;  %v198_v33 = vld [vmem:[%s1611_s25 + $0x110] sm:$0xff] }
  0x24   : > { %1433 = vmatmul.mubr.msk.bf16.vlgmr.msra.gmra.mrb[0].mxu0 %vm234_vm2, %v779_v12  ;;  %v430_v11 = vsel %vm415_vm3, %v428_v63, %v429_v2  ;;  %v433_v12 = vsel %vm415_vm3, %v431_v0, %v432_v49  ;;  %v544_v31 = vpack.c.bf16 %v1700_v57, %v1694_v53 }
  0x25   : > { %1441 = vmatpush3.bf16.msra.mxu0 %v1663_v34  ;;  %1436 = vmatprep.mubr.msk.bf16.mxu0 %vm234_vm2, %v780_v22  ;;  %v418_v34 = vsel %vm415_vm3, %v416_v38, %v417_v41  ;;  %v434_v22 = vrot.slane %v184_v46, 1  ;;  %v450_v30 = vpack.c.bf16 %v433_v12, %v430_v11 }
  0x26   : > { %1393 = vmatmul.mubr.msk.bf16.vlgmr.msra.gmra.mrb[0].mxu1 %vm234_vm2, %v224_v32  ;;  %1450 = vmatprep.subr.bf16.mxu0 %v985_v35  ;;  %v448_v60 = vpack.c.bf16 %v1759_v50, %v418_v34  ;;  %v435_v32 = vrot.slane %v185_v13, 1 }
  0x27   : > { %1401 = vmatpush3.bf16.msra.mxu1 %v1650_v29  ;;  %1396 = vmatprep.mubr.msk.bf16.mxu1 %vm234_vm2, %v225_v36  ;;  %v425_v29 = vrot.slane %v1720_v7, 1  ;;  %v438_v36 = vrot.slane %v187_v18, 1  ;;  %v188_v7 = vld [vmem:[%s1611_s25 + $0x80] sm:$0xff] }
  0x28   : > { %1410 = vmatprep.subr.bf16.mxu1 %v561_v37  ;;  %v436_v19 = vsel %vm415_vm3, %v434_v22, %v435_v32  ;;  %v875_v20 = vpack.c.bf16 %v188_v7, %v186_v47  ;;  %v1062_v53 = vrot.slane %v188_v7, 1 }
  0x29   : > { %v1776_v6 = vsel %vm415_vm3, %v425_v29, %v426_v62  ;;  %v439_v5 = vsel %vm415_vm3, %v437_v25, %v438_v36  ;;  %v1068_v57 = vpack.c.bf16 %v436_v19, %v433_v12 }
  0x2a   : > { %v449_v23 = vpack.c.bf16 %v1776_v6, %v424_v4  ;;  %v451_v38 = vpack.c.bf16 %v439_v5, %v436_v19 }
  0x2c   : > { %1437 = vmatmul.mubr.msk.bf16.gmra.mrb[4].mxu0 %vm234_vm2, %v781_v48 }
  0x2d   : > { %1442 = vmatprep.mubr.msk.bf16.mxu0 %vm234_vm2, %v872_v54 }
  0x2e   : > { %1397 = vmatmul.mubr.msk.bf16.gmra.mrb[4].mxu1 %vm234_vm2, %v226_v59 }
  0x2f   : > { %1402 = vmatprep.mubr.msk.bf16.mxu1 %vm234_vm2, %v448_v60 }
  0x34   : > { %1443 = vmatmul.mubr.msk.bf16.vlgmr.msra.gmra.mrb[0].mxu0 %vm234_vm2, %v873_v10 }
  0x35   : > { %1451 = vmatpush3.bf16.msra.mxu0 %v985_v35  ;;  %1446 = vmatprep.mubr.msk.bf16.mxu0 %vm234_vm2, %v874_v21  ;;  %v966_v35 = vpack.c.bf16 %v1624_v15, %v1621_v14  ;;  %v968_v14 = vpack.c.bf16 %v1644_v27, %v1641_v26  ;;  %v543_v15 = vpack.c.bf16 %v1676_v42, %v1670_v39  ;;  %v220_v26 = vld [vmem:[%s1611_s25 + $0x200] sm:$0xff] }
  0x36   : > { %1403 = vmatmul.mubr.msk.bf16.vlgmr.msra.gmra.mrb[0].mxu1 %vm234_vm2, %v449_v23  ;;  %1460 = vmatprep.subr.bf16.mxu0 %v1085_v24  ;;  %v1066_v27 = vpack.c.bf16 %v424_v4, %v1759_v50  ;;  %v545_v39 = vpack.c.bf16 %v1714_v3, %v1709_v1  ;;  %v639_v3 = vpack.c.bf16 %v222_v44, %v221_v43 }
  0x37   : > { %1411 = vmatpush3.bf16.msra.mxu1 %v561_v37  ;;  %1406 = vmatprep.mubr.msk.bf16.mxu1 %vm234_vm2, %v450_v30  ;;  %v967_v37 = vpack.c.bf16 %v1630_v17, %v1627_v16  ;;  %v969_v16 = vpack.c.bf16 %v198_v33, %v1647_v28  ;;  %v219_v17 = vld [vmem:[%s1611_s25 + $0x1f0] sm:$0xff]  ;;  %v1067_v28 = vpack.c.bf16 %v430_v11, %v1776_v6 }
  0x38   : > { %1470 = vmatprep.subr.bf16.mxu1 %v1601_v8  ;;  %v638_v42 = vpack.c.bf16 %v220_v26, %v219_v17 }
  0x3c   : > { %1447 = vmatmul.mubr.msk.bf16.gmra.mrb[4].mxu0 %vm234_vm2, %v875_v20 }
  0x3d   : > { %1452 = vmatprep.mubr.msk.bf16.mxu0 %vm234_vm2, %v966_v35 }
  0x3e   : > { %1407 = vmatmul.mubr.msk.bf16.gmra.mrb[4].mxu1 %vm234_vm2, %v451_v38 }
  0x3f   : > { %1412 = vmatprep.mubr.msk.bf16.mxu1 %vm234_vm2, %v542_v40 }
  0x44   : > { %1453 = vmatmul.mubr.msk.bf16.vlgmr.msra.gmra.mrb[0].mxu0 %vm234_vm2, %v967_v37 }
  0x45   : > { %1461 = vmatpush3.bf16.msra.mxu0 %v1085_v24  ;;  %1456 = vmatprep.mubr.msk.bf16.mxu0 %vm234_vm2, %v968_v14 }
  0x46   : > { %1413 = vmatmul.mubr.msk.bf16.vlgmr.msra.gmra.mrb[0].mxu1 %vm234_vm2, %v543_v15 }
  0x47   : > { %1471 = vmatpush3.bf16.msra.mxu1 %v1601_v8  ;;  %1416 = vmatprep.mubr.msk.bf16.mxu1 %vm234_vm2, %v544_v31  ;;  %v189_v8 = vld [vmem:[%s1611_s25 + $0x88] sm:$0x1] }
  0x48   : > { %v1063_v41 = vrot.slane %v189_v8, 1 }
  0x4a   : > { %v1064_v1 = vsel %vm415_vm3, %v1062_v53, %v1063_v41 }
  0x4b   : > { %v1069_v45 = vpack.c.bf16 %v1064_v1, %v439_v5 }
  0x4c   : > { %1457 = vmatmul.mubr.msk.bf16.gmra.mrb[4].mxu0 %vm234_vm2, %v969_v16 }
  0x4d   : > { %1462 = vmatprep.mubr.msk.bf16.mxu0 %vm234_vm2, %v1066_v27 }
  0x4e   : > { %1417 = vmatmul.mubr.msk.bf16.gmra.mrb[4].mxu1 %vm234_vm2, %v545_v39 }
  0x4f   : > { %1426 = vmatprep.mubr.msk.bf16.mxu1 %vm234_vm2, %v638_v42 }
  0x54   : > { %1463 = vmatmul.mubr.msk.bf16.vlgmr.msra.gmra.mrb[0].mxu0 %vm234_vm2, %v1067_v28 }
  0x55   : > { %1466 = vmatprep.mubr.msk.bf16.mxu0 %vm234_vm2, %v1068_v57 }
  0x5a   : > { %1427 = vmatmul.mubr.msk.bf16.vlgmr.msra.gmra.mrb[4].mxu1 %vm234_vm2, %v639_v3 }
  0x5c   : > { %1467 = vmatmul.mubr.msk.bf16.gmra.mrb[4].mxu0 %vm234_vm2, %v1069_v45 }
 0x119   : > { %v1414_v46 = vpop.f32.mrb[0].mxu1 }
 0x11a   : > { %v597_v47 = vpop.f32.mrb[1].mxu1 }
 0x11b   : > { %v1415_v48 = vpop.f32.mrb[2].mxu1 }
 0x11c   : > { %v600_v34 = vpop.f32.mrb[3].mxu1 }
 0x127   : > { %v1464_v50 = vpop.f32.mrb[0].mxu0 }
 0x128   : > { %v1472_v52 = vadd.f32 %v1464_v50, %v1414_v46  ;;  %v1121_v54 = vpop.f32.mrb[1].mxu0 }
 0x129   : > { %v1473_v55 = vadd.f32 %v1121_v54, %v597_v47  ;;  %v1465_v56 = vpop.f32.mrb[2].mxu0 }
 0x12a   : > { %v1169_v58 = vadd.f32 %v1472_v52, %v1331_v51  ;;  %v1474_v59 = vadd.f32 %v1465_v56, %v1415_v48  ;;  %v1124_v29 = vpop.f32.mrb[3].mxu0 }
 0x12b   : > { %v1167_v60 = vadd.f32 %v1473_v55, %v1331_v51  ;;  %v1475_v61 = vadd.f32 %v1124_v29, %v600_v34 }
 0x12c   : > { %v1177_v62 = vadd.f32 3.0, %v1169_v58  ;;  %v1170_v63 = vadd.f32 %v1474_v59, %v1331_v51 }
 0x12d   : > { %v1175_v0 = vadd.f32 3.0, %v1167_v60  ;;  %v1168_v2 = vadd.f32 %v1475_v61, %v1331_v51  ;;  %v1428_v49 = vpop.f32.mrb[4].mxu1 }
 0x12e   : > { %v1185_v4 = vmax.f32 %v1177_v62, 0.0  ;;  %v1178_v6 = vadd.f32 3.0, %v1170_v63  ;;  %v707_v9 = vpop.f32.mrb[5].mxu1 }
 0x12f   : > { %v1183_v10 = vmax.f32 %v1175_v0, 0.0  ;;  %v1176_v11 = vadd.f32 3.0, %v1168_v2  ;;  %v1468_v12 = vpop.f32.mrb[4].mxu0  ;;  %v1429_v13 = vpop.f32.mrb[6].mxu1 }
 0x130   : > { %v1193_v18 = vmin.f32 %v1185_v4, 6.0  ;;  %v1186_v21 = vmax.f32 %v1178_v6, 0.0  ;;  %v1476_v22 = vadd.f32 %v1468_v12, %v1428_v49  ;;  %v1137_v23 = vpop.f32.mrb[5].mxu0  ;;  %v710_v24 = vpop.f32.mrb[7].mxu1 }
 0x131   : > { %v1191_v25 = vmin.f32 %v1183_v10, 6.0  ;;  %v1184_v30 = vmax.f32 %v1176_v11, 0.0  ;;  %v1477_v32 = vadd.f32 %v1137_v23, %v707_v9  ;;  %v1469_v36 = vpop.f32.mrb[6].mxu0 }
 0x132   : > { %v1201_v7 = vmul.f32 %v1193_v18, %v1169_v58  ;;  %v1194_v19 = vmin.f32 %v1186_v21, 6.0  ;;  %v1173_v5 = vadd.f32 %v1476_v22, %v1331_v51  ;;  %v1478_v20 = vadd.f32 %v1469_v36, %v1429_v13  ;;  %v1140_v35 = vpop.f32.mrb[7].mxu0 }
 0x133   : > { %v1199_v38 = vmul.f32 %v1191_v25, %v1167_v60  ;;  %v1192_v40 = vmin.f32 %v1184_v30, 6.0  ;;  %v1171_v37 = vadd.f32 %v1477_v32, %v1331_v51  ;;  %v1479_v14 = vadd.f32 %v1140_v35, %v710_v24 }
 0x134   : > { %v1209_v15 = vmul.f32 0.16666667, %v1201_v7  ;;  %v1202_v31 = vmul.f32 %v1194_v19, %v1170_v63  ;;  %v1181_v33 = vadd.f32 3.0, %v1173_v5  ;;  %v1174_v16 = vadd.f32 %v1478_v20, %v1331_v51 }
 0x135   : > { %v1207_v17 = vmul.f32 0.16666667, %v1199_v38  ;;  %v1200_v26 = vmul.f32 %v1192_v40, %v1168_v2  ;;  %v1179_v27 = vadd.f32 3.0, %v1171_v37  ;;  %v1172_v39 = vadd.f32 %v1479_v14, %v1331_v51 }
 0x136   : > { %1218 = vst.msk [vmem:[%s1846_s16 + $0x10] sm:$0xff] %vm1215_vm4, %v1209_v15  ;;  %v1210_v42 = vmul.f32 0.16666667, %v1202_v31  ;;  %v1189_v8 = vmax.f32 %v1181_v33, 0.0  ;;  %v1182_v28 = vadd.f32 3.0, %v1174_v16 }
 0x137   : > { %1216 = vst.msk [vmem:[%s1846_s16] sm:$0xff] %vm1215_vm4, %v1207_v17  ;;  %v1208_v53 = vmul.f32 0.16666667, %v1200_v26  ;;  %v1187_v57 = vmax.f32 %v1179_v27, 0.0  ;;  %v1180_v41 = vadd.f32 3.0, %v1172_v39 }
 0x138   : > { %1219 = vst.msk [vmem:[%s1846_s16 + $0x18] sm:$0xff] %vm1215_vm4, %v1210_v42  ;;  %v1197_v43 = vmin.f32 %v1189_v8, 6.0  ;;  %v1190_v44 = vmax.f32 %v1182_v28, 0.0 }
 0x139   : > { %1217 = vst.msk [vmem:[%s1846_s16 + $0x8] sm:$0xff] %vm1215_vm4, %v1208_v53  ;;  %v1195_v1 = vmin.f32 %v1187_v57, 6.0  ;;  %v1188_v3 = vmax.f32 %v1180_v41, 0.0 }
 0x13a   : > { %v1205_v45 = vmul.f32 %v1197_v43, %v1173_v5  ;;  %v1198_v46 = vmin.f32 %v1190_v44, 6.0 }
 0x13b   : > { %v1203_v47 = vmul.f32 %v1195_v1, %v1171_v37  ;;  %v1196_v48 = vmin.f32 %v1188_v3, 6.0 }
 0x13c   : > { %v1213_v34 = vmul.f32 0.16666667, %v1205_v45  ;;  %v1206_v50 = vmul.f32 %v1198_v46, %v1174_v16 }
 0x13d   : > { %v1211_v51 = vmul.f32 0.16666667, %v1203_v47  ;;  %v1204_v52 = vmul.f32 %v1196_v48, %v1172_v39 }
 0x13e   : > { %1222 = vst.msk [vmem:[%s1846_s16 + $0x30] sm:$0xff] %vm1215_vm4, %v1213_v34  ;;  %v1214_v54 = vmul.f32 0.16666667, %v1206_v50 }
 0x13f   : > { %1220 = vst.msk [vmem:[%s1846_s16 + $0x20] sm:$0xff] %vm1215_vm4, %v1211_v51  ;;  %v1212_v55 = vmul.f32 0.16666667, %v1204_v52 }
 0x140   : > { %1223 = vst.msk [vmem:[%s1846_s16 + $0x38] sm:$0xff] %vm1215_vm4, %v1214_v54 }
 0x141   : > { %1221 = vst.msk [vmem:[%s1846_s16 + $0x28] sm:$0xff] %vm1215_vm4, %v1212_v55 }
 0x142 PF: > { %s13_s12 = sadd.s32 1, %s1552_s12  }
 0x143   : > { %p10_p4 = scmp.ge.s32.totalorder %s13_s12, 4  }
 0x145   :  { %12 = sbr.rel (!%p10_p4) target bundleno = 1 (0x1), region = 70 }

// kernel: mobilenetv3_forward.4
= control target key start
LH: loop header
LB: loop body
LE: loop exit
PB: predicated region body
PF: predicated region fallthrough
CT: control target
= control target key end

     0   :  { %s1892_s21 = smov 0   ;;  %s2566_s0 = inlined_call_operand.vmem [shape: f32[2,10,16,16], index: 0, kind: input, shape index: {}]   ;;  %s2567_s1 = inlined_call_operand.vmem [shape: f32[160,1], index: 1, kind: input, shape index: {}]   ;;  %s2568_s2 = inlined_call_operand.vmem [shape: bf16[16,32], index: 2, kind: input, shape index: {}]   ;;  %s2569_s3 = inlined_call_operand.vmem [shape: f32[1,32], index: 3, kind: input, shape index: {}]   ;;  %s2570_s4 = inlined_call_operand.vmem [shape: f32[3,3,32], index: 4, kind: input, shape index: {}]   ;;  %s2571_s5 = inlined_call_operand.vmem [shape: f32[1,32], index: 5, kind: input, shape index: {}]   ;;  %s2572_s6 = inlined_call_operand.vmem [shape: bf16[32,8], index: 6, kind: input, shape index: {}]   ;;  %s2573_s7 = inlined_call_operand.vmem [shape: f32[1,8], index: 7, kind: input, shape index: {}]   ;;  %s2574_s8 = inlined_call_operand.vmem [shape: bf16[8,32], index: 8, kind: input, shape index: {}]   ;;  %s2575_s9 = inlined_call_operand.vmem [shape: f32[1,32], index: 9, kind: input, shape index: {}]   ;;  %s2576_s10 = inlined_call_operand.vmem [shape: bf16[32,16], index: 10, kind: input, shape index: {}]   ;;  %s2577_s11 = inlined_call_operand.vmem [shape: f32[1,16], index: 11, kind: input, shape index: {}]   ;;  %s2578_s12 = inlined_call_operand.vmem [shape: f32[2,8,8,16], index: 12, kind: output, shape index: {}]  }
   0x1 LB: > { %s1676_s22 = sadd.s32 4294967295, %s1822_s21   ;;  %p1680_p0 = scmp.ge.s32.totalorder %s1822_s21, 1  ;;  %s1822_s21 = sphi %s1892_s21, %s22_s21  }
   0x2   : > { %p362_p1 = scmp.lt.s32.totalorder %s1822_s21, 3 }
   0x4   : > { %p363_p2 = pnand %p1680_p0, %p362_p1 }
   0x5   : > { %v1795_v0 = vld [vmem:[%s2568_s2] sm:$0xff] (!%p363_p2)   ;;  %p404_p3 = scmp.lt.s32.totalorder (!%p363_p2), %s1676_s22, 1  ;;  %v626_v1 = vld [vmem:[%s2567_s1 + $0x10] sm:$0xff] (!%p363_p2)  ;;  %v1824_v3 = vmov (!%p363_p2), 0   ;;  %v627_v4 = vld [vmem:[%s2567_s1 + $0x18] sm:$0xff] (!%p363_p2)  ;;  %vm460_vm0 = vcmask (!%p363_p2), 130048   ;;  %v767_v55 = vlaneseq (!%p363_p2) }
   0x6   : > { %366 = sbr.rel (%p363_p2) target bundleno = 1042 (0x412), region = 68  ;;  %v624_v2 = vld [vmem:[%s2567_s1] sm:$0xff] (!%p363_p2)  ;;  %1733 = vmatprep.subr.bf16.mxu0 (!%p363_p2), %v1795_v0  ;;  %1794 = vset.pattern.permute.xlu1 (!%p363_p2), %v1824_v3  ;;  %v625_v5 = vld [vmem:[%s2567_s1 + $0x8] sm:$0xff] (!%p363_p2)  ;;  %v631_v21 = vld [vmem:[%s2567_s1 + $0x38] sm:$0xff] (!%p363_p2)  ;;  %v1825_v53 = vmov (!%p363_p2), 0.0   ;;  %vm1826_vm1 = vmmov (!%p363_p2), 0  }
   0x7   : > { %1734 = vmatpush3.bf16.msra.mxu0 (!%p363_p2), %v1795_v0  ;;  %1793 = vset.pattern.permute.xlu0 (!%p363_p2), %v1824_v3  ;;  %v629_v15 = vld [vmem:[%s2567_s1 + $0x28] sm:$0xff] (!%p363_p2)  ;;  %v628_v16 = vld [vmem:[%s2567_s1 + $0x20] sm:$0xff] (!%p363_p2)  ;;  %v630_v22 = vld [vmem:[%s2567_s1 + $0x30] sm:$0xff] (!%p363_p2)  ;;  %v768_v56 = vshrl.u32 (!%p363_p2), %v767_v55, 7  ;;  %vm815_vm2 = vcmask (!%p363_p2), 1046528   ;;  %vm892_vm3 = vcmask (!%p363_p2), 1045504  }
   0x8   : > { %656 = vperm.xlu1 (!%p363_p2), %1794, %v626_v1   ;;  %646 = vperm.xlu0 (!%p363_p2), %1793, %v624_v2   ;;  %v633_v25 = vld [vmem:[%s2567_s1 + $0x48] sm:$0xff] (!%p363_p2)  ;;  %v632_v26 = vld [vmem:[%s2567_s1 + $0x40] sm:$0xff] (!%p363_p2)  ;;  %v635_v31 = vld [vmem:[%s2567_s1 + $0x58] sm:$0xff] (!%p363_p2)  ;;  %vm1300_vm4 = vcmask (!%p363_p2), 261120   ;;  %vm1393_vm5 = vcmask (!%p363_p2), 1043456   ;;  %vm1389_vm6 = vcmask (!%p363_p2), 64512  }
   0x9   : > { %v634_v32 = vld [vmem:[%s2567_s1 + $0x50] sm:$0xff] (!%p363_p2)  ;;  %v637_v35 = vld [vmem:[%s2567_s1 + $0x68] sm:$0xff] (!%p363_p2)  ;;  %v636_v36 = vld [vmem:[%s2567_s1 + $0x60] sm:$0xff] (!%p363_p2)  ;;  %1755 = vmatprep.subr.bf16.mxu1 (!%p363_p2), %v1825_v53  ;;  %1759 = vmatprep.mubr.msk.bf16.mxu1 (!%p363_p2), %vm1826_vm1, %v1825_v53  ;;  %v2017_v58 = vsub.s32 (!%p363_p2), 0, %v768_v56  ;;  %v781_v59 = vsub.s32 (!%p363_p2), 1, %v768_v56  ;;  %v858_v60 = vsub.s32 (!%p363_p2), 2, %v768_v56 }
   0xa   : > { %v639_v41 = vld [vmem:[%s2567_s1 + $0x78] sm:$0xff] (!%p363_p2)  ;;  %v638_v42 = vld [vmem:[%s2567_s1 + $0x70] sm:$0xff] (!%p363_p2)  ;;  %v641_v45 = vld [vmem:[%s2567_s1 + $0x88] sm:$0xff] (!%p363_p2) }
   0xb   : > { %v640_v46 = vld [vmem:[%s2567_s1 + $0x80] sm:$0xff] (!%p363_p2)  ;;  %v643_v49 = vld [vmem:[%s2567_s1 + $0x98] sm:$0xff] (!%p363_p2)  ;;  %v642_v50 = vld [vmem:[%s2567_s1 + $0x90] sm:$0xff] (!%p363_p2) }
   0xc   : > { %661 = vperm.xlu1 (!%p363_p2), %1794, %v627_v4   ;;  %651 = vperm.xlu0 (!%p363_p2), %1793, %v625_v5   ;;  %v1796_v52 = vld [vmem:[%s2572_s6] sm:$0xff] (!%p363_p2)   ;;  %v1797_v54 = vld [vmem:[%s2572_s6 + $0x8] sm:$0xff] (!%p363_p2)  }
   0xd   : > { %s2580_s22 = smov (!%p404_p3, %s1676_s22), 1  ;;  %1756 = vmatpush3.bf16.msra.mxu1 %v1796_v52  ;;  %v2015_v57 = vld [vmem:[%s2569_s3] ss:$0 sm:$0xff]  ;;  %v765_v1 = vld [vmem:[%s2570_s4 + $0x4] sm:$0x7] }
   0xe   : > { %s1781_s29 = smul.u32 160, %s2580_s22  ;;  %1757 = vmatprep.subr.bf16.mxu1 %v1825_v53  ;;  %v764_v62 = vld [vmem:[%s2570_s4] sm:$0x7]  ;;  %s1710_s16 = sshll.u32 %s2580_s22, 6 }
   0xf   : > { %v2028_v5 = vrot.slane %v764_v62, %v2017_v58  ;;  %s2531_s20 = scalar_lea.vmem %s2578_s12, %s1710_s16 }
  0x10   : > { %s1921_s18 = scalar_lea.vmem %s2566_s0, %s1781_s29  ;;  %671 = vperm.xlu1 %1794, %v629_v15   ;;  %666 = vperm.xlu0 %1793, %v628_v16  }
  0x11   : > { %v415_v6 = vld [vmem:[%s1921_s18] sm:$0xff]  ;;  %v416_v7 = vld [vmem:[%s1921_s18 + $0x8] sm:$0xff]  ;;  %v417_v8 = vld [vmem:[%s1921_s18 + $0x10] sm:$0xff]  ;;  %1758 = vmatpush3.bf16.msra.mxu1 %v1797_v54 }
  0x12   : > { %v435_v9 = vpack.c.bf16 %v416_v7, %v415_v6  ;;  %v418_v10 = vld [vmem:[%s1921_s18 + $0x18] sm:$0xff]  ;;  %v419_v11 = vld [vmem:[%s1921_s18 + $0x20] sm:$0xff]  ;;  %v420_v12 = vld [vmem:[%s1921_s18 + $0x28] sm:$0xff]  ;;  %1763 = vmatprep.subr.bf16.mxu1 %v1825_v53  ;;  %v2030_v6 = vrot.slane %v764_v62, %v781_v59  ;;  %v2032_v7 = vrot.slane %v764_v62, %v858_v60 }
  0x13   : > { %v436_v13 = vpack.c.bf16 %v418_v10, %v417_v8  ;;  %v437_v14 = vpack.c.bf16 %v420_v12, %v419_v11  ;;  %v421_v17 = vld [vmem:[%s1921_s18 + $0x30] sm:$0xff]  ;;  %v422_v18 = vld [vmem:[%s1921_s18 + $0x38] sm:$0xff]  ;;  %v423_v19 = vld [vmem:[%s1921_s18 + $0x40] sm:$0xff]  ;;  %v2037_v11 = vrot.slane %v765_v1, %v781_v59  ;;  %v2039_v12 = vrot.slane %v765_v1, %v858_v60 }
  0x14   : > { %1735 = vmatprep.mubr.msk.bf16.mxu0 %vm460_vm0, %v435_v9  ;;  %v424_v20 = vld [vmem:[%s1921_s18 + $0x48] sm:$0xff]  ;;  %v438_v23 = vpack.c.bf16 %v422_v18, %v421_v17  ;;  %681 = vperm.xlu1 %1794, %v631_v21   ;;  %v425_v27 = vld [vmem:[%s1921_s18 + $0x50] sm:$0xff]  ;;  %v426_v28 = vld [vmem:[%s1921_s18 + $0x58] sm:$0xff]  ;;  %v2044_v17 = vrot.slane %v765_v1, %v2017_v58 }
  0x15   : > { %1736 = vmatmul.mubr.msk.bf16.vlgmr.msra.gmra.mrb[0].mxu0 %vm460_vm0, %v436_v13  ;;  %v439_v24 = vpack.c.bf16 %v424_v20, %v423_v19  ;;  %676 = vperm.xlu0 %1793, %v630_v22   ;;  %v427_v29 = vld [vmem:[%s1921_s18 + $0x60] sm:$0xff]  ;;  %v428_v30 = vld [vmem:[%s1921_s18 + $0x68] sm:$0xff]  ;;  %v440_v33 = vpack.c.bf16 %v426_v28, %v425_v27  ;;  %v429_v37 = vld [vmem:[%s1921_s18 + $0x70] sm:$0xff] }
  0x16   : > { %1739 = vmatprep.mubr.msk.bf16.mxu0 %vm460_vm0, %v437_v14  ;;  %v441_v34 = vpack.c.bf16 %v428_v30, %v427_v29  ;;  %v430_v38 = vld [vmem:[%s1921_s18 + $0x78] sm:$0xff]  ;;  %v431_v39 = vld [vmem:[%s1921_s18 + $0x80] sm:$0xff]  ;;  %v432_v40 = vld [vmem:[%s1921_s18 + $0x88] sm:$0xff] }
  0x17   : > { %v442_v43 = vpack.c.bf16 %v430_v38, %v429_v37  ;;  %v443_v44 = vpack.c.bf16 %v432_v40, %v431_v39  ;;  %v433_v47 = vld [vmem:[%s1921_s18 + $0x90] sm:$0xff]  ;;  %v434_v48 = vld [vmem:[%s1921_s18 + $0x98] sm:$0xff]  ;;  %v766_v9 = vld [vmem:[%s2570_s4 + $0x8] sm:$0x7] }
  0x18   : > { %691 = vperm.xlu1 %1794, %v633_v25   ;;  %v444_v51 = vpack.c.bf16 %v434_v48, %v433_v47  ;;  %v2046_v21 = vrot.slane %v766_v9, %v781_v59  ;;  %v2048_v25 = vrot.slane %v766_v9, %v858_v60 }
  0x19   : > { %686 = vperm.xlu0 %1793, %v632_v26   ;;  %v2051_v26 = vrot.slane %v766_v9, %v2017_v58 }
  0x1c   : > { %701 = vperm.xlu1 %1794, %v635_v31  }
  0x1d   : > { %1740 = vmatmul.mubr.msk.bf16.gmra.mrb[4].mxu0 %vm460_vm0, %v438_v23  ;;  %696 = vperm.xlu0 %1793, %v634_v32  }
  0x1e   : > { %1743 = vmatprep.mubr.msk.bf16.mxu0 %vm460_vm0, %v439_v24 }
  0x20   : > { %711 = vperm.xlu1 %1794, %v637_v35  }
  0x21   : > { %706 = vperm.xlu0 %1793, %v636_v36  }
  0x24   : > { %721 = vperm.xlu1 %1794, %v639_v41  }
  0x25   : > { %1744 = vmatmul.mubr.msk.bf16.gmra.mrb[8].mxu0 %vm460_vm0, %v440_v33  ;;  %716 = vperm.xlu0 %1793, %v638_v42  }
  0x26   : > { %1747 = vmatprep.mubr.msk.bf16.mxu0 %vm460_vm0, %v441_v34 }
  0x28   : > { %731 = vperm.xlu1 %1794, %v641_v45  }
  0x29   : > { %726 = vperm.xlu0 %1793, %v640_v46  }
  0x2c   : > { %741 = vperm.xlu1 %1794, %v643_v49  }
  0x2d   : > { %1748 = vmatmul.mubr.msk.bf16.gmra.mrb[12].mxu0 %vm460_vm0, %v442_v43  ;;  %736 = vperm.xlu0 %1793, %v642_v50  }
  0x2e   : > { %1751 = vmatprep.mubr.msk.bf16.mxu0 %vm460_vm0, %v443_v44 }
  0x35   : > { %1752 = vmatmul.mubr.msk.bf16.gmra.mrb[16].mxu0 %vm460_vm0, %v444_v51 }
  0x87   : > { %v647_v61 = vpop.permute.xlu0 %646  ;;  %v657_v63 = vpop.permute.xlu1 %656 }
  0x8b   : > { %v652_v18 = vpop.permute.xlu0 %651  ;;  %v662_v22 = vpop.permute.xlu1 %661 }
  0x8f   : > { %v667_v46 = vpop.permute.xlu0 %666  ;;  %v2064_v52 = vpop.permute.xlu1 %671 }
  0xe8   : > { %v1737_v0 = vpop.f32.mrb[0].mxu0 }
  0xe9   : > { %v534_v2 = vadd.f32 %v1737_v0, %v2015_v57  ;;  %v525_v3 = vpop.f32.mrb[1].mxu0 }
  0xea   : > { %v526_v4 = vadd.f32 %v2015_v57, %v525_v3  ;;  %v1738_v8 = vpop.f32.mrb[2].mxu0 }
  0xeb   : > { %v606_v10 = vmax.f32 %v534_v2, 0.0  ;;  %v537_v13 = vadd.f32 %v1738_v8, %v2015_v57  ;;  %v528_v14 = vpop.f32.mrb[3].mxu0 }
  0xec   : > { %v604_v15 = vmax.f32 %v526_v4, 0.0  ;;  %v529_v16 = vadd.f32 %v2015_v57, %v528_v14 }
  0xed   : > { %v746_v19 = vmul.f32 %v657_v63, %v606_v10  ;;  %v607_v20 = vmax.f32 %v537_v13, 0.0 }
  0xee   : > { %v744_v23 = vmul.f32 %v647_v61, %v604_v15  ;;  %v605_v24 = vmax.f32 %v529_v16, 0.0 }
  0xef   : > { %v747_v27 = vmul.f32 %v662_v22, %v607_v20  ;;  %v772_v28 = vmul.f32 %v2028_v5, %v746_v19  ;;  %v785_v29 = vmul.f32 %v2030_v6, %v746_v19  ;;  %v862_v30 = vmul.f32 %v2032_v7, %v746_v19 }
  0xf0   : > { %v771_v31 = vmul.f32 %v2028_v5, %v744_v23  ;;  %v783_v32 = vmul.f32 %v2030_v6, %v744_v23  ;;  %v860_v33 = vmul.f32 %v2032_v7, %v744_v23  ;;  %v1033_v34 = vmul.f32 %v2039_v12, %v746_v19  ;;  %v1741_v35 = vpop.f32.mrb[4].mxu0 }
  0xf1   : > { %v786_v36 = vmul.f32 %v2030_v6, %v747_v27  ;;  %v819_v37 = vrot.slane %v785_v29, 1  ;;  %v863_v38 = vmul.f32 %v2032_v7, %v747_v27  ;;  %v896_v39 = vrot.slane %v862_v30, 2  ;;  %v541_v40 = vpop.f32.mrb[5].mxu0 }
  0xf2   : > { %v816_v41 = vrot.slane %v783_v32, 1  ;;  %v893_v42 = vrot.slane %v860_v33, 2  ;;  %v958_v43 = vmul.f32 %v2037_v11, %v747_v27  ;;  %v1034_v44 = vmul.f32 %v2039_v12, %v747_v27  ;;  %v1742_v45 = vpop.f32.mrb[6].mxu0 }
  0xf3   : > { %v820_v47 = vrot.slane %v786_v36, 1  ;;  %v897_v48 = vrot.slane %v863_v38, 2  ;;  %v1065_v49 = vrot.slane %v1033_v34, 2  ;;  %v745_v50 = vmul.f32 %v652_v18, %v605_v24  ;;  %v544_v51 = vpop.f32.mrb[7].mxu0 }
  0xf4   : > { %v990_v54 = vrot.slane %v958_v43, 1  ;;  %v1066_v55 = vrot.slane %v1034_v44, 2  ;;  %v937_v56 = vmul.f32 %v2044_v17, %v746_v19  ;;  %v957_v59 = vmul.f32 %v2037_v11, %v746_v19  ;;  %v677_v19 = vpop.permute.xlu0 %676 }
  0xf5   : > { %v821_v60 = vsel %vm815_vm2, %v819_v37, %v820_v47  ;;  %v898_v61 = vsel %vm892_vm3, %v896_v39, %v897_v48  ;;  %v784_v62 = vmul.f32 %v2030_v6, %v745_v50  ;;  %v861_v63 = vmul.f32 %v2032_v7, %v745_v50 }
  0xf6   : > { %v849_v0 = vadd.f32 %v821_v60, %v772_v28  ;;  %v1067_v1 = vsel %vm892_vm3, %v1065_v49, %v1066_v55  ;;  %v989_v2 = vrot.slane %v957_v59, 1  ;;  %v550_v3 = vadd.f32 %v1741_v35, %v2015_v57  ;;  %v682_v28 = vpop.permute.xlu1 %681 }
  0xf7   : > { %v817_v4 = vrot.slane %v784_v62, 1  ;;  %v894_v8 = vrot.slane %v861_v63, 2  ;;  %v542_v9 = vadd.f32 %v2015_v57, %v541_v40  ;;  %v553_v10 = vadd.f32 %v1742_v45, %v2015_v57 }
  0xf8   : > { %v2076_v13 = vadd.f32 %v898_v61, %v849_v0  ;;  %v991_v14 = vsel %vm815_vm2, %v989_v2, %v990_v54  ;;  %v610_v15 = vmax.f32 %v550_v3, 0.0  ;;  %v545_v16 = vadd.f32 %v2015_v57, %v544_v51  ;;  %v1745_v18 = vpop.f32.mrb[8].mxu0 }
  0xf9   : > { %v818_v20 = vsel %vm815_vm2, %v816_v41, %v817_v4  ;;  %v895_v22 = vsel %vm892_vm3, %v893_v42, %v894_v8  ;;  %v608_v23 = vmax.f32 %v542_v9, 0.0  ;;  %v611_v24 = vmax.f32 %v553_v10, 0.0  ;;  %v557_v27 = vpop.f32.mrb[9].mxu0 }
  0xfa   : > { %v848_v29 = vadd.f32 %v818_v20, %v771_v31  ;;  %v2082_v30 = vmul.f32 %v677_v19, %v610_v15  ;;  %v609_v32 = vmax.f32 %v545_v16, 0.0  ;;  %v2085_v33 = vadd.f32 %v1745_v18, %v2015_v57  ;;  %v1746_v34 = vpop.f32.mrb[10].mxu0 }
  0xfb   : > { %v2087_v35 = vmul.f32 %v667_v46, %v608_v23  ;;  %v751_v36 = vmul.f32 %v682_v28, %v611_v24  ;;  %v2090_v37 = vadd.f32 %v2015_v57, %v557_v27  ;;  %v2093_v38 = vadd.f32 %v1746_v34, %v2015_v57  ;;  %v2095_v39 = vpop.f32.mrb[11].mxu0 }
  0xfc   : > { %v925_v40 = vadd.f32 %v895_v22, %v848_v29  ;;  %v774_v31 = vmul.f32 %v2028_v5, %v2082_v30  ;;  %v789_v41 = vmul.f32 %v2030_v6, %v2082_v30  ;;  %v866_v42 = vmul.f32 %v2032_v7, %v2082_v30 }
  0xfd   : > { %v790_v43 = vmul.f32 %v2030_v6, %v751_v36  ;;  %v867_v44 = vmul.f32 %v2032_v7, %v751_v36  ;;  %v961_v45 = vmul.f32 %v2037_v11, %v2082_v30  ;;  %v962_v46 = vmul.f32 %v2037_v11, %v751_v36 }
  0xfe   : > { %v945_v47 = vadd.f32 %v937_v56, %v925_v40  ;;  %v825_v48 = vrot.slane %v789_v41, 1  ;;  %v902_v49 = vrot.slane %v866_v42, 2  ;;  %v1037_v50 = vmul.f32 %v2039_v12, %v2082_v30 }
  0xff   : > { %v826_v51 = vrot.slane %v790_v43, 1  ;;  %v903_v54 = vrot.slane %v867_v44, 2  ;;  %v995_v55 = vrot.slane %v961_v45, 1  ;;  %v996_v59 = vrot.slane %v962_v46, 1 }
 0x100   : > { %v1021_v60 = vadd.f32 %v991_v14, %v945_v47  ;;  %v1038_v61 = vmul.f32 %v2039_v12, %v751_v36  ;;  %v1071_v62 = vrot.slane %v1037_v50, 2  ;;  %v1131_v63 = vmul.f32 %v2046_v21, %v2082_v30  ;;  %v2113_v0 = vpop.f32.mrb[12].mxu0 }
 0x101   : > { %v827_v56 = vsel %vm815_vm2, %v825_v48, %v826_v51  ;;  %v904_v2 = vsel %vm892_vm3, %v902_v49, %v903_v54  ;;  %v2118_v3 = vsel %vm815_vm2, %v995_v55, %v996_v59  ;;  %v1132_v4 = vmul.f32 %v2046_v21, %v751_v36  ;;  %v2121_v8 = vpop.f32.mrb[13].mxu0  ;;  %v687_v51 = vpop.permute.xlu0 %686 }
 0x102   : > { %v1097_v9 = vadd.f32 %v1067_v1, %v1021_v60  ;;  %v851_v10 = vadd.f32 %v827_v56, %v774_v31  ;;  %v1072_v14 = vrot.slane %v1038_v61, 2  ;;  %v1164_v15 = vrot.slane %v1131_v63, 1  ;;  %v2123_v16 = vpop.f32.mrb[14].mxu0 }
 0x103   : > { %v1165_v18 = vrot.slane %v1132_v4, 1  ;;  %v1207_v19 = vmul.f32 %v2048_v25, %v2082_v30  ;;  %v1208_v20 = vmul.f32 %v2048_v25, %v751_v36  ;;  %v749_v22 = vmul.f32 %v2064_v52, %v609_v32  ;;  %v2129_v23 = vpop.f32.mrb[15].mxu0 }
 0x104   : > { %v2131_v24 = vadd.f32 %v904_v2, %v851_v10  ;;  %v2134_v27 = vsel %vm892_vm3, %v1071_v62, %v1072_v14  ;;  %v773_v1 = vmul.f32 %v2028_v5, %v2087_v35  ;;  %v787_v28 = vmul.f32 %v2030_v6, %v2087_v35  ;;  %v2166_v62 = vpop.permute.xlu1 %691 }
 0x105   : > { %v2141_v29 = vsel %vm815_vm2, %v1164_v15, %v1165_v18  ;;  %v1240_v34 = vrot.slane %v1207_v19, 2  ;;  %v1241_v36 = vrot.slane %v1208_v20, 2  ;;  %v788_v52 = vmul.f32 %v2030_v6, %v749_v22 }
 0x106   : > { %v822_v32 = vrot.slane %v787_v28, 1  ;;  %v864_v40 = vmul.f32 %v2032_v7, %v2087_v35  ;;  %v865_v31 = vmul.f32 %v2032_v7, %v749_v22  ;;  %v938_v41 = vmul.f32 %v2044_v17, %v2087_v35 }
 0x107   : > { %v2150_v42 = vsel %vm892_vm3, %v1240_v34, %v1241_v36  ;;  %v823_v43 = vrot.slane %v788_v52, 1  ;;  %v939_v44 = vmul.f32 %v2044_v17, %v2082_v30  ;;  %v959_v45 = vmul.f32 %v2037_v11, %v2087_v35 }
 0x108   : > { %v899_v46 = vrot.slane %v864_v40, 2  ;;  %v900_v47 = vrot.slane %v865_v31, 2  ;;  %v946_v48 = vadd.f32 %v938_v41, %v2076_v13  ;;  %v960_v49 = vmul.f32 %v2037_v11, %v749_v22  ;;  %v2158_v50 = vpop.f32.mrb[16].mxu0 }
 0x109   : > { %v824_v54 = vsel %vm815_vm2, %v822_v32, %v823_v43  ;;  %v992_v55 = vrot.slane %v959_v45, 1  ;;  %v1035_v59 = vmul.f32 %v2039_v12, %v2087_v35  ;;  %v1036_v60 = vmul.f32 %v2039_v12, %v749_v22  ;;  %v2164_v61 = vpop.f32.mrb[17].mxu0  ;;  %v697_v45 = vpop.permute.xlu0 %696 }
 0x10a   : > { %v850_v63 = vadd.f32 %v824_v54, %v773_v1  ;;  %v901_v13 = vsel %vm892_vm3, %v899_v46, %v900_v47  ;;  %v993_v56 = vrot.slane %v960_v49, 1  ;;  %v1109_v2 = vmul.f32 %v2051_v26, %v2087_v35  ;;  %v2171_v4 = vpop.f32.mrb[18].mxu0 }
 0x10b   : > { %v1068_v10 = vrot.slane %v1035_v59, 2  ;;  %v1069_v14 = vrot.slane %v1036_v60, 2  ;;  %v1110_v15 = vmul.f32 %v2051_v26, %v2082_v30  ;;  %v1129_v18 = vmul.f32 %v2046_v21, %v2087_v35  ;;  %v2177_v19 = vpop.f32.mrb[19].mxu0 }
 0x10c   : > { %v927_v20 = vadd.f32 %v901_v13, %v850_v63  ;;  %v994_v1 = vsel %vm815_vm2, %v992_v55, %v993_v56  ;;  %v1117_v28 = vadd.f32 %v1109_v2, %v1097_v9  ;;  %v1130_v34 = vmul.f32 %v2046_v21, %v749_v22 }
 0x10d   : > { %v1022_v36 = vadd.f32 %v994_v1, %v946_v48  ;;  %v1070_v52 = vsel %vm892_vm3, %v1068_v10, %v1069_v14  ;;  %v1161_v32 = vrot.slane %v1129_v18, 1  ;;  %v1205_v40 = vmul.f32 %v2048_v25, %v2087_v35  ;;  %v702_v48 = vpop.permute.xlu1 %701 }
 0x10e   : > { %v947_v31 = vadd.f32 %v939_v44, %v927_v20  ;;  %v1162_v30 = vrot.slane %v1130_v34, 1  ;;  %v1206_v41 = vmul.f32 %v2048_v25, %v749_v22  ;;  %v614_v43 = vmax.f32 %v2085_v33, 0.0 }
 0x10f   : > { %v1098_v46 = vadd.f32 %v1070_v52, %v1022_v36  ;;  %v1237_v47 = vrot.slane %v1205_v40, 2  ;;  %v612_v9 = vmax.f32 %v2090_v37, 0.0  ;;  %v615_v49 = vmax.f32 %v2093_v38, 0.0  ;;  %v2198_v37 = vld [vmem:[%s2571_s5] ss:$0 sm:$0xff] }
 0x110   : > { %v1023_v54 = vadd.f32 %v2118_v3, %v947_v31  ;;  %v1163_v55 = vsel %vm815_vm2, %v1161_v32, %v1162_v30  ;;  %v1238_v59 = vrot.slane %v1206_v41, 2  ;;  %v2190_v35 = vmul.f32 %v697_v45, %v614_v43 }
 0x111   : > { %v1118_v44 = vadd.f32 %v1110_v15, %v1098_v46  ;;  %v1193_v60 = vadd.f32 %v1163_v55, %v1117_v28  ;;  %v2192_v22 = vmul.f32 %v687_v51, %v612_v9  ;;  %v755_v33 = vmul.f32 %v702_v48, %v615_v49 }
 0x112   : > { %v1239_v63 = vsel %vm892_vm3, %v1237_v47, %v1238_v59  ;;  %v776_v38 = vmul.f32 %v2028_v5, %v2190_v35  ;;  %v793_v3 = vmul.f32 %v2030_v6, %v2190_v35  ;;  %v870_v13 = vmul.f32 %v2032_v7, %v2190_v35 }
 0x113   : > { %v2207_v51 = vadd.f32 %v2141_v29, %v1118_v44  ;;  %v1269_v56 = vadd.f32 %v1239_v63, %v1193_v60  ;;  %v794_v2 = vmul.f32 %v2030_v6, %v755_v33  ;;  %v871_v10 = vmul.f32 %v2032_v7, %v755_v33 }
 0x114   : > { %v831_v14 = vrot.slane %v793_v3, 1  ;;  %v908_v15 = vrot.slane %v870_v13, 2  ;;  %v965_v18 = vmul.f32 %v2037_v11, %v2190_v35  ;;  %v966_v20 = vmul.f32 %v2037_v11, %v755_v33 }
 0x115   : > { %v2215_v1 = vadd.f32 %v2198_v37, %v1269_v56  ;;  %v832_v28 = vrot.slane %v794_v2, 1  ;;  %v909_v34 = vrot.slane %v871_v10, 2  ;;  %v1041_v29 = vmul.f32 %v2039_v12, %v2190_v35 }
 0x116   : > { %v1001_v36 = vrot.slane %v965_v18, 1  ;;  %v1002_v52 = vrot.slane %v966_v20, 1  ;;  %v1042_v32 = vmul.f32 %v2039_v12, %v755_v33  ;;  %v1135_v40 = vmul.f32 %v2046_v21, %v2190_v35 }
 0x117   : > { %v833_v31 = vsel %vm815_vm2, %v831_v14, %v832_v28  ;;  %v910_v30 = vsel %vm892_vm3, %v908_v15, %v909_v34  ;;  %v1077_v41 = vrot.slane %v1041_v29, 2  ;;  %v1136_v43 = vmul.f32 %v2046_v21, %v755_v33 }
 0x118   : > { %v853_v45 = vadd.f32 %v833_v31, %v776_v38  ;;  %v2226_v46 = vsel %vm815_vm2, %v1001_v36, %v1002_v52  ;;  %v1078_v47 = vrot.slane %v1042_v32, 2  ;;  %v1170_v9 = vrot.slane %v1135_v40, 1 }
 0x119   : > { %v1171_v49 = vrot.slane %v1136_v43, 1  ;;  %v1211_v48 = vmul.f32 %v2048_v25, %v2190_v35  ;;  %v1212_v55 = vmul.f32 %v2048_v25, %v755_v33  ;;  %v561_v59 = vadd.f32 %v2015_v57, %v2095_v39 }
 0x11a   : > { %v2233_v44 = vadd.f32 %v910_v30, %v853_v45  ;;  %v2236_v60 = vsel %vm892_vm3, %v1077_v41, %v1078_v47  ;;  %v775_v63 = vmul.f32 %v2028_v5, %v2192_v22  ;;  %v791_v38 = vmul.f32 %v2030_v6, %v2192_v22 }
 0x11b   : > { %v2243_v3 = vsel %vm815_vm2, %v1170_v9, %v1171_v49  ;;  %v1246_v13 = vrot.slane %v1211_v48, 2  ;;  %v1247_v56 = vrot.slane %v1212_v55, 2  ;;  %v613_v33 = vmax.f32 %v561_v59, 0.0  ;;  %v707_v9 = vpop.permute.xlu0 %706 }
 0x11c   : > { %v828_v2 = vrot.slane %v791_v38, 1  ;;  %v868_v39 = vmul.f32 %v2032_v7, %v2192_v22  ;;  %v940_v10 = vmul.f32 %v2044_v17, %v2192_v22  ;;  %v941_v14 = vmul.f32 %v2044_v17, %v2190_v35  ;;  %v712_v38 = vpop.permute.xlu1 %711 }
 0x11d   : > { %v2252_v15 = vsel %vm892_vm3, %v1246_v13, %v1247_v56  ;;  %v753_v18 = vmul.f32 %v2166_v62, %v613_v33  ;;  %v963_v20 = vmul.f32 %v2037_v11, %v2192_v22  ;;  %v1039_v28 = vmul.f32 %v2039_v12, %v2192_v22 }
 0x11e   : > { %v905_v34 = vrot.slane %v868_v39, 2  ;;  %v948_v29 = vadd.f32 %v940_v10, %v2131_v24  ;;  %v1099_v36 = vadd.f32 %v2134_v27, %v1023_v54  ;;  %v1111_v52 = vmul.f32 %v2051_v26, %v2192_v22 }
 0x11f   : > { %v792_v32 = vmul.f32 %v2030_v6, %v753_v18  ;;  %v869_v40 = vmul.f32 %v2032_v7, %v753_v18  ;;  %v964_v62 = vmul.f32 %v2037_v11, %v753_v18  ;;  %v998_v31 = vrot.slane %v963_v20, 1 }
 0x120   : > { %v1040_v30 = vmul.f32 %v2039_v12, %v753_v18  ;;  %v1074_v41 = vrot.slane %v1039_v28, 2  ;;  %v1112_v43 = vmul.f32 %v2051_v26, %v2190_v35  ;;  %v1119_v45 = vadd.f32 %v1111_v52, %v1099_v36 }
 0x121   : > { %v829_v24 = vrot.slane %v792_v32, 1  ;;  %v906_v47 = vrot.slane %v869_v40, 2  ;;  %v999_v27 = vrot.slane %v964_v62, 1  ;;  %v1133_v54 = vmul.f32 %v2046_v21, %v2192_v22 }
 0x122   : > { %v1075_v49 = vrot.slane %v1040_v30, 2  ;;  %v1134_v48 = vmul.f32 %v2046_v21, %v753_v18  ;;  %v1209_v55 = vmul.f32 %v2048_v25, %v2192_v22  ;;  %v1210_v59 = vmul.f32 %v2048_v25, %v753_v18  ;;  %v717_v30 = vpop.permute.xlu0 %716 }
 0x123   : > { %v830_v13 = vsel %vm815_vm2, %v828_v2, %v829_v24  ;;  %v907_v35 = vsel %vm892_vm3, %v905_v34, %v906_v47  ;;  %v1000_v56 = vsel %vm815_vm2, %v998_v31, %v999_v27  ;;  %v1167_v33 = vrot.slane %v1133_v54, 1  ;;  %v722_v47 = vpop.permute.xlu1 %721 }
 0x124   : > { %v852_v39 = vadd.f32 %v830_v13, %v775_v63  ;;  %v1024_v10 = vadd.f32 %v1000_v56, %v948_v29  ;;  %v1076_v20 = vsel %vm892_vm3, %v1074_v41, %v1075_v49  ;;  %v1168_v28 = vrot.slane %v1134_v48, 1 }
 0x125   : > { %v1243_v36 = vrot.slane %v1209_v55, 2  ;;  %v1244_v52 = vrot.slane %v1210_v59, 2  ;;  %v582_v22 = vadd.f32 %v2113_v0, %v2015_v57  ;;  %v574_v18 = vadd.f32 %v2015_v57, %v2121_v8 }
 0x126   : > { %v929_v32 = vadd.f32 %v907_v35, %v852_v39  ;;  %v1100_v2 = vadd.f32 %v1076_v20, %v1024_v10  ;;  %v1169_v34 = vsel %vm815_vm2, %v1167_v33, %v1168_v28  ;;  %v585_v40 = vadd.f32 %v2123_v16, %v2015_v57 }
 0x127   : > { %v1195_v63 = vadd.f32 %v1169_v34, %v1119_v45  ;;  %v1245_v29 = vsel %vm892_vm3, %v1243_v36, %v1244_v52  ;;  %v618_v62 = vmax.f32 %v582_v22, 0.0  ;;  %v616_v31 = vmax.f32 %v574_v18, 0.0 }
 0x128   : > { %v949_v41 = vadd.f32 %v941_v14, %v929_v32  ;;  %v2287_v24 = vadd.f32 %v1112_v43, %v1100_v2  ;;  %v619_v0 = vmax.f32 %v585_v40, 0.0  ;;  %v577_v8 = vadd.f32 %v2015_v57, %v2129_v23 }
 0x129   : > { %v2291_v27 = vadd.f32 %v1245_v29, %v1195_v63  ;;  %v2293_v54 = vmul.f32 %v717_v30, %v618_v62  ;;  %v756_v49 = vmul.f32 %v707_v9, %v616_v31  ;;  %v2297_v16 = vadd.f32 %v2158_v50, %v2015_v57  ;;  %v727_v30 = vpop.permute.xlu0 %726 }
 0x12a   : > { %v1025_v45 = vadd.f32 %v2226_v46, %v949_v41  ;;  %v759_v48 = vmul.f32 %v722_v47, %v619_v0  ;;  %v617_v14 = vmax.f32 %v577_v8, 0.0  ;;  %v2302_v43 = vadd.f32 %v2015_v57, %v2164_v61 }
 0x12b   : > { %v1139_v23 = vmul.f32 %v2046_v21, %v2293_v54  ;;  %v777_v55 = vmul.f32 %v2028_v5, %v756_v49  ;;  %v795_v59 = vmul.f32 %v2030_v6, %v756_v49  ;;  %v872_v9 = vmul.f32 %v2032_v7, %v756_v49 }
 0x12c   : > { %v2310_v50 = vmul.f32 %v2030_v6, %v759_v48  ;;  %v2313_v46 = vmul.f32 %v2032_v7, %v759_v48  ;;  %v2316_v13 = vmul.f32 %v2037_v11, %v759_v48  ;;  %v2319_v61 = vmul.f32 %v2039_v12, %v759_v48 }
 0x12d   : > { %v1140_v35 = vmul.f32 %v2046_v21, %v759_v48  ;;  %v1176_v56 = vrot.slane %v1139_v23, 1  ;;  %v2323_v33 = vmul.f32 %v2048_v25, %v759_v48  ;;  %v757_v39 = vmul.f32 %v712_v38, %v617_v14 }
 0x12e   : > { %v838_v10 = vrot.slane %v2310_v50, 1  ;;  %v915_v20 = vrot.slane %v2313_v46, 2  ;;  %v1008_v28 = vrot.slane %v2316_v13, 1  ;;  %v1084_v36 = vrot.slane %v2319_v61, 2 }
 0x12f   : > { %v1177_v52 = vrot.slane %v1140_v35, 1  ;;  %v1253_v22 = vrot.slane %v2323_v33, 2  ;;  %v796_v18 = vmul.f32 %v2030_v6, %v757_v39  ;;  %v834_v32 = vrot.slane %v795_v59, 1 }
 0x130   : > { %v873_v2 = vmul.f32 %v2032_v7, %v757_v39  ;;  %v911_v34 = vrot.slane %v872_v9, 2  ;;  %v942_v40 = vmul.f32 %v2044_v17, %v756_v49  ;;  %v967_v38 = vmul.f32 %v2037_v11, %v756_v49 }
 0x131   : > { %v2335_v63 = vsel %vm815_vm2, %v1176_v56, %v1177_v52  ;;  %v835_v29 = vrot.slane %v796_v18, 1  ;;  %v968_v62 = vmul.f32 %v2037_v11, %v757_v39  ;;  %v1043_v31 = vmul.f32 %v2039_v12, %v756_v49  ;;  %v732_v18 = vpop.permute.xlu1 %731 }
 0x132   : > { %v912_v41 = vrot.slane %v873_v2, 2  ;;  %v950_v0 = vadd.f32 %v942_v40, %v2233_v44  ;;  %v1004_v8 = vrot.slane %v967_v38, 1  ;;  %v1044_v47 = vmul.f32 %v2039_v12, %v757_v39 }
 0x133   : > { %v836_v48 = vsel %vm815_vm2, %v834_v32, %v835_v29  ;;  %v1005_v14 = vrot.slane %v968_v62, 1  ;;  %v1080_v23 = vrot.slane %v1043_v31, 2  ;;  %v1101_v59 = vadd.f32 %v2236_v60, %v1025_v45 }
 0x134   : > { %v854_v9 = vadd.f32 %v836_v48, %v777_v55  ;;  %v913_v35 = vsel %vm892_vm3, %v911_v34, %v912_v41  ;;  %v1081_v56 = vrot.slane %v1044_v47, 2  ;;  %v1113_v52 = vmul.f32 %v2051_v26, %v756_v49  ;;  %v737_v41 = vpop.permute.xlu0 %736 }
 0x135   : > { %v1006_v2 = vsel %vm815_vm2, %v1004_v8, %v1005_v14  ;;  %v1137_v44 = vmul.f32 %v2046_v21, %v756_v49  ;;  %v1138_v40 = vmul.f32 %v2046_v21, %v757_v39  ;;  %v1213_v38 = vmul.f32 %v2048_v25, %v756_v49 }
 0x136   : > { %v1026_v32 = vadd.f32 %v1006_v2, %v950_v0  ;;  %v1082_v29 = vsel %vm892_vm3, %v1080_v23, %v1081_v56  ;;  %v1121_v62 = vadd.f32 %v1113_v52, %v1101_v59  ;;  %v1214_v60 = vmul.f32 %v2048_v25, %v757_v39 }
 0x137   : > { %v1173_v45 = vrot.slane %v1137_v44, 1  ;;  %v1174_v55 = vrot.slane %v1138_v40, 1  ;;  %v1249_v34 = vrot.slane %v1213_v38, 2  ;;  %v622_v31 = vmax.f32 %v2297_v16, 0.0 }
 0x138   : > { %v2352_v47 = vadd.f32 %v1082_v29, %v1026_v32  ;;  %v1250_v8 = vrot.slane %v1214_v60, 2  ;;  %v620_v48 = vmax.f32 %v2302_v43, 0.0  ;;  %v601_v49 = vadd.f32 %v2171_v4, %v2015_v57  ;;  %v742_v43 = vpop.permute.xlu1 %741 }
 0x139   : > { %v1175_v0 = vsel %vm815_vm2, %v1173_v45, %v1174_v55  ;;  %v762_v14 = vmul.f32 %v737_v41, %v622_v31  ;;  %v593_v39 = vadd.f32 %v2015_v57, %v2177_v19  ;;  %v778_v23 = vmul.f32 %v2028_v5, %v2293_v54 }
 0x13a   : > { %v2362_v59 = vadd.f32 %v1175_v0, %v1121_v62  ;;  %v2365_v16 = vsel %vm892_vm3, %v1249_v34, %v1250_v8  ;;  %v760_v56 = vmul.f32 %v727_v30, %v620_v48  ;;  %v623_v52 = vmax.f32 %v601_v49, 0.0 }
 0x13b   : > { %v2368_v2 = vmul.f32 %v2051_v26, %v762_v14  ;;  %v1143_v4 = vmul.f32 %v2046_v21, %v762_v14  ;;  %v1219_v44 = vmul.f32 %v2048_v25, %v762_v14  ;;  %v621_v40 = vmax.f32 %v593_v39, 0.0 }
 0x13c   : > { %v763_v57 = vmul.f32 %v742_v43, %v623_v52  ;;  %v797_v5 = vmul.f32 %v2030_v6, %v2293_v54  ;;  %v874_v19 = vmul.f32 %v2032_v7, %v2293_v54  ;;  %v931_v38 = vadd.f32 %v913_v35, %v854_v9 }
 0x13d   : > { %v1182_v32 = vrot.slane %v1143_v4, 1  ;;  %v1258_v30 = vrot.slane %v1219_v44, 2  ;;  %v761_v29 = vmul.f32 %v732_v18, %v621_v40  ;;  %v943_v62 = vmul.f32 %v2044_v17, %v2293_v54 }
 0x13e   : > { %v1144_v60 = vmul.f32 %v2046_v21, %v763_v57  ;;  %v1220_v45 = vmul.f32 %v2048_v25, %v763_v57  ;;  %v837_v55 = vrot.slane %v797_v5, 1  ;;  %v914_v34 = vrot.slane %v874_v19, 2 }
 0x13f   : > { %v944_v31 = vmul.f32 %v2044_v17, %v760_v56  ;;  %v951_v41 = vadd.f32 %v943_v62, %v931_v38  ;;  %v969_v6 = vmul.f32 %v2037_v11, %v2293_v54  ;;  %v971_v7 = vmul.f32 %v2037_v11, %v760_v56 }
 0x140   : > { %v1183_v9 = vrot.slane %v1144_v60, 1  ;;  %v1259_v35 = vrot.slane %v1220_v45, 2  ;;  %v839_v18 = vsel %vm815_vm2, %v837_v55, %v838_v10  ;;  %v916_v8 = vsel %vm892_vm3, %v914_v34, %v915_v20 }
 0x141   : > { %v855_v48 = vadd.f32 %v839_v18, %v778_v23  ;;  %v972_v49 = vmul.f32 %v2037_v11, %v761_v29  ;;  %v1007_v17 = vrot.slane %v969_v6, 1  ;;  %v1010_v0 = vrot.slane %v971_v7, 1 }
 0x142   : > { %v1184_v14 = vsel %vm815_vm2, %v1182_v32, %v1183_v9  ;;  %v1260_v39 = vsel %vm892_vm3, %v1258_v30, %v1259_v35  ;;  %v1045_v52 = vmul.f32 %v2039_v12, %v2293_v54  ;;  %v1047_v50 = vmul.f32 %v2039_v12, %v760_v56 }
 0x143   : > { %v932_v43 = vadd.f32 %v916_v8, %v855_v48  ;;  %v1009_v46 = vsel %vm815_vm2, %v1007_v17, %v1008_v28  ;;  %v1011_v10 = vrot.slane %v972_v49, 1  ;;  %v1048_v20 = vmul.f32 %v2039_v12, %v761_v29 }
 0x144   : > { %v1027_v11 = vadd.f32 %v1009_v46, %v951_v41  ;;  %v1083_v23 = vrot.slane %v1045_v52, 2  ;;  %v1086_v4 = vrot.slane %v1047_v50, 2  ;;  %v1115_v44 = vmul.f32 %v2051_v26, %v760_v56 }
 0x145   : > { %v952_v40 = vadd.f32 %v944_v31, %v932_v43  ;;  %v1012_v57 = vsel %vm815_vm2, %v1010_v0, %v1011_v10  ;;  %v1087_v5 = vrot.slane %v1048_v20, 2  ;;  %v1141_v19 = vmul.f32 %v2046_v21, %v760_v56 }
 0x146   : > { %v1085_v13 = vsel %vm892_vm3, %v1083_v23, %v1084_v36  ;;  %v1142_v28 = vmul.f32 %v2046_v21, %v761_v29  ;;  %v1217_v12 = vmul.f32 %v2048_v25, %v760_v56  ;;  %v1218_v38 = vmul.f32 %v2048_v25, %v761_v29 }
 0x147   : > { %v1028_v32 = vadd.f32 %v1012_v57, %v952_v40  ;;  %v1088_v30 = vsel %vm892_vm3, %v1086_v4, %v1087_v5  ;;  %v1103_v62 = vadd.f32 %v1085_v13, %v1027_v11  ;;  %v1179_v60 = vrot.slane %v1141_v19, 1 }
 0x148   : > { %v1180_v45 = vrot.slane %v1142_v28, 1  ;;  %v1255_v55 = vrot.slane %v1217_v12, 2  ;;  %v1256_v34 = vrot.slane %v1218_v38, 2  ;;  %v1114_v31 = vmul.f32 %v2051_v26, %v2293_v54 }
 0x149   : > { %v1104_v61 = vadd.f32 %v1088_v30, %v1028_v32  ;;  %v1123_v41 = vadd.f32 %v1115_v44, %v1103_v62  ;;  %v1196_v21 = vadd.f32 %v2243_v3, %v2287_v24  ;;  %v1215_v36 = vmul.f32 %v2048_v25, %v2293_v54  ;;  %v1387_v62 = vld [vmem:[%s2574_s8] sm:$0xf] }
 0x14a   : > { %v1181_v56 = vsel %vm815_vm2, %v1179_v60, %v1180_v45  ;;  %v1257_v29 = vsel %vm892_vm3, %v1255_v55, %v1256_v34  ;;  %v1122_v6 = vadd.f32 %v1114_v31, %v2352_v47  ;;  %v1270_v7 = vadd.f32 %v2150_v42, %v2207_v51  ;;  %v1329_v34 = vld [vmem:[%s2573_s7] sm:$0x1] }
 0x14b   : > { %v1124_v9 = vadd.f32 %v2368_v2, %v1104_v61  ;;  %v1199_v26 = vadd.f32 %v1181_v56, %v1123_v41  ;;  %v1252_v35 = vrot.slane %v1215_v36, 2  ;;  %v1272_v18 = vadd.f32 %v2252_v15, %v1196_v21 }
 0x14c   : > { %v1198_v3 = vadd.f32 %v2335_v63, %v1122_v6  ;;  %v1273_v25 = vadd.f32 %v2365_v16, %v2362_v59  ;;  %v2427_v24 = vadd.f32 %v2198_v37, %v1270_v7  ;;  %v2431_v54 = vadd.f32 %v2198_v37, %v2291_v27  ;;  %v1798_v6 = vld [vmem:[%s2576_s10] sm:$0xff]  }
 0x14d   : > { %v1200_v47 = vadd.f32 %v1184_v14, %v1124_v9  ;;  %v1275_v42 = vadd.f32 %v1257_v29, %v1199_v26  ;;  %v1254_v51 = vsel %vm892_vm3, %v1252_v35, %v1253_v22  ;;  %v2437_v15 = vadd.f32 %v2198_v37, %v1272_v18  ;;  %v1388_v7 = vld [vmem:[%s2575_s9] sm:$0x1] }
 0x14e   : > { %v1274_v63 = vadd.f32 %v1254_v51, %v1198_v3  ;;  %v2440_v2 = vadd.f32 %v2198_v37, %v1273_v25  ;;  %v1292_v59 = vmax.f32 %v2215_v1, 0.0  ;;  %v1293_v16 = vmax.f32 %v2427_v24, 0.0 }
 0x14f   : > { %v2445_v27 = vadd.f32 %v2198_v37, %v1275_v42  ;;  %v1276_v8 = vadd.f32 %v1260_v39, %v1200_v47  ;;  %v1294_v48 = vmax.f32 %v2431_v54, 0.0  ;;  %v1295_v33 = vmax.f32 %v2437_v15, 0.0 }
 0x150   : > { %v2450_v22 = vadd.f32 %v2198_v37, %v1274_v63  ;;  %v1296_v49 = vmax.f32 %v2440_v2, 0.0  ;;  %v1301_v17 = vsel %vm1300_vm4, %v1292_v59, 0.0  ;;  %v1302_v0 = vsel %vm1300_vm4, %v1293_v16, 0.0 }
 0x151   : > { %v1303_v14 = vadd.f32 %v1302_v0, %v1301_v17  ;;  %v1304_v39 = vsel %vm1300_vm4, %v1294_v48, 0.0  ;;  %v2463_v52 = vadd.f32 %v2198_v37, %v1276_v8  ;;  %v1306_v43 = vsel %vm1300_vm4, %v1295_v33, 0.0 }
 0x152   : > { %v1297_v50 = vmax.f32 %v2450_v22, 0.0  ;;  %v1298_v10 = vmax.f32 %v2445_v27, 0.0  ;;  %v1308_v20 = vsel %vm1300_vm4, %v1296_v49, 0.0  ;;  %v1395_v55 = vsel %vm1393_vm5, %v1387_v62, 0  ;;  %v1701_v27 = vld [vmem:[%s2577_s11] ss:$0 sm:$0xff] }
 0x153   : > { %v1305_v46 = vadd.f32 %v1304_v39, %v1303_v14  ;;  %v1299_v23 = vmax.f32 %v2463_v52, 0.0 }
 0x154   : > { %v1310_v4 = vsel %vm1300_vm4, %v1297_v50, 0.0  ;;  %v1312_v44 = vsel %vm1300_vm4, %v1298_v10, 0.0 }
 0x155   : > { %v1307_v11 = vadd.f32 %v1306_v43, %v1305_v46  ;;  %v1314_v57 = vsel %vm1300_vm4, %v1299_v23, 0.0  ;;  %v1804_v46 = vld [vmem:[%s1921_s18 + $0x40] sm:$0xff] }
 0x157   : > { %v1309_v37 = vadd.f32 %v1308_v20, %v1307_v11  ;;  %v1805_v20 = vld [vmem:[%s1921_s18 + $0x48] sm:$0xff] }
 0x158   : > { %v1583_v11 = vrot.slane %v1805_v20, 1 }
 0x159   : > { %v1311_v40 = vadd.f32 %v1310_v4, %v1309_v37  ;;  %v1807_v37 = vld [vmem:[%s1921_s18 + $0x28] sm:$0xff] }
 0x15b   : > { %v1313_v5 = vadd.f32 %v1312_v44, %v1311_v40  ;;  %v1577_v44 = vrot.slane %v1807_v37, 1 }
 0x15d   : > { %v1315_v19 = vadd.f32 %v1314_v57, %v1313_v5 }
 0x15f   : > { %v1316_v13 = vrot.slane %v1315_v19, 4 }
 0x161   : > { %v1317_v28 = vadd.f32 %v1316_v13, %v1315_v19 }
 0x163   : > { %v1318_v12 = vrot.slane %v1317_v28, 2 }
 0x165   : > { %v1319_v38 = vadd.f32 %v1318_v12, %v1317_v28 }
 0x167   : > { %v1320_v32 = vrot.slane %v1319_v38, 1 }
 0x169   : > { %v1321_v30 = vadd.f32 %v1320_v32, %v1319_v38 }
 0x16b   : > { %v1323_v60 = vmul.f32 0.015625, %v1321_v30 }
 0x16d   : > { %v1324_v45 = vpack.c.bf16 %v1323_v60, %v1323_v60 }
 0x16f   : > { %1760 = vmatmul.mubr.msk.bf16.vlgmr.msra.gmra.mrb[0].mxu1 %vm1300_vm4, %v1324_v45 }
 0x170   : > { %1764 = vmatpush3.bf16.msra.mxu1 %v1395_v55  ;;  %1765 = vmatprep.mubr.msk.bf16.mxu1 %vm1826_vm1, %v1825_v53  ;;  %v1799_v53 = vld [vmem:[%s2576_s10 + $0x8] sm:$0xff]  }
 0x171   : > { %1769 = vmatprep.subr.bf16.mxu1 %v1798_v6 }
 0x242   : > { %v1379_v31 = vpop.f32.mrb[0].mxu1 }
 0x243   : > { %v1380_v61 = vadd.f32 %v1379_v31, %v1329_v34  ;;  %v1761_v41 = vpop.f32.mrb[1].mxu1  ;;  %v1808_v34 = vld [vmem:[%s1921_s18 + $0x70] sm:$0xff] }
 0x244   : > { %v1382_v21 = vpop.f32.mrb[2].mxu1  ;;  %v1591_v31 = vrot.slane %v1808_v34, 1 }
 0x245   : > { %v1385_v36 = vmax.f32 %v1380_v61, 0.0  ;;  %v1762_v56 = vpop.f32.mrb[3].mxu1  ;;  %v1809_v61 = vld [vmem:[%s1921_s18 + $0x78] sm:$0xff] }
 0x246   : > { %v1592_v41 = vrot.slane %v1809_v61, 1 }
 0x247   : > { %v1386_v29 = vpack.c.bf16 %v1385_v36, %v1385_v36  ;;  %v1810_v36 = vld [vmem:[%s1921_s18 + $0x50] sm:$0xff] }
 0x248   : > { %v1585_v56 = vrot.slane %v1810_v36, 1 }
 0x249   : > { %1766 = vmatmul.mubr.msk.bf16.vlgmr.msra.gmra.mrb[4].mxu1 %vm1389_vm6, %v1386_v29  ;;  %v1811_v29 = vld [vmem:[%s1921_s18 + $0x58] sm:$0xff] }
 0x24a   : > { %1770 = vmatpush3.bf16.msra.mxu1 %v1798_v6  ;;  %v1586_v6 = vrot.slane %v1811_v29, 1 }
 0x24b   : > { %1771 = vmatprep.subr.bf16.mxu1 %v1799_v53 }
 0x24e   : > { %1772 = vmatpush3.bf16.msra.mxu1 %v1799_v53 }
 0x31c   : > { %v1431_v9 = vpop.f32.mrb[4].mxu1 }
 0x31d   : > { %v1432_v26 = vadd.f32 %v1431_v9, %v1388_v7  ;;  %v1767_v35 = vpop.f32.mrb[5].mxu1  ;;  %v1812_v7 = vld [vmem:[%s1921_s18 + $0x80] sm:$0xff] }
 0x31e   : > { %v1434_v18 = vpop.f32.mrb[6].mxu1  ;;  %v1594_v9 = vrot.slane %v1812_v7, 1 }
 0x31f   : > { %v1437_v3 = vadd.f32 3.0, %v1432_v26  ;;  %v1768_v25 = vpop.f32.mrb[7].mxu1  ;;  %v1813_v26 = vld [vmem:[%s1921_s18 + $0x88] sm:$0xff]  ;;  %v1814_v18 = vld [vmem:[%s1921_s18 + $0x60] sm:$0xff] }
 0x320   : > { %v1595_v35 = vrot.slane %v1813_v26, 1  ;;  %v1815_v25 = vld [vmem:[%s1921_s18 + $0x68] sm:$0xff] }
 0x321   : > { %v1438_v47 = vmax.f32 %v1437_v3, 0.0  ;;  %v1588_v3 = vrot.slane %v1814_v18, 1 }
 0x323   : > { %v1439_v42 = vmin.f32 %v1438_v47, 6.0  ;;  %v1589_v47 = vrot.slane %v1815_v25, 1 }
 0x325   : > { %v1440_v51 = vmul.f32 0.16666667, %v1439_v42 }
 0x327   : > { %v1444_v63 = vrot.slane %v1440_v51, %v2017_v58  ;;  %v1593_v51 = vsel %vm815_vm2, %v1591_v31, %v1592_v41 }
 0x329   : > { %v1445_v8 = vmul.f32 %v1444_v63, %v1292_v59  ;;  %v1446_v22 = vmul.f32 %v1444_v63, %v1293_v16  ;;  %v1447_v17 = vmul.f32 %v1444_v63, %v1294_v48  ;;  %v1448_v0 = vmul.f32 %v1444_v63, %v1295_v33  ;;  %v1800_v59 = vld [vmem:[%s1921_s18 + $0x30] sm:$0xff]  ;;  %v1801_v48 = vld [vmem:[%s1921_s18 + $0x38] sm:$0xff] }
 0x32a   : > { %v1449_v14 = vmul.f32 %v1444_v63, %v1296_v49  ;;  %v1450_v39 = vmul.f32 %v1444_v63, %v1297_v50  ;;  %v1451_v54 = vmul.f32 %v1444_v63, %v1298_v10  ;;  %v1452_v15 = vmul.f32 %v1444_v63, %v1299_v23  ;;  %v1802_v49 = vld [vmem:[%s1921_s18 + $0x10] sm:$0xff]  ;;  %v1803_v50 = vld [vmem:[%s1921_s18 + $0x18] sm:$0xff]  ;;  %v1806_v23 = vld [vmem:[%s1921_s18 + $0x20] sm:$0xff] }
 0x32b   : > { %v1453_v58 = vpack.c.bf16 %v1446_v22, %v1445_v8  ;;  %v1454_v1 = vpack.c.bf16 %v1448_v0, %v1447_v17  ;;  %v1579_v16 = vrot.slane %v1800_v59, 1  ;;  %v1580_v33 = vrot.slane %v1801_v48, 1 }
 0x32c   : > { %v1455_v24 = vpack.c.bf16 %v1450_v39, %v1449_v14  ;;  %v1456_v2 = vpack.c.bf16 %v1452_v15, %v1451_v54  ;;  %v1573_v52 = vrot.slane %v1802_v49, 1  ;;  %v1574_v43 = vrot.slane %v1803_v50, 1 }
 0x32d   : > { %1773 = vmatprep.mubr.msk.bf16.mxu1 %vm1300_vm4, %v1453_v58  ;;  %v1582_v10 = vrot.slane %v1804_v46, 1  ;;  %v1576_v4 = vrot.slane %v1806_v23, 1  ;;  %v1581_v57 = vsel %vm815_vm2, %v1579_v16, %v1580_v33  ;;  %v1587_v22 = vsel %vm815_vm2, %v1585_v56, %v1586_v6 }
 0x32e   : > { %1774 = vmatmul.mubr.msk.bf16.vlgmr.msra.gmra.mrb[8].mxu1 %vm1300_vm4, %v1454_v1  ;;  %v1575_v13 = vsel %vm815_vm2, %v1573_v52, %v1574_v43  ;;  %v1596_v14 = vsel %vm815_vm2, %v1594_v9, %v1595_v35 }
 0x32f   : > { %1777 = vmatprep.mubr.msk.bf16.mxu1 %vm1300_vm4, %v1455_v24  ;;  %v1584_v38 = vsel %vm815_vm2, %v1582_v10, %v1583_v11  ;;  %v1578_v60 = vsel %vm815_vm2, %v1576_v4, %v1577_v44  ;;  %v1590_v24 = vsel %vm815_vm2, %v1588_v3, %v1589_v47 }
 0x336   : > { %1778 = vmatmul.mubr.msk.bf16.gmra.mrb[12].mxu1 %vm1300_vm4, %v1456_v2 }
 0x401   : > { %v1775_v40 = vpop.f32.mrb[8].mxu1 }
 0x402   : > { %v1535_v5 = vadd.f32 %v1775_v40, %v1701_v27  ;;  %v1526_v19 = vpop.f32.mrb[9].mxu1 }
 0x403   : > { %v1527_v28 = vadd.f32 %v1701_v27, %v1526_v19  ;;  %v1776_v12 = vpop.f32.mrb[10].mxu1 }
 0x404   : > { %v1607_v32 = vadd.f32 %v1581_v57, %v1535_v5  ;;  %v1538_v30 = vadd.f32 %v1776_v12, %v1701_v27  ;;  %v1529_v62 = vpop.f32.mrb[11].mxu1 }
 0x405   : > { %v1605_v45 = vadd.f32 %v1575_v13, %v1527_v28  ;;  %v1530_v55 = vadd.f32 %v1701_v27, %v1529_v62 }
 0x406   : > { %1615 = vst.msk [vmem:[%s2531_s20 + $0x10] sm:$0xff] %vm460_vm0, %v1607_v32  ;;  %v1608_v21 = vadd.f32 %v1584_v38, %v1538_v30 }
 0x407   : > { %1613 = vst.msk [vmem:[%s2531_s20] sm:$0xff] %vm460_vm0, %v1605_v45  ;;  %v1606_v53 = vadd.f32 %v1578_v60, %v1530_v55 }
 0x408   : > { %1616 = vst.msk [vmem:[%s2531_s20 + $0x18] sm:$0xff] %vm460_vm0, %v1608_v21 }
 0x409   : > { %1614 = vst.msk [vmem:[%s2531_s20 + $0x8] sm:$0xff] %vm460_vm0, %v1606_v53  ;;  %v1779_v42 = vpop.f32.mrb[12].mxu1 }
 0x40a   : > { %v1551_v63 = vadd.f32 %v1779_v42, %v1701_v27  ;;  %v1542_v8 = vpop.f32.mrb[13].mxu1 }
 0x40b   : > { %v1543_v17 = vadd.f32 %v1701_v27, %v1542_v8  ;;  %v1780_v0 = vpop.f32.mrb[14].mxu1 }
 0x40c   : > { %v1611_v39 = vadd.f32 %v1593_v51, %v1551_v63  ;;  %v1554_v58 = vadd.f32 %v1780_v0, %v1701_v27  ;;  %v1545_v1 = vpop.f32.mrb[15].mxu1 }
 0x40d   : > { %v1609_v54 = vadd.f32 %v1587_v22, %v1543_v17  ;;  %v1546_v15 = vadd.f32 %v1701_v27, %v1545_v1 }
 0x40e   : > { %1619 = vst.msk [vmem:[%s2531_s20 + $0x30] sm:$0xff] %vm460_vm0, %v1611_v39  ;;  %v1612_v2 = vadd.f32 %v1596_v14, %v1554_v58 }
 0x40f   : > { %1617 = vst.msk [vmem:[%s2531_s20 + $0x20] sm:$0xff] %vm460_vm0, %v1609_v54  ;;  %v1610_v59 = vadd.f32 %v1590_v24, %v1546_v15 }
 0x410   : > { %1620 = vst.msk [vmem:[%s2531_s20 + $0x38] sm:$0xff] %vm460_vm0, %v1612_v2 }
 0x411   : > { %1618 = vst.msk [vmem:[%s2531_s20 + $0x28] sm:$0xff] %vm460_vm0, %v1610_v59 }
 0x412 PF: > { %s22_s21 = sadd.s32 1, %s1822_s21  }
 0x413   : > { %p19_p4 = scmp.ge.s32.totalorder %s22_s21, 4  }
 0x415   :  { %21 = sbr.rel (!%p19_p4) target bundleno = 1 (0x1), region = 98 }

// kernel: mobilenetv3_forward.5
= control target key start
LH: loop header
LB: loop body
LE: loop exit
PB: predicated region body
PF: predicated region fallthrough
CT: control target
= control target key end

     0   :  { %s2837_s0 = inlined_call_operand.vmem [shape: f32[2,10,16,16], index: 0, kind: input, shape index: {}]   ;;  %s2838_s1 = inlined_call_operand.vmem [shape: f32[160,1], index: 1, kind: input, shape index: {}]   ;;  %s2839_s2 = inlined_call_operand.vmem [shape: bf16[16,48], index: 2, kind: input, shape index: {}]   ;;  %s2840_s3 = inlined_call_operand.vmem [shape: f32[1,48], index: 3, kind: input, shape index: {}]   ;;  %s2841_s4 = inlined_call_operand.vmem [shape: f32[3,3,48], index: 4, kind: input, shape index: {}]   ;;  %s2842_s5 = inlined_call_operand.vmem [shape: f32[1,48], index: 5, kind: input, shape index: {}]   ;;  %s2843_s6 = inlined_call_operand.vmem [shape: bf16[48,12], index: 6, kind: input, shape index: {}]   ;;  %s2844_s7 = inlined_call_operand.vmem [shape: f32[1,12], index: 7, kind: input, shape index: {}]   ;;  %s2845_s8 = inlined_call_operand.vmem [shape: bf16[12,48], index: 8, kind: input, shape index: {}]   ;;  %s2846_s9 = inlined_call_operand.vmem [shape: f32[1,48], index: 9, kind: input, shape index: {}]   ;;  %s2847_s10 = inlined_call_operand.vmem [shape: bf16[48,24], index: 10, kind: input, shape index: {}]   ;;  %s2848_s11 = inlined_call_operand.vmem [shape: f32[1,24], index: 11, kind: input, shape index: {}]   ;;  %s2849_s12 = inlined_call_operand.hbm [shape: f32[2,8,8,24], index: 12, kind: output, shape index: {}]  }
   0x1   :  { %2851 = sst [smem:[#allocation5_spill]] %s2837_s0 }
   0x2   :  { %17 = vsyncpa [#allocation3], 0 }
   0x3   :  { %19 = vsyncpa [#allocation3 + $0x1], 0  ;;  %s2078_s21 = smov 0   ;;  %s2080_s22 = smov 0  }
   0x4   :  { %s2082_s23 = smov 0   ;;  %s2084_s24 = smov 0  }
   0x5 LB: > { %s2099_s25 = sadd.s32 4294967295, %s2005_s24   ;;  %s1773_s26 = sadd.s32 4294967294, %s2005_s24   ;;  %s2005_s24 = sphi %s2084_s24, %s2861_s24   ;;  %s2001_s23 = sphi %s2082_s23, %s2860_s23   ;;  %s1997_s22 = sphi %s2080_s22, %s2859_s22   ;;  %s1993_s21 = sphi %s2078_s21, %s2858_s21  }
   0x6   : > { %s2103_s27 = sadd.s32 1, %s2005_s24   ;;  %s289_s28 = sadd.s32 1, %s2001_s23 }
   0x7   : > { %s286_s29 = ssub.s32 %s2005_s24, %s2103_s27  ;;  %p299_p0 = scmp.ne.s32.totalorder %s2001_s23, %s1997_s22 }
   0x8   : > { %p287_p1 = scmp.eq.s32.totalorder %s286_s29, 0  ;;  %p300_p2 = scmp.eq.s32.totalorder %s2099_s25, 1 }
   0x9   : > { %p305_p3 = scmp.ne.s32.totalorder %s1997_s22, %s1993_s21  ;;  %p306_p4 = scmp.eq.s32.totalorder %s1773_s26, 1 }
   0xa   : > { %s2114_s30 = scalar_select %p287_p1, %s2001_s23, %s289_s28  }
   0xb   : > { %p2116_p5 = por %p300_p2, %p299_p0  ;;  %p2120_p6 = por %p306_p4, %p305_p3 }
   0xc   : > { %p1776_p7 = scmp.ge.s32.totalorder %s2005_s24, 1  ;;  %p365_p8 = scmp.lt.s32.totalorder %s2005_s24, 3 }
   0xe   : > { %p366_p9 = pnand %p1776_p7, %p365_p8 }
   0xf   : > { %v1935_v0 = vld [vmem:[%s2839_s2] sm:$0xff] (!%p366_p9)   ;;  %p407_p10 = scmp.lt.s32.totalorder (!%p366_p9), %s2099_s25, 1  ;;  %v704_v1 = vld [vmem:[%s2838_s1 + $0x10] sm:$0xff] (!%p366_p9)  ;;  %v2007_v3 = vmov (!%p366_p9), 0   ;;  %v705_v4 = vld [vmem:[%s2838_s1 + $0x18] sm:$0xff] (!%p366_p9)  ;;  %s2854_s0 = sld [smem:[#allocation5_spill]] (!%p366_p9)  ;;  %v845_v52 = vlaneseq (!%p366_p9) }
  0x10   : > { %369 = sbr.rel (%p366_p9) target bundleno = 1094 (0x446), region = 68  ;;  %v702_v2 = vld [vmem:[%s2838_s1] sm:$0xff] (!%p366_p9)  ;;  %1836 = vmatprep.subr.bf16.mxu0 (!%p366_p9), %v1935_v0  ;;  %1934 = vset.pattern.permute.xlu1 (!%p366_p9), %v2007_v3  ;;  %v703_v5 = vld [vmem:[%s2838_s1 + $0x8] sm:$0xff] (!%p366_p9)  ;;  %vm458_vm0 = vcmask (!%p366_p9), 130048   ;;  %v709_v21 = vld [vmem:[%s2838_s1 + $0x38] sm:$0xff] (!%p366_p9)  ;;  %v2850_v56 = vmov (!%p366_p9), 0.0  }
  0x11   : > { %1837 = vmatpush3.bf16.msra.mxu0 (!%p366_p9), %v1935_v0  ;;  %1933 = vset.pattern.permute.xlu0 (!%p366_p9), %v2007_v3  ;;  %v707_v15 = vld [vmem:[%s2838_s1 + $0x28] sm:$0xff] (!%p366_p9)  ;;  %v706_v16 = vld [vmem:[%s2838_s1 + $0x20] sm:$0xff] (!%p366_p9)  ;;  %v708_v22 = vld [vmem:[%s2838_s1 + $0x30] sm:$0xff] (!%p366_p9)  ;;  %v846_v53 = vshrl.u32 (!%p366_p9), %v845_v52, 7  ;;  %vm2009_vm1 = vmmov (!%p366_p9), 0   ;;  %vm893_vm2 = vcmask (!%p366_p9), 1046528  }
  0x12   : > { %734 = vperm.xlu1 (!%p366_p9), %1934, %v704_v1   ;;  %724 = vperm.xlu0 (!%p366_p9), %1933, %v702_v2   ;;  %v711_v24 = vld [vmem:[%s2838_s1 + $0x48] sm:$0xff] (!%p366_p9)  ;;  %v710_v26 = vld [vmem:[%s2838_s1 + $0x40] sm:$0xff] (!%p366_p9)  ;;  %v713_v31 = vld [vmem:[%s2838_s1 + $0x58] sm:$0xff] (!%p366_p9)  ;;  %vm970_vm3 = vcmask (!%p366_p9), 1045504   ;;  %vm1410_vm4 = vcmask (!%p366_p9), 392192   ;;  %vm1513_vm5 = vcmask (!%p366_p9), 97280  }
  0x13   : > { %v712_v32 = vld [vmem:[%s2838_s1 + $0x50] sm:$0xff] (!%p366_p9)  ;;  %v715_v35 = vld [vmem:[%s2838_s1 + $0x68] sm:$0xff] (!%p366_p9)  ;;  %v714_v36 = vld [vmem:[%s2838_s1 + $0x60] sm:$0xff] (!%p366_p9)  ;;  %1858 = vmatprep.subr.bf16.mxu1 (!%p366_p9), %v2850_v56  ;;  %1864 = vmatprep.mubr.msk.bf16.mxu1 (!%p366_p9), %vm2009_vm1, %v2850_v56  ;;  %v2241_v61 = vsub.s32 (!%p366_p9), 0, %v846_v53  ;;  %v859_v0 = vsub.s32 (!%p366_p9), 1, %v846_v53  ;;  %v936_v1 = vsub.s32 (!%p366_p9), 2, %v846_v53 }
  0x14   : > { %v717_v41 = vld [vmem:[%s2838_s1 + $0x78] sm:$0xff] (!%p366_p9)  ;;  %v716_v42 = vld [vmem:[%s2838_s1 + $0x70] sm:$0xff] (!%p366_p9)  ;;  %v719_v45 = vld [vmem:[%s2838_s1 + $0x88] sm:$0xff] (!%p366_p9)  ;;  %vm1688_vm6 = vcmask (!%p366_p9), 195584   ;;  %s1811_s17 = sshll.u32 (!%p366_p9), %s2099_s25, 10  ;;  %s2010_s15 = smov (!%p366_p9), [#allocation2]  }
  0x15   : > { %v718_v46 = vld [vmem:[%s2838_s1 + $0x80] sm:$0xff] (!%p366_p9)  ;;  %v721_v49 = vld [vmem:[%s2838_s1 + $0x98] sm:$0xff] (!%p366_p9)  ;;  %v720_v50 = vld [vmem:[%s2838_s1 + $0x90] sm:$0xff] (!%p366_p9) }
  0x16   : > { %739 = vperm.xlu1 (!%p366_p9), %1934, %v705_v4   ;;  %729 = vperm.xlu0 (!%p366_p9), %1933, %v703_v5   ;;  %v2229_v54 = vld [vmem:[%s2840_s3] ss:$0 sm:$0xff] (!%p366_p9)  ;;  %v1937_v58 = vld [vmem:[%s2843_s6 + $0x8] sm:$0xff] (!%p366_p9)  }
  0x17   : > { %s408_s26 = scalar_select %p407_p10, %s2099_s25, 1  ;;  %v1936_v55 = vld [vmem:[%s2843_s6] sm:$0xff]  }
  0x18   : > { %1859 = vmatpush3.bf16.msra.mxu1 %v1936_v55  ;;  %v842_v63 = vld [vmem:[%s2841_s4] sm:$0x7] }
  0x19   : > { %s1888_s28 = smul.u32 160, %s408_s26  ;;  %1860 = vmatprep.subr.bf16.mxu1 %v2850_v56 }
  0x1a   : > { %749 = vperm.xlu1 %1934, %v707_v15   ;;  %744 = vperm.xlu0 %1933, %v706_v16   ;;  %v2263_v15 = vrot.slane %v842_v63, %v859_v0  ;;  %v2265_v16 = vrot.slane %v842_v63, %v936_v1 }
  0x1b   : > { %s2146_s20 = scalar_lea.vmem %s2854_s0, %s1888_s28  ;;  %s404_s28 = sand.u32 1, %s1997_s22  }
  0x1c   : > { %v413_v6 = vld [vmem:[%s2146_s20] sm:$0xff]  ;;  %v414_v7 = vld [vmem:[%s2146_s20 + $0x8] sm:$0xff]  ;;  %v415_v8 = vld [vmem:[%s2146_s20 + $0x10] sm:$0xff]  ;;  %1861 = vmatpush3.bf16.msra.mxu1 %v1937_v58  ;;  %s2796_s25 = scalar_lea.sflag [#allocation3], %s404_s28 }
  0x1d   : > { %v433_v9 = vpack.c.bf16 %v414_v7, %v413_v6  ;;  %v416_v10 = vld [vmem:[%s2146_s20 + $0x18] sm:$0xff]  ;;  %v417_v11 = vld [vmem:[%s2146_s20 + $0x20] sm:$0xff]  ;;  %v418_v12 = vld [vmem:[%s2146_s20 + $0x28] sm:$0xff]  ;;  %1862 = vmatprep.subr.bf16.mxu1 %v2850_v56 }
  0x1e   : > { %v434_v13 = vpack.c.bf16 %v416_v10, %v415_v8  ;;  %v435_v14 = vpack.c.bf16 %v418_v12, %v417_v11  ;;  %v419_v17 = vld [vmem:[%s2146_s20 + $0x30] sm:$0xff]  ;;  %v420_v18 = vld [vmem:[%s2146_s20 + $0x38] sm:$0xff]  ;;  %v421_v19 = vld [vmem:[%s2146_s20 + $0x40] sm:$0xff]  ;;  %759 = vperm.xlu1 %1934, %v709_v21   ;;  %754 = vperm.xlu0 %1933, %v708_v22   ;;  %v2257_v11 = vrot.slane %v842_v63, %v2241_v61 }
  0x1f   : > { %1838 = vmatprep.mubr.msk.bf16.mxu0 %vm458_vm0, %v433_v9  ;;  %v422_v20 = vld [vmem:[%s2146_s20 + $0x48] sm:$0xff]  ;;  %v436_v23 = vpack.c.bf16 %v420_v18, %v419_v17  ;;  %v423_v27 = vld [vmem:[%s2146_s20 + $0x50] sm:$0xff]  ;;  %v424_v28 = vld [vmem:[%s2146_s20 + $0x58] sm:$0xff] }
  0x20   : > { %1839 = vmatmul.mubr.msk.bf16.vlgmr.msra.gmra.mrb[0].mxu0 %vm458_vm0, %v434_v13  ;;  %v437_v25 = vpack.c.bf16 %v422_v20, %v421_v19  ;;  %v425_v29 = vld [vmem:[%s2146_s20 + $0x60] sm:$0xff]  ;;  %v426_v30 = vld [vmem:[%s2146_s20 + $0x68] sm:$0xff]  ;;  %v438_v33 = vpack.c.bf16 %v424_v28, %v423_v27  ;;  %v427_v37 = vld [vmem:[%s2146_s20 + $0x70] sm:$0xff] }
  0x21   : > { %1842 = vmatprep.mubr.msk.bf16.mxu0 %vm458_vm0, %v435_v14  ;;  %v439_v34 = vpack.c.bf16 %v426_v30, %v425_v29  ;;  %v428_v38 = vld [vmem:[%s2146_s20 + $0x78] sm:$0xff]  ;;  %v429_v39 = vld [vmem:[%s2146_s20 + $0x80] sm:$0xff]  ;;  %v430_v40 = vld [vmem:[%s2146_s20 + $0x88] sm:$0xff] }
  0x22   : > { %769 = vperm.xlu1 %1934, %v711_v24   ;;  %764 = vperm.xlu0 %1933, %v710_v26   ;;  %v440_v43 = vpack.c.bf16 %v428_v38, %v427_v37  ;;  %v441_v44 = vpack.c.bf16 %v430_v40, %v429_v39  ;;  %v431_v47 = vld [vmem:[%s2146_s20 + $0x90] sm:$0xff]  ;;  %v432_v48 = vld [vmem:[%s2146_s20 + $0x98] sm:$0xff]  ;;  %v843_v7 = vld [vmem:[%s2841_s4 + $0x4] sm:$0x7]  ;;  %s1777_s20 = sshll.u32 %s404_s28, 6 }
  0x23   : > { %v442_v51 = vpack.c.bf16 %v432_v48, %v431_v47  ;;  %v1938_v9 = vld [vmem:[%s2843_s6 + $0x10] sm:$0xff]   ;;  %v844_v13 = vld [vmem:[%s2841_s4 + $0x8] sm:$0x7]  ;;  %v2267_v19 = vrot.slane %v843_v7, %v859_v0  ;;  %v2269_v20 = vrot.slane %v843_v7, %v936_v1  ;;  %s406_s16 = scalar_lea.vmem [#allocation2], %s1777_s20  ;;  %s2787_s20 = scalar_lea.hbm %s2849_s12, %s1811_s17 }
  0x24   : > { %v2274_v27 = vrot.slane %v844_v13, %v859_v0  ;;  %1863 = vmatpush3.bf16.msra.mxu1 %v1938_v9  ;;  %v2286_v38 = vrot.slane %v844_v13, %v2241_v61  ;;  %s1711_s18 = sshll.u32 %s406_s16, 4  ;;  %s1947_s17 = sshll.u32 %s2010_s15, 4  ;;  %s2789_s18 = int_to_ptr.vmem [resolvable:$true] %s1711_s18  ;;  %s1948_s17 = int_to_ptr.vmem [resolvable:$false] %s1947_s17 }
  0x25   : > { %1868 = vmatprep.subr.bf16.mxu1 %v2850_v56  ;;  %s1943_s29 = scalar_lea.vmem %s2789_s18, 1024  ;;  %s1949_s19 = scalar_lea.vmem %s1948_s17, 2048 }
  0x26   : > { %779 = vperm.xlu1 %1934, %v713_v31   ;;  %774 = vperm.xlu0 %1933, %v712_v32   ;;  %p1944_p11 = scmp.ne.s32.totalorder %s2789_s18, %s1943_s29  ;;  %p1950_p0 = scmp.lt.s32.totalorder %s2789_s18, %s1948_s17 }
  0x27   : > { %p1951_p1 = scmp.lt.s32.totalorder %s1949_s19, %s1943_s29 }
  0x28   : > { %1843 = vmatmul.mubr.msk.bf16.gmra.mrb[4].mxu0 %vm458_vm0, %v436_v23  ;;  %p1945_p12 = pnand %p1944_p11, %p2116_p5 }
  0x29   : > { %1846 = vmatprep.mubr.msk.bf16.mxu0 %vm458_vm0, %v437_v25  ;;  %v2272_v25 = vrot.slane %v843_v7, %v2241_v61  ;;  %p1952_p2 = por %p1951_p1, %p1950_p0 }
  0x2a   : > { %789 = vperm.xlu1 %1934, %v715_v35   ;;  %784 = vperm.xlu0 %1933, %v714_v36   ;;  %p1946_p13 = pneg %p1945_p12 }
  0x2c   : > { %p1953_p3 = pnand %p1952_p2, %p1946_p13 }
  0x2e   : > { %799 = vperm.xlu1 %1934, %v717_v41   ;;  %794 = vperm.xlu0 %1933, %v716_v42  }
  0x30   : > { %1847 = vmatmul.mubr.msk.bf16.gmra.mrb[8].mxu0 %vm458_vm0, %v438_v33  ;;  %v2279_v33 = vrot.slane %v844_v13, %v936_v1 }
  0x31   : > { %1850 = vmatprep.mubr.msk.bf16.mxu0 %vm458_vm0, %v439_v34 }
  0x32   : > { %809 = vperm.xlu1 %1934, %v719_v45   ;;  %804 = vperm.xlu0 %1933, %v718_v46  }
  0x36   : > { %819 = vperm.xlu1 %1934, %v721_v49   ;;  %814 = vperm.xlu0 %1933, %v720_v50  }
  0x38   : > { %1851 = vmatmul.mubr.msk.bf16.gmra.mrb[12].mxu0 %vm458_vm0, %v440_v43 }
  0x39   : > { %1854 = vmatprep.mubr.msk.bf16.mxu0 %vm458_vm0, %v441_v44 }
  0x40   : > { %1855 = vmatmul.mubr.msk.bf16.gmra.mrb[16].mxu0 %vm458_vm0, %v442_v51 }
  0x91   : > { %v735_v22 = vpop.permute.xlu1 %734  ;;  %v725_v28 = vpop.permute.xlu0 %724 }
  0x95   : > { %v740_v52 = vpop.permute.xlu1 %739 }
  0xf3   : > { %v1840_v57 = vpop.f32.mrb[0].mxu0 }
  0xf4   : > { %v532_v59 = vadd.f32 %v1840_v57, %v2229_v54  ;;  %v523_v60 = vpop.f32.mrb[1].mxu0 }
  0xf5   : > { %v524_v62 = vadd.f32 %v2229_v54, %v523_v60  ;;  %v1841_v2 = vpop.f32.mrb[2].mxu0 }
  0xf6   : > { %v604_v3 = vadd.f32 3.0, %v532_v59  ;;  %v535_v4 = vadd.f32 %v1841_v2, %v2229_v54  ;;  %v526_v5 = vpop.f32.mrb[3].mxu0 }
  0xf7   : > { %v602_v6 = vadd.f32 3.0, %v524_v62  ;;  %v527_v8 = vadd.f32 %v2229_v54, %v526_v5 }
  0xf8   : > { %v624_v10 = vmax.f32 %v604_v3, 0.0  ;;  %v605_v12 = vadd.f32 3.0, %v535_v4 }
  0xf9   : > { %v622_v14 = vmax.f32 %v602_v6, 0.0  ;;  %v603_v17 = vadd.f32 3.0, %v527_v8 }
  0xfa   : > { %v644_v18 = vmin.f32 %v624_v10, 6.0  ;;  %v625_v21 = vmax.f32 %v605_v12, 0.0 }
  0xfb   : > { %v642_v23 = vmin.f32 %v622_v14, 6.0  ;;  %v623_v24 = vmax.f32 %v603_v17, 0.0  ;;  %v1844_v26 = vpop.f32.mrb[4].mxu0 }
  0xfc   : > { %v664_v29 = vmul.f32 %v644_v18, %v532_v59  ;;  %v645_v30 = vmin.f32 %v625_v21, 6.0  ;;  %v2277_v31 = vadd.f32 %v1844_v26, %v2229_v54  ;;  %v539_v32 = vpop.f32.mrb[5].mxu0  ;;  %v730_v59 = vpop.permute.xlu0 %729 }
  0xfd   : > { %v662_v34 = vmul.f32 %v642_v23, %v524_v62  ;;  %v643_v35 = vmin.f32 %v623_v24, 6.0  ;;  %v2283_v36 = vadd.f32 %v2229_v54, %v539_v32  ;;  %v1845_v37 = vpop.f32.mrb[6].mxu0 }
  0xfe   : > { %v684_v39 = vmul.f32 0.16666667, %v664_v29  ;;  %v665_v40 = vmul.f32 %v645_v30, %v535_v4  ;;  %v608_v41 = vadd.f32 3.0, %v2277_v31  ;;  %v2290_v42 = vadd.f32 %v1845_v37, %v2229_v54  ;;  %v542_v43 = vpop.f32.mrb[7].mxu0 }
  0xff   : > { %v682_v44 = vmul.f32 0.16666667, %v662_v34  ;;  %v663_v45 = vmul.f32 %v643_v35, %v527_v8  ;;  %v606_v46 = vadd.f32 3.0, %v2283_v36  ;;  %v2294_v47 = vadd.f32 %v2229_v54, %v542_v43 }
 0x100   : > { %v824_v48 = vmul.f32 %v735_v22, %v684_v39  ;;  %v685_v49 = vmul.f32 0.16666667, %v665_v40  ;;  %v628_v50 = vmax.f32 %v608_v41, 0.0  ;;  %v609_v51 = vadd.f32 3.0, %v2290_v42  ;;  %v745_v34 = vpop.permute.xlu0 %744 }
 0x101   : > { %v822_v53 = vmul.f32 %v725_v28, %v682_v44  ;;  %v683_v55 = vmul.f32 0.16666667, %v663_v45  ;;  %v626_v57 = vmax.f32 %v606_v46, 0.0  ;;  %v607_v58 = vadd.f32 3.0, %v2294_v47 }
 0x102   : > { %v825_v60 = vmul.f32 %v740_v52, %v685_v49  ;;  %v850_v62 = vmul.f32 %v2257_v11, %v824_v48  ;;  %v863_v63 = vmul.f32 %v2263_v15, %v824_v48  ;;  %v940_v0 = vmul.f32 %v2265_v16, %v824_v48 }
 0x103   : > { %v849_v1 = vmul.f32 %v2257_v11, %v822_v53  ;;  %v861_v2 = vmul.f32 %v2263_v15, %v822_v53  ;;  %v938_v3 = vmul.f32 %v2265_v16, %v822_v53  ;;  %v1111_v4 = vmul.f32 %v2269_v20, %v824_v48  ;;  %v1848_v5 = vpop.f32.mrb[8].mxu0 }
 0x104   : > { %v864_v6 = vmul.f32 %v2263_v15, %v825_v60  ;;  %v897_v7 = vrot.slane %v863_v63, 1  ;;  %v941_v8 = vmul.f32 %v2265_v16, %v825_v60  ;;  %v974_v9 = vrot.slane %v940_v0, 2  ;;  %v555_v10 = vpop.f32.mrb[9].mxu0 }
 0x105   : > { %v894_v12 = vrot.slane %v861_v2, 1  ;;  %v971_v13 = vrot.slane %v938_v3, 2  ;;  %v1036_v14 = vmul.f32 %v2267_v19, %v825_v60  ;;  %v1112_v17 = vmul.f32 %v2269_v20, %v825_v60  ;;  %v1849_v18 = vpop.f32.mrb[10].mxu0 }
 0x106   : > { %v898_v21 = vrot.slane %v864_v6, 1  ;;  %v975_v22 = vrot.slane %v941_v8, 2  ;;  %v1143_v23 = vrot.slane %v1111_v4, 2  ;;  %v823_v24 = vmul.f32 %v730_v59, %v683_v55  ;;  %v2309_v26 = vpop.f32.mrb[11].mxu0  ;;  %v2318_v55 = vpop.permute.xlu1 %749 }
 0x107   : > { %v1068_v28 = vrot.slane %v1036_v14, 1  ;;  %v1144_v29 = vrot.slane %v1112_v17, 2  ;;  %v1015_v30 = vmul.f32 %v2272_v25, %v824_v48  ;;  %v1035_v32 = vmul.f32 %v2267_v19, %v824_v48 }
 0x108   : > { %v899_v35 = vsel %vm893_vm2, %v897_v7, %v898_v21  ;;  %v976_v37 = vsel %vm970_vm3, %v974_v9, %v975_v22  ;;  %v862_v39 = vmul.f32 %v2263_v15, %v823_v24  ;;  %v939_v40 = vmul.f32 %v2265_v16, %v823_v24 }
 0x109   : > { %v927_v41 = vadd.f32 %v899_v35, %v850_v62  ;;  %v1145_v43 = vsel %vm970_vm3, %v1143_v23, %v1144_v29  ;;  %v1067_v44 = vrot.slane %v1035_v32, 1  ;;  %v648_v45 = vmin.f32 %v628_v50, 6.0 }
 0x10a   : > { %v895_v46 = vrot.slane %v862_v39, 1  ;;  %v972_v49 = vrot.slane %v939_v40, 2  ;;  %v646_v52 = vmin.f32 %v626_v57, 6.0  ;;  %v629_v53 = vmax.f32 %v609_v51, 0.0 }
 0x10b   : > { %v2320_v48 = vadd.f32 %v976_v37, %v927_v41  ;;  %v1069_v59 = vsel %vm893_vm2, %v1067_v44, %v1068_v28  ;;  %v668_v60 = vmul.f32 %v648_v45, %v2277_v31  ;;  %v627_v63 = vmax.f32 %v607_v58, 0.0  ;;  %v2324_v0 = vpop.f32.mrb[12].mxu0  ;;  %v755_v31 = vpop.permute.xlu0 %754 }
 0x10c   : > { %v896_v62 = vsel %vm893_vm2, %v894_v12, %v895_v46  ;;  %v973_v2 = vsel %vm970_vm3, %v971_v13, %v972_v49  ;;  %v666_v50 = vmul.f32 %v646_v52, %v2283_v36  ;;  %v649_v3 = vmin.f32 %v629_v53, 6.0  ;;  %v2329_v57 = vpop.f32.mrb[13].mxu0 }
 0x10d   : > { %v926_v51 = vadd.f32 %v896_v62, %v849_v1  ;;  %v688_v4 = vmul.f32 0.16666667, %v668_v60  ;;  %v647_v6 = vmin.f32 %v627_v63, 6.0  ;;  %v2332_v7 = vadd.f32 %v1848_v5, %v2229_v54  ;;  %v2334_v8 = vpop.f32.mrb[14].mxu0 }
 0x10e   : > { %v686_v58 = vmul.f32 0.16666667, %v666_v50  ;;  %v669_v9 = vmul.f32 %v649_v3, %v2290_v42  ;;  %v2338_v12 = vadd.f32 %v2229_v54, %v555_v10  ;;  %v2341_v36 = vadd.f32 %v1849_v18, %v2229_v54  ;;  %v2343_v13 = vpop.f32.mrb[15].mxu0  ;;  %v760_v18 = vpop.permute.xlu1 %759 }
 0x10f   : > { %v1003_v1 = vadd.f32 %v973_v2, %v926_v51  ;;  %v2345_v14 = vmul.f32 %v755_v31, %v688_v4  ;;  %v667_v5 = vmul.f32 %v647_v6, %v2294_v47  ;;  %v2349_v17 = vadd.f32 3.0, %v2332_v7 }
 0x110   : > { %v2351_v21 = vmul.f32 %v745_v34, %v686_v58  ;;  %v689_v22 = vmul.f32 0.16666667, %v669_v9  ;;  %v2354_v42 = vadd.f32 3.0, %v2338_v12  ;;  %v2357_v10 = vadd.f32 3.0, %v2341_v36 }
 0x111   : > { %v1023_v23 = vadd.f32 %v1015_v30, %v1003_v1  ;;  %v852_v24 = vmul.f32 %v2257_v11, %v2345_v14  ;;  %v867_v47 = vmul.f32 %v2263_v15, %v2345_v14  ;;  %v944_v28 = vmul.f32 %v2265_v16, %v2345_v14 }
 0x112   : > { %v829_v29 = vmul.f32 %v760_v18, %v689_v22  ;;  %v1039_v32 = vmul.f32 %v2267_v19, %v2345_v14  ;;  %v1115_v34 = vmul.f32 %v2269_v20, %v2345_v14  ;;  %v1209_v35 = vmul.f32 %v2274_v27, %v2345_v14 }
 0x113   : > { %v1099_v30 = vadd.f32 %v1069_v59, %v1023_v23  ;;  %v903_v37 = vrot.slane %v867_v47, 1  ;;  %v980_v39 = vrot.slane %v944_v28, 2  ;;  %v1285_v40 = vmul.f32 %v2279_v33, %v2345_v14  ;;  %v2373_v41 = vpop.f32.mrb[16].mxu0 }
 0x114   : > { %v868_v44 = vmul.f32 %v2263_v15, %v829_v29  ;;  %v945_v45 = vmul.f32 %v2265_v16, %v829_v29  ;;  %v1040_v46 = vmul.f32 %v2267_v19, %v829_v29  ;;  %v1073_v49 = vrot.slane %v1039_v32, 1  ;;  %v2378_v52 = vpop.f32.mrb[17].mxu0 }
 0x115   : > { %v1175_v53 = vadd.f32 %v1145_v43, %v1099_v30  ;;  %v1116_v60 = vmul.f32 %v2269_v20, %v829_v29  ;;  %v1149_v59 = vrot.slane %v1115_v34, 2  ;;  %v1210_v63 = vmul.f32 %v2274_v27, %v829_v29  ;;  %v2382_v62 = vpop.f32.mrb[18].mxu0 }
 0x116   : > { %v904_v2 = vrot.slane %v868_v44, 1  ;;  %v981_v50 = vrot.slane %v945_v45, 2  ;;  %v1074_v3 = vrot.slane %v1040_v46, 1  ;;  %v1242_v51 = vrot.slane %v1209_v35, 1  ;;  %v2384_v4 = vpop.f32.mrb[19].mxu0 }
 0x117   : > { %v1150_v6 = vrot.slane %v1116_v60, 2  ;;  %v1243_v31 = vrot.slane %v1210_v63, 1  ;;  %v1286_v58 = vmul.f32 %v2279_v33, %v829_v29  ;;  %v1318_v9 = vrot.slane %v1285_v40, 2 }
 0x118   : > { %v905_v43 = vsel %vm893_vm2, %v903_v37, %v904_v2  ;;  %v982_v1 = vsel %vm970_vm3, %v980_v39, %v981_v50  ;;  %v1075_v22 = vsel %vm893_vm2, %v1073_v49, %v1074_v3  ;;  %v687_v18 = vmul.f32 0.16666667, %v667_v5 }
 0x119   : > { %v929_v23 = vadd.f32 %v905_v43, %v852_v24  ;;  %v2391_v47 = vsel %vm970_vm3, %v1149_v59, %v1150_v6  ;;  %v1244_v28 = vsel %vm893_vm2, %v1242_v51, %v1243_v31  ;;  %v1319_v32 = vrot.slane %v1286_v58, 2 }
 0x11a   : > { %v827_v34 = vmul.f32 %v2318_v55, %v687_v18  ;;  %v851_v29 = vmul.f32 %v2257_v11, %v2351_v21  ;;  %v865_v35 = vmul.f32 %v2263_v15, %v2351_v21  ;;  %v942_v30 = vmul.f32 %v2265_v16, %v2351_v21 }
 0x11b   : > { %v2401_v37 = vadd.f32 %v982_v1, %v929_v23  ;;  %v2404_v5 = vsel %vm970_vm3, %v1318_v9, %v1319_v32  ;;  %v1016_v24 = vmul.f32 %v2272_v25, %v2351_v21  ;;  %v1017_v55 = vmul.f32 %v2272_v25, %v2345_v14 }
 0x11c   : > { %v866_v39 = vmul.f32 %v2263_v15, %v827_v34  ;;  %v900_v40 = vrot.slane %v865_v35, 1  ;;  %v943_v44 = vmul.f32 %v2265_v16, %v827_v34  ;;  %v977_v45 = vrot.slane %v942_v30, 2 }
 0x11d   : > { %v1024_v46 = vadd.f32 %v1016_v24, %v2320_v48  ;;  %v1037_v49 = vmul.f32 %v2267_v19, %v2351_v21  ;;  %v1038_v60 = vmul.f32 %v2267_v19, %v827_v34  ;;  %v1113_v59 = vmul.f32 %v2269_v20, %v2351_v21 }
 0x11e   : > { %v901_v63 = vrot.slane %v866_v39, 1  ;;  %v978_v2 = vrot.slane %v943_v44, 2  ;;  %v1114_v50 = vmul.f32 %v2269_v20, %v827_v34  ;;  %v1187_v3 = vmul.f32 %v2286_v38, %v2351_v21 }
 0x11f   : > { %v1070_v51 = vrot.slane %v1037_v49, 1  ;;  %v1071_v6 = vrot.slane %v1038_v60, 1  ;;  %v1146_v31 = vrot.slane %v1113_v59, 2  ;;  %v1188_v48 = vmul.f32 %v2286_v38, %v2345_v14 }
 0x120   : > { %v902_v58 = vsel %vm893_vm2, %v900_v40, %v901_v63  ;;  %v979_v9 = vsel %vm970_vm3, %v977_v45, %v978_v2  ;;  %v1147_v43 = vrot.slane %v1114_v50, 2  ;;  %v1195_v1 = vadd.f32 %v1187_v3, %v1175_v53 }
 0x121   : > { %v928_v18 = vadd.f32 %v902_v58, %v851_v29  ;;  %v1072_v23 = vsel %vm893_vm2, %v1070_v51, %v1071_v6  ;;  %v1207_v32 = vmul.f32 %v2274_v27, %v2351_v21  ;;  %v1208_v35 = vmul.f32 %v2274_v27, %v827_v34  ;;  %v765_v29 = vpop.permute.xlu0 %764  ;;  %v2443_v58 = vld [vmem:[%s2842_s5] ss:$0 sm:$0xff] }
 0x122   : > { %v1100_v30 = vadd.f32 %v1072_v23, %v1024_v46  ;;  %v1148_v24 = vsel %vm970_vm3, %v1146_v31, %v1147_v43  ;;  %v1283_v14 = vmul.f32 %v2279_v33, %v2351_v21  ;;  %v1284_v39 = vmul.f32 %v2279_v33, %v827_v34  ;;  %v2437_v21 = vpop.permute.xlu1 %769 }
 0x123   : > { %v1005_v40 = vadd.f32 %v979_v9, %v928_v18  ;;  %v1239_v44 = vrot.slane %v1207_v32, 1  ;;  %v1240_v45 = vrot.slane %v1208_v35, 1  ;;  %v632_v53 = vmax.f32 %v2349_v17, 0.0 }
 0x124   : > { %v1176_v49 = vadd.f32 %v1148_v24, %v1100_v30  ;;  %v1315_v60 = vrot.slane %v1283_v14, 2  ;;  %v1316_v59 = vrot.slane %v1284_v39, 2  ;;  %v630_v63 = vmax.f32 %v2354_v42, 0.0 }
 0x125   : > { %v1025_v2 = vadd.f32 %v1017_v55, %v1005_v40  ;;  %v1241_v46 = vsel %vm893_vm2, %v1239_v44, %v1240_v45  ;;  %v652_v50 = vmin.f32 %v632_v53, 6.0  ;;  %v633_v3 = vmax.f32 %v2357_v10, 0.0 }
 0x126   : > { %v1196_v34 = vadd.f32 %v1188_v48, %v1176_v49  ;;  %v1271_v51 = vadd.f32 %v1241_v46, %v1195_v1  ;;  %v1317_v6 = vsel %vm970_vm3, %v1315_v60, %v1316_v59  ;;  %v650_v31 = vmin.f32 %v630_v63, 6.0 }
 0x127   : > { %v1101_v17 = vadd.f32 %v1075_v22, %v1025_v2  ;;  %v672_v42 = vmul.f32 %v652_v50, %v2332_v7  ;;  %v653_v55 = vmin.f32 %v633_v3, 6.0  ;;  %v559_v9 = vadd.f32 %v2229_v54, %v2309_v26  ;;  %v775_v7 = vpop.permute.xlu0 %774 }
 0x128   : > { %v2448_v10 = vadd.f32 %v1244_v28, %v1196_v34  ;;  %v1347_v43 = vadd.f32 %v1317_v6, %v1271_v51  ;;  %v670_v48 = vmul.f32 %v650_v31, %v2338_v12  ;;  %v2453_v1 = vadd.f32 %v2324_v0, %v2229_v54 }
 0x129   : > { %v692_v22 = vmul.f32 0.16666667, %v672_v42  ;;  %v673_v18 = vmul.f32 %v653_v55, %v2341_v36  ;;  %v611_v23 = vadd.f32 3.0, %v559_v9  ;;  %v2457_v32 = vadd.f32 %v2391_v47, %v1101_v17  ;;  %v780_v47 = vpop.permute.xlu1 %779 }
 0x12a   : > { %v2460_v35 = vadd.f32 %v2443_v58, %v1347_v43  ;;  %v690_v26 = vmul.f32 0.16666667, %v670_v48  ;;  %v2463_v28 = vadd.f32 3.0, %v2453_v1  ;;  %v2467_v12 = vadd.f32 %v2229_v54, %v2329_v57 }
 0x12b   : > { %v832_v0 = vmul.f32 %v775_v7, %v692_v22  ;;  %v693_v30 = vmul.f32 0.16666667, %v673_v18  ;;  %v631_v24 = vmax.f32 %v611_v23, 0.0  ;;  %v2471_v36 = vadd.f32 %v2334_v8, %v2229_v54 }
 0x12c   : > { %v830_v14 = vmul.f32 %v765_v29, %v690_v26  ;;  %v636_v39 = vmax.f32 %v2463_v28, 0.0  ;;  %v2475_v40 = vadd.f32 3.0, %v2467_v12  ;;  %v2479_v44 = vadd.f32 %v2229_v54, %v2343_v13 }
 0x12d   : > { %v833_v57 = vmul.f32 %v780_v47, %v693_v30  ;;  %v854_v45 = vmul.f32 %v2257_v11, %v832_v0  ;;  %v871_v53 = vmul.f32 %v2263_v15, %v832_v0  ;;  %v948_v49 = vmul.f32 %v2265_v16, %v832_v0 }
 0x12e   : > { %v1043_v8 = vmul.f32 %v2267_v19, %v832_v0  ;;  %v1119_v29 = vmul.f32 %v2269_v20, %v832_v0  ;;  %v1213_v60 = vmul.f32 %v2274_v27, %v832_v0  ;;  %v1289_v59 = vmul.f32 %v2279_v33, %v832_v0 }
 0x12f   : > { %v872_v63 = vmul.f32 %v2263_v15, %v833_v57  ;;  %v909_v2 = vrot.slane %v871_v53, 1  ;;  %v949_v13 = vmul.f32 %v2265_v16, %v833_v57  ;;  %v986_v46 = vrot.slane %v948_v49, 2 }
 0x130   : > { %v1044_v50 = vmul.f32 %v2267_v19, %v833_v57  ;;  %v1079_v3 = vrot.slane %v1043_v8, 1  ;;  %v1120_v34 = vmul.f32 %v2269_v20, %v833_v57  ;;  %v1155_v51 = vrot.slane %v1119_v29, 2 }
 0x131   : > { %v910_v6 = vrot.slane %v872_v63, 1  ;;  %v987_v31 = vrot.slane %v949_v13, 2  ;;  %v1214_v17 = vmul.f32 %v2274_v27, %v833_v57  ;;  %v1248_v42 = vrot.slane %v1213_v60, 1 }
 0x132   : > { %v1080_v55 = vrot.slane %v1044_v50, 1  ;;  %v1156_v43 = vrot.slane %v1120_v34, 2  ;;  %v1290_v48 = vmul.f32 %v2279_v33, %v833_v57  ;;  %v1324_v22 = vrot.slane %v1289_v59, 2 }
 0x133   : > { %v911_v18 = vsel %vm893_vm2, %v909_v2, %v910_v6  ;;  %v988_v23 = vsel %vm970_vm3, %v986_v46, %v987_v31  ;;  %v1249_v7 = vrot.slane %v1214_v17, 1  ;;  %v651_v26 = vmin.f32 %v631_v24, 6.0 }
 0x134   : > { %v931_v28 = vadd.f32 %v911_v18, %v854_v45  ;;  %v2497_v30 = vsel %vm893_vm2, %v1079_v3, %v1080_v55  ;;  %v2500_v47 = vsel %vm970_vm3, %v1155_v51, %v1156_v43  ;;  %v1325_v53 = vrot.slane %v1290_v48, 2 }
 0x135   : > { %v2503_v49 = vsel %vm893_vm2, %v1248_v42, %v1249_v7  ;;  %v671_v8 = vmul.f32 %v651_v26, %v559_v9  ;;  %v853_v57 = vmul.f32 %v2257_v11, %v830_v14  ;;  %v869_v29 = vmul.f32 %v2263_v15, %v830_v14 }
 0x136   : > { %v2507_v60 = vadd.f32 %v988_v23, %v931_v28  ;;  %v2510_v24 = vsel %vm970_vm3, %v1324_v22, %v1325_v53  ;;  %v946_v45 = vmul.f32 %v2265_v16, %v830_v14  ;;  %v1018_v59 = vmul.f32 %v2272_v25, %v830_v14 }
 0x137   : > { %v691_v63 = vmul.f32 0.16666667, %v671_v8  ;;  %v906_v2 = vrot.slane %v869_v29, 1  ;;  %v1019_v13 = vmul.f32 %v2272_v25, %v832_v0  ;;  %v1041_v46 = vmul.f32 %v2267_v19, %v830_v14 }
 0x138   : > { %v983_v9 = vrot.slane %v946_v45, 2  ;;  %v1026_v50 = vadd.f32 %v1018_v59, %v2401_v37  ;;  %v1117_v3 = vmul.f32 %v2269_v20, %v830_v14  ;;  %v1189_v34 = vmul.f32 %v2286_v38, %v830_v14 }
 0x139   : > { %v831_v51 = vmul.f32 %v2437_v21, %v691_v63  ;;  %v1076_v6 = vrot.slane %v1041_v46, 1  ;;  %v1190_v31 = vmul.f32 %v2286_v38, %v832_v0  ;;  %v1211_v17 = vmul.f32 %v2274_v27, %v830_v14  ;;  %v785_v21 = vpop.permute.xlu0 %784 }
 0x13a   : > { %v1152_v42 = vrot.slane %v1117_v3, 2  ;;  %v1197_v55 = vadd.f32 %v1189_v34, %v2457_v32  ;;  %v1287_v43 = vmul.f32 %v2279_v33, %v830_v14  ;;  %v656_v48 = vmin.f32 %v636_v39, 6.0 }
 0x13b   : > { %v870_v22 = vmul.f32 %v2263_v15, %v831_v51  ;;  %v947_v37 = vmul.f32 %v2265_v16, %v831_v51  ;;  %v1042_v18 = vmul.f32 %v2267_v19, %v831_v51  ;;  %v1118_v23 = vmul.f32 %v2269_v20, %v831_v51 }
 0x13c   : > { %v1212_v7 = vmul.f32 %v2274_v27, %v831_v51  ;;  %v1245_v0 = vrot.slane %v1211_v17, 1  ;;  %v1288_v26 = vmul.f32 %v2279_v33, %v831_v51  ;;  %v1321_v28 = vrot.slane %v1287_v43, 2 }
 0x13d   : > { %v907_v53 = vrot.slane %v870_v22, 1  ;;  %v984_v32 = vrot.slane %v947_v37, 2  ;;  %v1077_v8 = vrot.slane %v1042_v18, 1  ;;  %v1153_v14 = vrot.slane %v1118_v23, 2 }
 0x13e   : > { %v1246_v39 = vrot.slane %v1212_v7, 1  ;;  %v1322_v29 = vrot.slane %v1288_v26, 2  ;;  %v676_v45 = vmul.f32 %v656_v48, %v2453_v1  ;;  %v634_v59 = vmax.f32 %v2475_v40, 0.0  ;;  %v795_v40 = vpop.permute.xlu0 %794  ;;  %v790_v7 = vpop.permute.xlu1 %789 }
 0x13f   : > { %v908_v63 = vsel %vm893_vm2, %v906_v2, %v907_v53  ;;  %v985_v46 = vsel %vm970_vm3, %v983_v9, %v984_v32  ;;  %v1078_v3 = vsel %vm893_vm2, %v1076_v6, %v1077_v8  ;;  %v1154_v34 = vsel %vm970_vm3, %v1152_v42, %v1153_v14 }
 0x140   : > { %v930_v51 = vadd.f32 %v908_v63, %v853_v57  ;;  %v1102_v17 = vadd.f32 %v1078_v3, %v1026_v50  ;;  %v1247_v43 = vsel %vm893_vm2, %v1245_v0, %v1246_v39  ;;  %v1323_v22 = vsel %vm970_vm3, %v1321_v28, %v1322_v29 }
 0x141   : > { %v1273_v37 = vadd.f32 %v1247_v43, %v1197_v55  ;;  %v696_v18 = vmul.f32 0.16666667, %v676_v45  ;;  %v654_v23 = vmin.f32 %v634_v59, 6.0  ;;  %v617_v1 = vadd.f32 3.0, %v2471_v36 }
 0x142   : > { %v1007_v48 = vadd.f32 %v985_v46, %v930_v51  ;;  %v1178_v2 = vadd.f32 %v1154_v34, %v1102_v17  ;;  %v615_v9 = vadd.f32 3.0, %v2479_v44  ;;  %v2542_v6 = vadd.f32 %v2373_v41, %v2229_v54 }
 0x143   : > { %v2544_v57 = vadd.f32 %v1323_v22, %v1273_v37  ;;  %v2546_v50 = vmul.f32 %v795_v40, %v696_v18  ;;  %v674_v42 = vmul.f32 %v654_v23, %v2467_v12  ;;  %v637_v55 = vmax.f32 %v617_v1, 0.0 }
 0x144   : > { %v1027_v0 = vadd.f32 %v1019_v13, %v1007_v48  ;;  %v2549_v26 = vadd.f32 %v1190_v31, %v1178_v2  ;;  %v635_v28 = vmax.f32 %v615_v9, 0.0  ;;  %v620_v53 = vadd.f32 3.0, %v2542_v6 }
 0x145   : > { %v694_v32 = vmul.f32 0.16666667, %v674_v42  ;;  %v657_v8 = vmin.f32 %v637_v55, 6.0  ;;  %v1217_v41 = vmul.f32 %v2274_v27, %v2546_v50  ;;  %v2556_v14 = vadd.f32 %v2229_v54, %v2378_v52 }
 0x146   : > { %v1103_v39 = vadd.f32 %v2497_v30, %v1027_v0  ;;  %v655_v12 = vmin.f32 %v635_v28, 6.0  ;;  %v640_v29 = vmax.f32 %v620_v53, 0.0  ;;  %v2561_v13 = vadd.f32 %v2382_v62, %v2229_v54 }
 0x147   : > { %v834_v31 = vmul.f32 %v785_v21, %v694_v32  ;;  %v677_v45 = vmul.f32 %v657_v8, %v2471_v36  ;;  %v1254_v59 = vrot.slane %v1217_v41, 1  ;;  %v2565_v63 = vadd.f32 3.0, %v2556_v14  ;;  %v800_v36 = vpop.permute.xlu1 %799 }
 0x148   : > { %v675_v46 = vmul.f32 %v655_v12, %v2479_v44  ;;  %v1179_v52 = vadd.f32 %v2500_v47, %v1103_v39  ;;  %v660_v3 = vmin.f32 %v640_v29, 6.0  ;;  %v2570_v30 = vadd.f32 3.0, %v2561_v13 }
 0x149   : > { %v697_v34 = vmul.f32 0.16666667, %v677_v45  ;;  %v855_v51 = vmul.f32 %v2257_v11, %v834_v31  ;;  %v873_v62 = vmul.f32 %v2263_v15, %v834_v31  ;;  %v950_v21 = vmul.f32 %v2265_v16, %v834_v31 }
 0x14a   : > { %v695_v17 = vmul.f32 0.16666667, %v675_v46  ;;  %v1020_v43 = vmul.f32 %v2272_v25, %v834_v31  ;;  %v1045_v22 = vmul.f32 %v2267_v19, %v834_v31  ;;  %v1121_v44 = vmul.f32 %v2269_v20, %v834_v31 }
 0x14b   : > { %v837_v47 = vmul.f32 %v800_v36, %v697_v34  ;;  %v912_v37 = vrot.slane %v873_v62, 1  ;;  %v989_v18 = vrot.slane %v950_v21, 2  ;;  %v1191_v23 = vmul.f32 %v2286_v38, %v834_v31 }
 0x14c   : > { %v835_v1 = vmul.f32 %v790_v7, %v695_v17  ;;  %v1028_v40 = vadd.f32 %v1020_v43, %v2507_v60  ;;  %v1082_v48 = vrot.slane %v1045_v22, 1  ;;  %v1158_v2 = vrot.slane %v1121_v44, 2  ;;  %v805_v17 = vpop.permute.xlu0 %804 }
 0x14d   : > { %v2581_v9 = vmul.f32 %v2263_v15, %v837_v47  ;;  %v2584_v42 = vmul.f32 %v2265_v16, %v837_v47  ;;  %v2587_v55 = vmul.f32 %v2267_v19, %v837_v47  ;;  %v2590_v0 = vmul.f32 %v2269_v20, %v837_v47 }
 0x14e   : > { %v1218_v28 = vmul.f32 %v2274_v27, %v837_v47  ;;  %v2594_v7 = vmul.f32 %v2279_v33, %v837_v47  ;;  %v874_v60 = vmul.f32 %v2263_v15, %v835_v1  ;;  %v951_v53 = vmul.f32 %v2265_v16, %v835_v1 }
 0x14f   : > { %v916_v32 = vrot.slane %v2581_v9, 1  ;;  %v993_v8 = vrot.slane %v2584_v42, 2  ;;  %v1086_v41 = vrot.slane %v2587_v55, 1  ;;  %v1046_v34 = vmul.f32 %v2267_v19, %v835_v1 }
 0x150   : > { %v1255_v12 = vrot.slane %v1218_v28, 1  ;;  %v913_v45 = vrot.slane %v874_v60, 1  ;;  %v990_v46 = vrot.slane %v951_v53, 2  ;;  %v1122_v62 = vmul.f32 %v2269_v20, %v835_v1 }
 0x151   : > { %v1199_v21 = vadd.f32 %v1191_v23, %v1179_v52  ;;  %v1215_v36 = vmul.f32 %v2274_v27, %v834_v31  ;;  %v1216_v47 = vmul.f32 %v2274_v27, %v835_v1  ;;  %v1083_v60 = vrot.slane %v1046_v34, 1 }
 0x152   : > { %v2607_v43 = vsel %vm893_vm2, %v1254_v59, %v1255_v12  ;;  %v914_v22 = vsel %vm893_vm2, %v912_v37, %v913_v45  ;;  %v991_v44 = vsel %vm970_vm3, %v989_v18, %v990_v46  ;;  %v1159_v53 = vrot.slane %v1122_v62, 2  ;;  %v810_v62 = vpop.permute.xlu1 %809 }
 0x153   : > { %v932_v28 = vadd.f32 %v914_v22, %v855_v51  ;;  %v1251_v56 = vrot.slane %v1215_v36, 1  ;;  %v1252_v29 = vrot.slane %v1216_v47, 1  ;;  %v1291_v39 = vmul.f32 %v2279_v33, %v834_v31 }
 0x154   : > { %v1292_v52 = vmul.f32 %v2279_v33, %v835_v1  ;;  %v680_v23 = vmul.f32 %v660_v3, %v2542_v6  ;;  %v1084_v59 = vsel %vm893_vm2, %v1082_v48, %v1083_v60  ;;  %v1160_v12 = vsel %vm970_vm3, %v1158_v2, %v1159_v53  ;;  %v815_v6 = vpop.permute.xlu0 %814 }
 0x155   : > { %v638_v37 = vmax.f32 %v2565_v63, 0.0  ;;  %v641_v18 = vmax.f32 %v2570_v30, 0.0  ;;  %v1104_v45 = vadd.f32 %v1084_v59, %v1028_v40  ;;  %v1253_v51 = vsel %vm893_vm2, %v1251_v56, %v1252_v29 }
 0x156   : > { %v1327_v46 = vrot.slane %v1291_v39, 2  ;;  %v1328_v34 = vrot.slane %v1292_v52, 2  ;;  %v2620_v36 = vadd.f32 %v1253_v51, %v1199_v21  ;;  %v700_v31 = vmul.f32 0.16666667, %v680_v23  ;;  %v820_v23 = vpop.permute.xlu1 %819 }
 0x157   : > { %v658_v1 = vmin.f32 %v638_v37, 6.0  ;;  %v661_v22 = vmin.f32 %v641_v18, 6.0  ;;  %v2622_v3 = vadd.f32 %v1160_v12, %v1104_v45  ;;  %v591_v63 = vadd.f32 %v2229_v54, %v2384_v4 }
 0x158   : > { %v2625_v48 = vsel %vm970_vm3, %v1327_v46, %v1328_v34  ;;  %v856_v56 = vmul.f32 %v2257_v11, %v2546_v50  ;;  %v840_v30 = vmul.f32 %v815_v6, %v700_v31  ;;  %v875_v39 = vmul.f32 %v2263_v15, %v2546_v50 }
 0x159   : > { %v678_v40 = vmul.f32 %v658_v1, %v2556_v14  ;;  %v681_v2 = vmul.f32 %v661_v22, %v2561_v13  ;;  %v619_v29 = vadd.f32 3.0, %v591_v63  ;;  %v952_v21 = vmul.f32 %v2265_v16, %v2546_v50 }
 0x15a   : > { %v1009_v47 = vadd.f32 %v991_v44, %v932_v28  ;;  %v1021_v60 = vmul.f32 %v2272_v25, %v2546_v50  ;;  %v2640_v54 = vmul.f32 %v2286_v38, %v840_v30  ;;  %v1221_v11 = vmul.f32 %v2274_v27, %v840_v30 }
 0x15b   : > { %v1297_v4 = vmul.f32 %v2279_v33, %v840_v30  ;;  %v698_v14 = vmul.f32 0.16666667, %v678_v40  ;;  %v701_v13 = vmul.f32 0.16666667, %v681_v2  ;;  %v639_v53 = vmax.f32 %v619_v29, 0.0 }
 0x15c   : > { %v915_v52 = vrot.slane %v875_v39, 1  ;;  %v992_v15 = vrot.slane %v952_v21, 2  ;;  %v1260_v59 = vrot.slane %v1221_v11, 1  ;;  %v1029_v44 = vadd.f32 %v1021_v60, %v1009_v47 }
 0x15d   : > { %v1336_v12 = vrot.slane %v1297_v4, 2  ;;  %v838_v16 = vmul.f32 %v805_v17, %v698_v14  ;;  %v841_v28 = vmul.f32 %v820_v23, %v701_v13  ;;  %v659_v37 = vmin.f32 %v639_v53, 6.0 }
 0x15e   : > { %v917_v18 = vsel %vm893_vm2, %v915_v52, %v916_v32  ;;  %v994_v45 = vsel %vm970_vm3, %v992_v15, %v993_v8  ;;  %v1047_v34 = vmul.f32 %v2267_v19, %v2546_v50  ;;  %v1123_v9 = vmul.f32 %v2269_v20, %v2546_v50 }
 0x15f   : > { %v933_v51 = vadd.f32 %v917_v18, %v856_v56  ;;  %v1022_v46 = vmul.f32 %v2272_v25, %v838_v16  ;;  %v1049_v31 = vmul.f32 %v2267_v19, %v838_v16  ;;  %v1222_v17 = vmul.f32 %v2274_v27, %v841_v28 }
 0x160   : > { %v1298_v1 = vmul.f32 %v2279_v33, %v841_v28  ;;  %v679_v22 = vmul.f32 %v659_v37, %v591_v63  ;;  %v1085_v42 = vrot.slane %v1047_v34, 1  ;;  %v1125_v8 = vmul.f32 %v2269_v20, %v838_v16 }
 0x161   : > { %v1010_v32 = vadd.f32 %v994_v45, %v933_v51  ;;  %v1088_v6 = vrot.slane %v1049_v31, 1  ;;  %v1261_v56 = vrot.slane %v1222_v17, 1  ;;  %v1161_v40 = vrot.slane %v1123_v9, 2 }
 0x162   : > { %v1337_v25 = vrot.slane %v1298_v1, 2  ;;  %v699_v30 = vmul.f32 0.16666667, %v679_v22  ;;  %v1087_v39 = vsel %vm893_vm2, %v1085_v42, %v1086_v41  ;;  %v1164_v29 = vrot.slane %v1125_v8, 2 }
 0x163   : > { %v1030_v2 = vadd.f32 %v1022_v46, %v1010_v32  ;;  %v1193_v63 = vmul.f32 %v2286_v38, %v838_v16  ;;  %v1262_v21 = vsel %vm893_vm2, %v1260_v59, %v1261_v56  ;;  %v1105_v11 = vadd.f32 %v1087_v39, %v1029_v44 }
 0x164   : > { %v1338_v47 = vsel %vm970_vm3, %v1336_v12, %v1337_v25  ;;  %v839_v60 = vmul.f32 %v810_v62, %v699_v30  ;;  %v2855_v4 = vrot.slane %v2590_v0, 2  ;;  %v1219_v13 = vmul.f32 %v2274_v27, %v838_v16 }
 0x165   : > { %v1295_v53 = vmul.f32 %v2279_v33, %v838_v16  ;;  %v1192_v55 = vmul.f32 %v2286_v38, %v2546_v50  ;;  %v1274_v38 = vadd.f32 %v2503_v49, %v2549_v26  ;;  %v1351_v26 = vadd.f32 %v2625_v48, %v2620_v36 }
 0x166   : > { %v1163_v14 = vsel %vm970_vm3, %v1161_v40, %v2855_v4  ;;  %v1050_v41 = vmul.f32 %v2267_v19, %v839_v60  ;;  %v1126_v52 = vmul.f32 %v2269_v20, %v839_v60  ;;  %v1220_v23 = vmul.f32 %v2274_v27, %v839_v60 }
 0x167   : > { %v1181_v15 = vadd.f32 %v1163_v14, %v1105_v11  ;;  %v1257_v62 = vrot.slane %v1219_v13, 1  ;;  %v1296_v59 = vmul.f32 %v2279_v33, %v839_v60  ;;  %v1333_v0 = vrot.slane %v1295_v53, 2 }
 0x168   : > { %v1200_v12 = vadd.f32 %v1192_v55, %v2622_v3  ;;  %v1089_v44 = vrot.slane %v1050_v41, 1  ;;  %v1165_v28 = vrot.slane %v1126_v52, 2  ;;  %v1258_v16 = vrot.slane %v1220_v23, 1 }
 0x169   : > { %v1201_v37 = vadd.f32 %v1193_v63, %v1181_v15  ;;  %v1334_v18 = vrot.slane %v1296_v59, 2  ;;  %v1293_v20 = vmul.f32 %v2279_v33, %v2546_v50  ;;  %v1348_v3 = vadd.f32 %v2404_v5, %v2448_v10 }
 0x16a   : > { %v1276_v19 = vadd.f32 %v2607_v43, %v1200_v12  ;;  %v1090_v27 = vsel %vm893_vm2, %v1088_v6, %v1089_v44  ;;  %v1166_v45 = vsel %vm970_vm3, %v1164_v29, %v1165_v28  ;;  %v1259_v51 = vsel %vm893_vm2, %v1257_v62, %v1258_v16 }
 0x16b   : > { %v1106_v46 = vadd.f32 %v1090_v27, %v1030_v2  ;;  %v1277_v34 = vadd.f32 %v1259_v51, %v1201_v37  ;;  %v1335_v31 = vsel %vm970_vm3, %v1333_v0, %v1334_v18  ;;  %v1330_v17 = vrot.slane %v1293_v20, 2 }
 0x16c   : > { %v1350_v49 = vadd.f32 %v2510_v24, %v1274_v38  ;;  %v1363_v33 = vadd.f32 %v2443_v58, %v1348_v3  ;;  %v1364_v50 = vadd.f32 %v2443_v58, %v2544_v57  ;;  %v2856_v5 = vrot.slane %v2594_v7, 2 }
 0x16d   : > { %v1182_v43 = vadd.f32 %v1166_v45, %v1106_v46  ;;  %v1353_v1 = vadd.f32 %v1335_v31, %v1277_v34  ;;  %v1370_v22 = vadd.f32 3.0, %v2460_v35  ;;  %v1366_v32 = vadd.f32 %v2443_v58, %v1351_v26 }
 0x16e   : > { %v1332_v10 = vsel %vm970_vm3, %v1330_v17, %v2856_v5  ;;  %v1365_v24 = vadd.f32 %v2443_v58, %v1350_v49  ;;  %v1371_v36 = vadd.f32 3.0, %v1363_v33  ;;  %v1372_v57 = vadd.f32 3.0, %v1364_v50 }
 0x16f   : > { %v1352_v9 = vadd.f32 %v1332_v10, %v1276_v19  ;;  %v1202_v48 = vadd.f32 %v2640_v54, %v1182_v43  ;;  %v1368_v42 = vadd.f32 %v2443_v58, %v1353_v1  ;;  %v1378_v6 = vmax.f32 %v1370_v22, 0.0 }
 0x170   : > { %v1373_v56 = vadd.f32 3.0, %v1365_v24  ;;  %v1374_v7 = vadd.f32 3.0, %v1366_v32  ;;  %v1379_v25 = vmax.f32 %v1371_v36, 0.0  ;;  %v1380_v2 = vmax.f32 %v1372_v57, 0.0  ;;  %v1939_v57 = vld [vmem:[%s2845_s8] sm:$0x3f]  }
 0x171   : > { %v1367_v8 = vadd.f32 %v2443_v58, %v1352_v9  ;;  %v1278_v30 = vadd.f32 %v1262_v21, %v1202_v48  ;;  %v1376_v40 = vadd.f32 3.0, %v1368_v42  ;;  %v1386_v39 = vmin.f32 %v1378_v6, 6.0 }
 0x172   : > { %v1381_v63 = vmax.f32 %v1373_v56, 0.0  ;;  %v1382_v60 = vmax.f32 %v1374_v7, 0.0  ;;  %v1387_v11 = vmin.f32 %v1379_v25, 6.0  ;;  %v1388_v54 = vmin.f32 %v1380_v2, 6.0  ;;  %v1441_v25 = vld [vmem:[%s2844_s7] sm:$0x1] }
 0x173   : > { %v1375_v29 = vadd.f32 3.0, %v1367_v8  ;;  %v1354_v4 = vadd.f32 %v1338_v47, %v1278_v30  ;;  %v1384_v14 = vmax.f32 %v1376_v40, 0.0  ;;  %v1394_v13 = vmul.f32 %v1386_v39, %v2460_v35 }
 0x174   : > { %v1389_v55 = vmin.f32 %v1381_v63, 6.0  ;;  %v1390_v41 = vmin.f32 %v1382_v60, 6.0  ;;  %v1395_v52 = vmul.f32 %v1387_v11, %v1363_v33  ;;  %v1396_v21 = vmul.f32 %v1388_v54, %v1364_v50  ;;  %v1940_v11 = vld [vmem:[%s2847_s10] sm:$0xff]  }
 0x175   : > { %v1383_v53 = vmax.f32 %v1375_v29, 0.0  ;;  %v1369_v15 = vadd.f32 %v2443_v58, %v1354_v4  ;;  %v1392_v23 = vmin.f32 %v1384_v14, 6.0  ;;  %v2705_v62 = vmul.f32 0.16666667, %v1394_v13  ;;  %v1941_v4 = vld [vmem:[%s2847_s10 + $0x8] sm:$0xff]   ;;  %v1942_v14 = vld [vmem:[%s2847_s10 + $0x10] sm:$0xff]  }
 0x176   : > { %v1397_v0 = vmul.f32 %v1389_v55, %v1365_v24  ;;  %v1398_v12 = vmul.f32 %v1390_v41, %v1366_v32  ;;  %v2707_v44 = vmul.f32 0.16666667, %v1395_v52  ;;  %v2709_v37 = vmul.f32 0.16666667, %v1396_v21  ;;  %v1507_v54 = vld [vmem:[%s2846_s9] sm:$0x1] }
 0x177   : > { %v1391_v59 = vmin.f32 %v1383_v53, 6.0  ;;  %v1377_v47 = vadd.f32 3.0, %v1369_v15  ;;  %v1400_v28 = vmul.f32 %v1392_v23, %v1368_v42  ;;  %v1411_v35 = vsel %vm1410_vm4, %v2705_v62, 0.0 }
 0x178   : > { %v2713_v18 = vmul.f32 0.16666667, %v1397_v0  ;;  %v2715_v58 = vmul.f32 0.16666667, %v1398_v12  ;;  %v1412_v38 = vsel %vm1410_vm4, %v2707_v44, 0.0  ;;  %v1414_v27 = vsel %vm1410_vm4, %v2709_v37, 0.0 }
 0x179   : > { %v1399_v16 = vmul.f32 %v1391_v59, %v1367_v8  ;;  %v1385_v19 = vmax.f32 %v1377_v47, 0.0  ;;  %v1413_v20 = vadd.f32 %v1412_v38, %v1411_v35  ;;  %v2725_v34 = vmul.f32 0.16666667, %v1400_v28 }
 0x17a   : > { %v1416_v51 = vsel %vm1410_vm4, %v2713_v18, 0.0  ;;  %v1418_v31 = vsel %vm1410_vm4, %v2715_v58, 0.0  ;;  %v1518_v56 = vsel %vm970_vm3, %v1939_v57, 0  ;;  %v2857_v7 = vmov 0.0  }
 0x17b   : > { %v2721_v45 = vmul.f32 0.16666667, %v1399_v16  ;;  %v1393_v3 = vmin.f32 %v1385_v19, 6.0  ;;  %v1415_v46 = vadd.f32 %v1414_v27, %v1413_v20  ;;  %v1422_v43 = vsel %vm1410_vm4, %v2725_v34, 0.0 }
 0x17d   : > { %v1401_v17 = vmul.f32 %v1393_v3, %v1369_v15  ;;  %v1417_v49 = vadd.f32 %v1416_v51, %v1415_v46  ;;  %v1420_v26 = vsel %vm1410_vm4, %v2721_v45, 0.0 }
 0x17f   : > { %v2731_v33 = vmul.f32 0.16666667, %v1401_v17  ;;  %v1419_v50 = vadd.f32 %v1418_v31, %v1417_v49 }
 0x181   : > { %v1421_v1 = vadd.f32 %v1420_v26, %v1419_v50  ;;  %v1424_v5 = vsel %vm1410_vm4, %v2731_v33, 0.0 }
 0x183   : > { %v1423_v10 = vadd.f32 %v1422_v43, %v1421_v1 }
 0x185   : > { %v1425_v22 = vadd.f32 %v1424_v5, %v1423_v10 }
 0x187   : > { %v1426_v9 = vrot.slane %v1425_v22, 4 }
 0x189   : > { %v1427_v24 = vadd.f32 %v1426_v9, %v1425_v22 }
 0x18b   : > { %v1428_v32 = vrot.slane %v1427_v24, 2 }
 0x18d   : > { %v1429_v36 = vadd.f32 %v1428_v32, %v1427_v24 }
 0x18f   : > { %v1430_v48 = vrot.slane %v1429_v36, 1 }
 0x191   : > { %v1431_v42 = vadd.f32 %v1430_v48, %v1429_v36 }
 0x193   : > { %v1433_v6 = vmul.f32 0.015625, %v1431_v42 }
 0x195   : > { %v1434_v8 = vpack.c.bf16 %v1433_v6, %v1433_v6 }
 0x197   : > { %1865 = vmatmul.mubr.msk.bf16.vlgmr.msra.gmra.mrb[0].mxu1 %vm1410_vm4, %v1434_v8 }
 0x198   : > { %1869 = vmatpush3.bf16.msra.mxu1 %v1518_v56  ;;  %1870 = vmatprep.mubr.msk.bf16.mxu1 %vm2009_vm1, %v2857_v7 }
 0x199   : > { %1874 = vmatprep.subr.bf16.mxu1 %v1940_v11 }
 0x26a   : > { %v1497_v30 = vpop.f32.mrb[0].mxu1 }
 0x26b   : > { %v1498_v40 = vadd.f32 %v1497_v30, %v1441_v25  ;;  %v1866_v2 = vpop.f32.mrb[1].mxu1 }
 0x26c   : > { %v1500_v39 = vpop.f32.mrb[2].mxu1 }
 0x26d   : > { %v1503_v29 = vmax.f32 %v1498_v40, 0.0  ;;  %v1867_v63 = vpop.f32.mrb[3].mxu1 }
 0x26f   : > { %v1504_v60 = vpack.c.bf16 %v1503_v29, %v1503_v29 }
 0x271   : > { %1871 = vmatmul.mubr.msk.bf16.vlgmr.msra.gmra.mrb[4].mxu1 %vm1513_vm5, %v1504_v60 }
 0x272   : > { %1875 = vmatpush3.bf16.msra.mxu1 %v1940_v11 }
 0x273   : > { %1876 = vmatprep.subr.bf16.mxu1 %v1941_v4 }
 0x276   : > { %1877 = vmatpush3.bf16.msra.mxu1 %v1941_v4 }
 0x277   : > { %1878 = vmatprep.subr.bf16.mxu1 %v1942_v14 }
 0x27a   : > { %1879 = vmatpush3.bf16.msra.mxu1 %v1942_v14 }
 0x344   : > { %v1554_v13 = vpop.f32.mrb[4].mxu1 }
 0x345   : > { %v1555_v53 = vadd.f32 %v1554_v13, %v1507_v54  ;;  %v1872_v55 = vpop.f32.mrb[5].mxu1 }
 0x346   : > { %v1557_v41 = vpop.f32.mrb[6].mxu1 }
 0x347   : > { %v1560_v52 = vadd.f32 3.0, %v1555_v53  ;;  %v1873_v15 = vpop.f32.mrb[7].mxu1 }
 0x349   : > { %v1561_v23 = vmax.f32 %v1560_v52, 0.0 }
 0x34b   : > { %v1562_v21 = vmin.f32 %v1561_v23, 6.0 }
 0x34d   : > { %v1563_v59 = vmul.f32 0.16666667, %v1562_v21 }
 0x34f   : > { %v1567_v0 = vrot.slane %v1563_v59, %v2241_v61 }
 0x351   : > { %v1568_v12 = vmul.f32 %v1567_v0, %v2705_v62  ;;  %v1569_v47 = vmul.f32 %v1567_v0, %v2707_v44  ;;  %v1570_v28 = vmul.f32 %v1567_v0, %v2709_v37  ;;  %v1571_v35 = vmul.f32 %v1567_v0, %v2713_v18  ;;  %v1798_v37 = vld [vmem:[%s2848_s11] ss:$0 sm:$0xff] }
 0x352   : > { %v1572_v16 = vmul.f32 %v1567_v0, %v2715_v58  ;;  %v1573_v38 = vmul.f32 %v1567_v0, %v2721_v45  ;;  %v1574_v61 = vmul.f32 %v1567_v0, %v2725_v34  ;;  %v1575_v62 = vmul.f32 %v1567_v0, %v2731_v33 }
 0x353   : > { %v1576_v19 = vpack.c.bf16 %v1569_v47, %v1568_v12  ;;  %v1577_v20 = vpack.c.bf16 %v1571_v35, %v1570_v28 }
 0x354   : > { %v1578_v27 = vpack.c.bf16 %v1573_v38, %v1572_v16  ;;  %v1579_v44 = vpack.c.bf16 %v1575_v62, %v1574_v61 }
 0x355   : > { %1880 = vmatprep.mubr.msk.bf16.mxu1 %vm1410_vm4, %v1576_v19 }
 0x356   : > { %1881 = vmatmul.mubr.msk.bf16.vlgmr.msra.gmra.mrb[8].mxu1 %vm1410_vm4, %v1577_v20 }
 0x357   : > { %1884 = vmatprep.mubr.msk.bf16.mxu1 %vm1410_vm4, %v1578_v27 }
 0x35e   : > { %1885 = vmatmul.mubr.msk.bf16.gmra.mrb[12].mxu1 %vm1410_vm4, %v1579_v44 }
 0x429   : > { %v1882_v18 = vpop.f32.mrb[8].mxu1 }
 0x42a   : > { %v1666_v58 = vadd.f32 %v1882_v18, %v1798_v37  ;;  %v1657_v45 = vpop.f32.mrb[9].mxu1 }
 0x42b   : > { %v1658_v51 = vadd.f32 %v1798_v37, %v1657_v45  ;;  %v1883_v3 = vpop.f32.mrb[10].mxu1 }
 0x42c   : > { %1691 = vst.msk [vmem:[%s406_s16 + $0x10] sm:$0xff] %vm1688_vm6, %v1666_v58  ;;  %v1669_v46 = vadd.f32 %v1883_v3, %v1798_v37  ;;  %v1660_v34 = vpop.f32.mrb[11].mxu1 }
 0x42d   : > { %1689 = vst.msk [vmem:[%s406_s16] sm:$0xff] %vm1688_vm6, %v1658_v51  ;;  %v1661_v31 = vadd.f32 %v1798_v37, %v1660_v34 }
 0x42e   : > { %1692 = vst.msk [vmem:[%s406_s16 + $0x18] sm:$0xff] %vm1688_vm6, %v1669_v46 }
 0x42f   : > { %1690 = vst.msk [vmem:[%s406_s16 + $0x8] sm:$0xff] %vm1688_vm6, %v1661_v31 }
 0x431   : > { %v1886_v17 = vpop.f32.mrb[12].mxu1 }
 0x432   : > { %v1682_v49 = vadd.f32 %v1886_v17, %v1798_v37  ;;  %v1673_v26 = vpop.f32.mrb[13].mxu1 }
 0x433   : > { %v1674_v33 = vadd.f32 %v1798_v37, %v1673_v26  ;;  %v1887_v50 = vpop.f32.mrb[14].mxu1 }
 0x434   : > { %1695 = vst.msk [vmem:[%s406_s16 + $0x30] sm:$0xff] %vm1688_vm6, %v1682_v49  ;;  %v1685_v43 = vadd.f32 %v1887_v50, %v1798_v37  ;;  %v1676_v1 = vpop.f32.mrb[15].mxu1 }
 0x435   : > { %1693 = vst.msk [vmem:[%s406_s16 + $0x20] sm:$0xff] %vm1688_vm6, %v1674_v33  ;;  %v1677_v5 = vadd.f32 %v1798_v37, %v1676_v1 }
 0x436   : > { %1696 = vst.msk [vmem:[%s406_s16 + $0x38] sm:$0xff] %vm1688_vm6, %v1685_v43 }
 0x437   : > { %1694 = vst.msk [vmem:[%s406_s16 + $0x28] sm:$0xff] %vm1688_vm6, %v1677_v5 }
 0x438   : > { %1956 = shalt.err (!%p1953_p3)
}
 0x439   : > { %s1957_s28 = scalar_lea.hbm %s2787_s20, 1024  ;;  %s1961_s15 = scalar_lea.hbm %s2849_s12, 2048 }
 0x43a   : > { %p1958_p4 = scmp.ne.s32.totalorder %s2787_s20, %s1957_s28  ;;  %p1962_p9 = scmp.lt.u32.totalorder %s2787_s20, %s2849_s12 }
 0x43b   : > { %p1963_p10 = scmp.lt.u32.totalorder %s1961_s15, %s1957_s28  ;;  %p1965_p12 = scmp.lt.u32.totalorder %s1957_s28, %s2787_s20 }
 0x43c   : > { %p1959_p7 = pnand %p1958_p4, %p2116_p5 }
 0x43d   : > { %p1964_p11 = por %p1963_p10, %p1962_p9 }
 0x43e   : > { %p1960_p8 = pneg %p1959_p7 }
 0x43f   : > { %p1966_p13 = por %p1965_p12, %p1964_p11 }
 0x441   : > { %p1967_p0 = pnand %p1966_p13, %p1960_p8 }
 0x443   : > { %1970 = shalt.err (!%p1967_p0)
}
 0x444   : > { %s2011_s29 = smov 128   ;;  %s2012_s19 = smov 8  }
 0x445   : > { %1889 = dma.vmem_to_hbm [thread:$0]  (%p2116_p5), %s2789_s18, 1024, %s2787_s20, %s2796_s25, %s2011_s29, %s2011_s29, %s2012_s19  }
 0x446 PF: > { %p1895_p1 = scmp.ge.s32.totalorder %s2005_s24, 2  ;;  %s1726_s0 = sand.u32 1, %s1993_s21  }
 0x447   : > { %s1727_s28 = scalar_lea.sflag [#allocation3], %s1726_s0 }
 0x448   : > { %p1892_p2 = pnand %p1895_p1, %p2120_p6 }
 0x44a   : > { %1988 = dma.done.wait (!%p1892_p2), %s1727_s28, 1024  }
 0x44b   : > { %1990 = vsyncadd (!%p1892_p2), %s1727_s28, 4294966272  ;;  %p22_p3 = scmp.ge.s32.totalorder %s2103_s27, 4   ;;  %s2858_s21 = smov %s1997_s22 }
 0x44c   : > { %s2859_s22 = smov %s2001_s23  ;;  %s2860_s23 = smov %s2114_s30 }
 0x44d   : > { %s2861_s24 = smov %s2103_s27  ;;  %24 = sbr.rel (!%p22_p3) target bundleno = 5 (0x5), region = 103 }
 0x454   :  { %1732 = vsyncpa [#allocation3], 1 }
 0x455   :  { %1734 = vsyncpa [#allocation3 + $0x1], 1 }

</bundles_post_ra>
